<compile_context>
chip_gen: v7x
topology: tpu7x:2x2x1
jax: 0.10.0
libtpu: 0.0.40
codegen_flags: <defaults>
</compile_context>

<pallas_src>
import functools
import math

import jax
import jax.numpy as jnp
from jax.experimental import pallas as pl
from jax.experimental.pallas import tpu as pltpu


# ----------------------------------------------------------------------------
# Tile selection helper
# ----------------------------------------------------------------------------

def _pick_tile(dim, prefs):
    """Largest preferred tile that divides `dim`, else the full dim."""
    for t in prefs:
        if dim % t == 0:
            return t
    return dim


# ----------------------------------------------------------------------------
# Tiled matmul (+ bias, optional QuickGELU, optional fused residual add)
# ----------------------------------------------------------------------------

def _matmul_kernel(a_ref, w_ref, b_ref, *rest, activation, has_residual):
    if has_residual:
        r_ref, o_ref, acc_ref = rest
    else:
        o_ref, acc_ref = rest

    @pl.when(pl.program_id(2) == 0)
    def _():
        acc_ref[...] = jnp.zeros_like(acc_ref)

    acc_ref[...] += jnp.dot(
        a_ref[...].astype(jnp.bfloat16),
        w_ref[...].astype(jnp.bfloat16),
        preferred_element_type=jnp.float32,
    )

    @pl.when(pl.program_id(2) == pl.num_programs(2) - 1)
    def _():
        out = acc_ref[...] + b_ref[...].astype(jnp.float32)
        if activation == "quickgelu":  # CLIP's QuickGELU: x * sigmoid(1.702 x)
            out = out * jax.nn.sigmoid(1.702 * out)
        if has_residual:
            out = out + r_ref[...].astype(jnp.float32)
        o_ref[...] = out.astype(o_ref.dtype)


def matmul_bias(a, w, b=None, activation=None, residual=None):
    """a: (M, K) @ w: (K, N) + b, optional fused QuickGELU / residual add."""
    M, K = a.shape
    K2, N = w.shape
    assert K == K2
    if b is None:
        b = jnp.zeros((N,), jnp.float32)
    b2 = b.reshape(1, N).astype(jnp.float32)

    tm = _pick_tile(M, (256, 128, 64, 32, 16, 8))
    tn = _pick_tile(N, (256, 128))
    tk = _pick_tile(K, (512, 256, 128))
    grid = (M // tm, N // tn, K // tk)

    in_specs = [
        pl.BlockSpec((tm, tk), lambda i, j, k: (i, k)),
        pl.BlockSpec((tk, tn), lambda i, j, k: (k, j)),
        pl.BlockSpec((1, tn), lambda i, j, k: (0, j)),
    ]
    operands = [a, w, b2]
    has_residual = residual is not None
    if has_residual:
        in_specs.append(pl.BlockSpec((tm, tn), lambda i, j, k: (i, j)))
        operands.append(residual.reshape(M, N))

    return pl.pallas_call(
        functools.partial(_matmul_kernel, activation=activation,
                          has_residual=has_residual),
        grid=grid,
        in_specs=in_specs,
        out_specs=pl.BlockSpec((tm, tn), lambda i, j, k: (i, j)),
        out_shape=jax.ShapeDtypeStruct((M, N), a.dtype),
        scratch_shapes=[pltpu.VMEM((tm, tn), jnp.float32)],
        compiler_params=pltpu.CompilerParams(
            dimension_semantics=("parallel", "parallel", "arbitrary"),
            vmem_limit_bytes=32 * 1024 * 1024),
    )(*operands)


def linear(x, w, b=None, activation=None, residual=None):
    lead = x.shape[:-1]
    r2 = None if residual is None else residual.reshape(-1, w.shape[-1])
    out = matmul_bias(x.reshape(-1, x.shape[-1]), w, b, activation, r2)
    return out.reshape(*lead, w.shape[-1])


# ----------------------------------------------------------------------------
# LayerNorm (row-tiled)
# ----------------------------------------------------------------------------

def _layernorm_kernel(x_ref, g_ref, b_ref, o_ref):
    x = x_ref[...].astype(jnp.float32)
    mean = jnp.mean(x, axis=-1, keepdims=True)
    var = jnp.mean((x - mean) ** 2, axis=-1, keepdims=True)
    y = (x - mean) * jax.lax.rsqrt(var + 1e-5)
    o_ref[...] = (y * g_ref[...] + b_ref[...]).astype(o_ref.dtype)


def layernorm(x, g, b):
    D = x.shape[-1]
    rows = int(x.size // D)
    x2 = x.reshape(rows, D)
    tr = _pick_tile(rows, (512, 256, 128, 64, 32, 16, 8))
    out = pl.pallas_call(
        _layernorm_kernel,
        grid=(rows // tr,),
        in_specs=[pl.BlockSpec((tr, D), lambda i: (i, 0)),
                  pl.BlockSpec((1, D), lambda i: (0, 0)),
                  pl.BlockSpec((1, D), lambda i: (0, 0))],
        out_specs=pl.BlockSpec((tr, D), lambda i: (i, 0)),
        out_shape=jax.ShapeDtypeStruct((rows, D), x.dtype),
        compiler_params=pltpu.CompilerParams(dimension_semantics=("parallel",)),
    )(x2, g.reshape(1, D), b.reshape(1, D))
    return out.reshape(x.shape)


# ----------------------------------------------------------------------------
# Fused multi-head attention (packed QKV in, all heads per grid step)
# ----------------------------------------------------------------------------

def _attention_kernel(qkv_ref, o_ref, *, n_heads, scale, causal, kv_len):
    S = o_ref.shape[1]
    D = o_ref.shape[2]
    hd = D // n_heads

    mask = None
    if causal or kv_len < S:
        col = jax.lax.broadcasted_iota(jnp.int32, (S, S), 1)
        m = col >= kv_len                      # key-padding mask
        if causal:
            row = jax.lax.broadcasted_iota(jnp.int32, (S, S), 0)
            m = jnp.logical_or(m, col > row)   # CLIP causal text mask
        mask = m

    outs = []
    for h in range(n_heads):  # static unrolled loop over heads
        q = qkv_ref[0, :, pl.ds(h * hd, hd)].astype(jnp.bfloat16)
        k = qkv_ref[0, :, pl.ds(D + h * hd, hd)].astype(jnp.bfloat16)
        v = qkv_ref[0, :, pl.ds(2 * D + h * hd, hd)].astype(jnp.bfloat16)
        s = jnp.dot(q, k.T, preferred_element_type=jnp.float32) * scale
        if mask is not None:
            s = jnp.where(mask, jnp.float32(-1e30), s)
        s = s - jnp.max(s, axis=-1, keepdims=True)
        p = jnp.exp(s)
        p = p * pl.reciprocal(jnp.sum(p, axis=-1, keepdims=True), approx=True)
        o = jnp.dot(p.astype(jnp.bfloat16), v, preferred_element_type=jnp.float32)
        outs.append(o)
    o_ref[0] = jnp.concatenate(outs, axis=-1).astype(o_ref.dtype)


def fused_attention(qkv, n_heads, scale, causal, kv_len):
    """qkv: (B, S, 3D) packed [q|k|v]; returns (B, S, D)."""
    B, S, D3 = qkv.shape
    D = D3 // 3
    return pl.pallas_call(
        functools.partial(_attention_kernel, n_heads=n_heads, scale=scale,
                          causal=causal, kv_len=kv_len),
        grid=(B,),
        in_specs=[pl.BlockSpec((1, S, D3), lambda b: (b, 0, 0))],
        out_specs=pl.BlockSpec((1, S, D), lambda b: (b, 0, 0)),
        out_shape=jax.ShapeDtypeStruct((B, S, D), qkv.dtype),
        compiler_params=pltpu.CompilerParams(dimension_semantics=("parallel",)),
    )(qkv)


# ----------------------------------------------------------------------------
# CLIP head: L2-normalise features, scaled similarity logits (scale via SMEM)
# ----------------------------------------------------------------------------

def _clip_head_kernel(img_ref, txt_ref, scale_ref, logits_ref, txt_out_ref):
    imf = img_ref[...].astype(jnp.float32)
    txf = txt_ref[...].astype(jnp.float32)
    imf = imf * jax.lax.rsqrt(
        jnp.maximum(jnp.sum(imf * imf, axis=-1, keepdims=True), 1e-12))
    txf = txf * jax.lax.rsqrt(
        jnp.maximum(jnp.sum(txf * txf, axis=-1, keepdims=True), 1e-12))
    ls = jnp.exp(jnp.full((1, 1), scale_ref[0, 0], jnp.float32))
    logits = jnp.dot(imf, txf.T, preferred_element_type=jnp.float32) * ls
    logits_ref[...] = logits.astype(logits_ref.dtype)
    txt_out_ref[...] = txf.astype(txt_out_ref.dtype)


def clip_head(image_features, text_features, logit_scale):
    B, D = image_features.shape
    C, _ = text_features.shape
    return pl.pallas_call(
        _clip_head_kernel,
        in_specs=[pl.BlockSpec(memory_space=pltpu.MemorySpace.VMEM),
                  pl.BlockSpec(memory_space=pltpu.MemorySpace.VMEM),
                  pl.BlockSpec(memory_space=pltpu.MemorySpace.SMEM)],
        out_shape=(jax.ShapeDtypeStruct((B, C), jnp.float32),
                   jax.ShapeDtypeStruct((C, D), jnp.float32)),
    )(image_features, text_features, logit_scale.reshape(1, 1))


# ----------------------------------------------------------------------------
# Model glue (residual transformer blocks, vision / text encoders, prompts)
# ----------------------------------------------------------------------------

def residual_block(x, p, n_heads, causal, kv_len):
    B, S, D = x.shape
    h = layernorm(x, p["ln1_g"], p["ln1_b"])
    qkv = linear(h, p["in_w"], p["in_b"])                       # (B, S, 3D)
    attn = fused_attention(qkv, n_heads, 1.0 / math.sqrt(D // n_heads),
                           causal, kv_len)
    x = linear(attn, p["out_w"], p["out_b"], residual=x)        # fused +res
    h = layernorm(x, p["ln2_g"], p["ln2_b"])
    h = linear(h, p["fc_w"], p["fc_b"], activation="quickgelu")
    x = linear(h, p["proj_w"], p["proj_b"], residual=x)         # fused +res
    return x


def image_encoder(image, p, cfg):
    B, C, R, _ = image.shape
    P = cfg["patch"]
    g = R // P
    Dv = cfg["vision_width"]
    # conv(kernel=stride=P, no bias) == patch-extract + matmul
    patches = image.reshape(B, C, g, P, g, P).transpose(0, 2, 4, 1, 3, 5)
    patches = patches.reshape(B, g * g, C * P * P)
    x = linear(patches, p["conv_w"])                            # (B, g*g, Dv)
    cls = jnp.broadcast_to(p["class_emb"].reshape(1, 1, Dv), (B, 1, Dv))
    x = jnp.concatenate([cls, x], axis=1) + p["pos_emb"][None]  # (B, 1+g*g, Dv)
    S0 = x.shape[1]
    S = ((S0 + 7) // 8) * 8                                     # sublane-align
    if S != S0:
        x = jnp.pad(x, ((0, 0), (0, S - S0), (0, 0)))           # pad keys masked
    x = layernorm(x, p["ln_pre_g"], p["ln_pre_b"])
    for blk in p["blocks"]:
        x = residual_block(x, blk, cfg["vision_heads"], causal=False, kv_len=S0)
    x_cls = layernorm(x[:, 0, :], p["ln_post_g"], p["ln_post_b"])
    return matmul_bias(x_cls, p["proj"])                        # (B, embed_dim)


def prompt_learner(p, cfg):
    n_cls, n_ctx = cfg["n_cls"], cfg["n_ctx"]
    ctx = jnp.broadcast_to(p["ctx"][None], (n_cls, n_ctx, p["ctx"].shape[-1]))
    return jnp.concatenate([p["token_prefix"], ctx, p["token_suffix"]], axis=1)


def text_encoder(prompts, tokenized_prompts, p, cfg):
    n_cls, L, D = prompts.shape
    x = prompts + p["pos_emb"][None]
    for blk in p["blocks"]:
        x = residual_block(x, blk, cfg["text_heads"], causal=True, kv_len=L)
    x = layernorm(x, p["ln_final_g"], p["ln_final_b"])
    eot = jnp.argmax(tokenized_prompts, axis=-1)
    x_eot = x[jnp.arange(n_cls), eot]                           # (n_cls, D)
    return matmul_bias(x_eot, p["text_projection"])             # (n_cls, embed)


def original_clip_forward(image, params, cfg):
    image_features = image_encoder(image.astype(jnp.float32), params["visual"], cfg)
    prompts = prompt_learner(params["prompt"], cfg)
    text_features = text_encoder(prompts, params["tokenized_prompts"],
                                 params["text"], cfg)
    logits, text_features_norm = clip_head(image_features, text_features,
                                           params["logit_scale"])
    return logits, text_features_norm


# ----------------------------------------------------------------------------
# Deterministic synthetic parameter init (shapes implied by the module)
# ----------------------------------------------------------------------------

def init_block(key, D):
    ks = jax.random.split(key, 4)
    s = 0.02
    f32 = jnp.float32
    return {
        "ln1_g": jnp.ones((D,), f32), "ln1_b": jnp.zeros((D,), f32),
        "in_w": (jax.random.normal(ks[0], (D, 3 * D)) * s).astype(f32),
        "in_b": jnp.zeros((3 * D,), f32),
        "out_w": (jax.random.normal(ks[1], (D, D)) * s).astype(f32),
        "out_b": jnp.zeros((D,), f32),
        "ln2_g": jnp.ones((D,), f32), "ln2_b": jnp.zeros((D,), f32),
        "fc_w": (jax.random.normal(ks[2], (D, 4 * D)) * s).astype(f32),
        "fc_b": jnp.zeros((4 * D,), f32),
        "proj_w": (jax.random.normal(ks[3], (4 * D, D)) * s).astype(f32),
        "proj_b": jnp.zeros((D,), f32),
    }


def init_params(key, cfg):
    f32 = jnp.float32
    P, C = cfg["patch"], 3
    Dv, Dt, E = cfg["vision_width"], cfg["text_width"], cfg["embed_dim"]
    g = cfg["resolution"] // P
    vis_seq = 1 + g * g
    n_cls, L, n_ctx = cfg["n_cls"], cfg["ctx_len"], cfg["n_ctx"]
    s = 0.02

    keys = iter(jax.random.split(key, 32))
    visual = {
        "conv_w": (jax.random.normal(next(keys), (C * P * P, Dv)) * s).astype(f32),
        "class_emb": (jax.random.normal(next(keys), (Dv,)) * s).astype(f32),
        "pos_emb": (jax.random.normal(next(keys), (vis_seq, Dv)) * s).astype(f32),
        "ln_pre_g": jnp.ones((Dv,), f32), "ln_pre_b": jnp.zeros((Dv,), f32),
        "ln_post_g": jnp.ones((Dv,), f32), "ln_post_b": jnp.zeros((Dv,), f32),
        "proj": (jax.random.normal(next(keys), (Dv, E)) * s).astype(f32),
        "blocks": [init_block(next(keys), Dv) for _ in range(cfg["vision_layers"])],
    }
    text = {
        "pos_emb": (jax.random.normal(next(keys), (L, Dt)) * s).astype(f32),
        "ln_final_g": jnp.ones((Dt,), f32), "ln_final_b": jnp.zeros((Dt,), f32),
        "text_projection": (jax.random.normal(next(keys), (Dt, E)) * s).astype(f32),
        "blocks": [init_block(next(keys), Dt) for _ in range(cfg["text_layers"])],
    }
    prompt = {
        "ctx": (jax.random.normal(next(keys), (n_ctx, Dt)) * 0.02).astype(f32),
        "token_prefix": (jax.random.normal(next(keys), (n_cls, 1, Dt)) * s).astype(f32),
        "token_suffix": (jax.random.normal(next(keys),
                                           (n_cls, L - 1 - n_ctx, Dt)) * s).astype(f32),
    }
    # tokenized prompts: argmax(-1) marks the EOT position (like CLIP's 49407)
    eot_pos = jnp.array([5, 6, 7], dtype=jnp.int32)[:n_cls]
    tok = jnp.zeros((n_cls, L), jnp.int32) + jnp.arange(L, dtype=jnp.int32)[None]
    tok = tok.at[jnp.arange(n_cls), eot_pos].set(49407)
    return {
        "visual": visual,
        "text": text,
        "prompt": prompt,
        "tokenized_prompts": tok,
        "logit_scale": jnp.array(math.log(1.0 / 0.07), jnp.float32),
    }


# TODO(synk): the reference asserts input_resolution == 224 and uses the real
# CLIP tokenizer / token_embedding; a small synthetic resolution and
# pre-tokenised prompt embeddings are used here (forward semantics identical).

if __name__ == "__main__":
    cfg = dict(
        patch=8, resolution=16,
        vision_width=32, vision_heads=4, vision_layers=2,
        text_width=32, text_heads=4, text_layers=2,
        embed_dim=32,
        n_cls=3, ctx_len=8, n_ctx=4,
    )
    key = jax.random.PRNGKey(0)
    k_img, k_params = jax.random.split(key)
    image = jax.random.normal(k_img, (2, 3, cfg["resolution"], cfg["resolution"]),
                              dtype=jnp.float32)  # NCHW like PyTorch
    params = init_params(k_params, cfg)

    forward = jax.jit(functools.partial(original_clip_forward, cfg=cfg))
    logits, text_features = forward(image, params)
    logits, text_features = jax.block_until_ready((logits, text_features))

    assert logits.shape == (2, cfg["n_cls"])
    assert text_features.shape == (cfg["n_cls"], cfg["embed_dim"])
    assert bool(jnp.all(jnp.isfinite(logits))) and bool(jnp.all(jnp.isfinite(text_features)))
    print("KERNEL_OK")
</pallas_src>

<mosaic_0001>
module attributes {stable_mosaic.version = 11 : i64} {
  func.func @_matmul_kernel(%arg0: i32, %arg1: i32, %arg2: i32, %arg3: memref<8x192xf32, #tpu.memory_space<vmem>>, %arg4: memref<192x32xf32, #tpu.memory_space<vmem>>, %arg5: memref<1x32xf32, #tpu.memory_space<vmem>>, %arg6: memref<8x32xf32, #tpu.memory_space<vmem>>, %arg7: memref<8x32xf32, #tpu.memory_space<vmem>>) attributes {dimension_semantics = [#tpu.dimension_semantics<parallel>, #tpu.dimension_semantics<parallel>, #tpu.dimension_semantics<arbitrary>], iteration_bounds = array<i64: 1, 1, 1>, scalar_prefetch = 0 : i64, scratch_operands = 1 : i64, tpu.core_type = #tpu.core_type<tc>, window_params = [{transform_indices = @transform_0, window_bounds = array<i64: 8, 192>}, {transform_indices = @transform_1, window_bounds = array<i64: 192, 32>}, {transform_indices = @transform_2, window_bounds = array<i64: 1, 32>}, {transform_indices = @transform_3, window_bounds = array<i64: 8, 32>}]} {
    %c0_i32 = arith.constant 0 : i32
    %0 = arith.cmpi eq, %arg2, %c0_i32 : i32
    %1 = arith.extui %0 : i1 to i32
    %c0_i32_0 = arith.constant 0 : i32
    %2 = arith.cmpi ne, %1, %c0_i32_0 : i32
    scf.if %2 {
      %cst_10 = arith.constant 0.000000e+00 : f32
      %14 = vector.broadcast %cst_10 : f32 to vector<8x32xf32>
      %c0_11 = arith.constant 0 : index
      %c0_12 = arith.constant 0 : index
      %15 = vector.load %arg7[%c0_11, %c0_12] : memref<8x32xf32, #tpu.memory_space<vmem>>, vector<8x32xf32>
      tpu.vector_store %arg7[%c0_11, %c0_12], %14 {strides = array<i32>} : memref<8x32xf32, #tpu.memory_space<vmem>>, vector<8x32xf32>,
    } else {
    }
    %c0 = arith.constant 0 : index
    %c0_1 = arith.constant 0 : index
    %3 = vector.load %arg7[%c0, %c0_1] : memref<8x32xf32, #tpu.memory_space<vmem>>, vector<8x32xf32>
    %c0_2 = arith.constant 0 : index
    %c0_3 = arith.constant 0 : index
    %4 = vector.load %arg3[%c0_2, %c0_3] : memref<8x192xf32, #tpu.memory_space<vmem>>, vector<8x192xf32>
    %5 = arith.truncf %4 : vector<8x192xf32> to vector<8x192xbf16>
    %c0_4 = arith.constant 0 : index
    %c0_5 = arith.constant 0 : index
    %6 = vector.load %arg4[%c0_4, %c0_5] : memref<192x32xf32, #tpu.memory_space<vmem>>, vector<192x32xf32>
    %7 = arith.truncf %6 : vector<192x32xf32> to vector<192x32xbf16>
    %cst = arith.constant dense<0.000000e+00> : vector<8x32xf32>
    %8 = tpu.matmul %5, %7, %cst {dimension_numbers = #tpu.dot_dimension_numbers<[1], [0], [0], [1], [0, 0, 1, 1], [], []>} : vector<8x192xbf16>, vector<192x32xbf16>, vector<8x32xf32> -> vector<8x32xf32>
    %9 = arith.addf %3, %8 : vector<8x32xf32>
    %c0_6 = arith.constant 0 : index
    %c0_7 = arith.constant 0 : index
    %10 = vector.load %arg7[%c0_6, %c0_7] : memref<8x32xf32, #tpu.memory_space<vmem>>, vector<8x32xf32>
    tpu.vector_store %arg7[%c0_6, %c0_7], %9 {strides = array<i32>} : memref<8x32xf32, #tpu.memory_space<vmem>>, vector<8x32xf32>,
    %c0_i32_8 = arith.constant 0 : i32
    %11 = arith.cmpi eq, %arg2, %c0_i32_8 : i32
    %12 = arith.extui %11 : i1 to i32
    %c0_i32_9 = arith.constant 0 : i32
    %13 = arith.cmpi ne, %12, %c0_i32_9 : i32
    scf.if %13 {
      %c0_10 = arith.constant 0 : index
      %c0_11 = arith.constant 0 : index
      %14 = vector.load %arg7[%c0_10, %c0_11] : memref<8x32xf32, #tpu.memory_space<vmem>>, vector<8x32xf32>
      %c0_12 = arith.constant 0 : index
      %c0_13 = arith.constant 0 : index
      %15 = vector.load %arg5[%c0_12, %c0_13] : memref<1x32xf32, #tpu.memory_space<vmem>>, vector<1x32xf32>
      %16 = vector.broadcast %15 : vector<1x32xf32> to vector<8x32xf32>
      %17 = arith.addf %14, %16 : vector<8x32xf32>
      %c0_14 = arith.constant 0 : index
      %c0_15 = arith.constant 0 : index
      %18 = vector.load %arg6[%c0_14, %c0_15] : memref<8x32xf32, #tpu.memory_space<vmem>>, vector<8x32xf32>
      tpu.vector_store %arg6[%c0_14, %c0_15], %17 {strides = array<i32>} : memref<8x32xf32, #tpu.memory_space<vmem>>, vector<8x32xf32>,
    } else {
    }
    return
  }
  func.func @transform_0(%arg0: i32, %arg1: i32, %arg2: i32) -> (i32, i32) {
    %c0_i32 = arith.constant 0 : i32
    return %arg0, %arg2 : i32, i32
  }
  func.func @transform_1(%arg0: i32, %arg1: i32, %arg2: i32) -> (i32, i32) {
    %c0_i32 = arith.constant 0 : i32
    return %arg2, %arg1 : i32, i32
  }
  func.func @transform_2(%arg0: i32, %arg1: i32, %arg2: i32) -> (i32, i32) {
    %c0_i32 = arith.constant 0 : i32
    %c0_i32_0 = arith.constant 0 : i32
    return %c0_i32, %arg1 : i32, i32
  }
  func.func @transform_3(%arg0: i32, %arg1: i32, %arg2: i32) -> (i32, i32) {
    %c0_i32 = arith.constant 0 : i32
    return %arg0, %arg1 : i32, i32
  }
}

module attributes {stable_mosaic.version = 11 : i64} {
  func.func @_layernorm_kernel(%arg0: i32, %arg1: memref<16x32xf32, #tpu.memory_space<vmem>>, %arg2: memref<1x32xf32, #tpu.memory_space<vmem>>, %arg3: memref<1x32xf32, #tpu.memory_space<vmem>>, %arg4: memref<16x32xf32, #tpu.memory_space<vmem>>) attributes {dimension_semantics = [#tpu.dimension_semantics<parallel>], iteration_bounds = array<i64: 1>, scalar_prefetch = 0 : i64, scratch_operands = 0 : i64, tpu.core_type = #tpu.core_type<tc>, window_params = [{transform_indices = @transform_0, window_bounds = array<i64: 16, 32>}, {pipeline_mode = #tpu.pipeline_mode<synchronous>, transform_indices = @transform_1, window_bounds = array<i64: 1, 32>}, {pipeline_mode = #tpu.pipeline_mode<synchronous>, transform_indices = @transform_2, window_bounds = array<i64: 1, 32>}, {transform_indices = @transform_3, window_bounds = array<i64: 16, 32>}]} {
    %c0 = arith.constant 0 : index
    %c0_0 = arith.constant 0 : index
    %0 = vector.load %arg1[%c0, %c0_0] : memref<16x32xf32, #tpu.memory_space<vmem>>, vector<16x32xf32>
    %cst = arith.constant dense<0.000000e+00> : vector<16xf32>
    %1 = vector.multi_reduction <add>, %0, %cst [1] : vector<16x32xf32> to vector<16xf32>
    %2 = vector.shape_cast %1 : vector<16xf32> to vector<16x1xf32>
    %cst_1 = arith.constant 3.200000e+01 : f32
    %3 = vector.broadcast %cst_1 : f32 to vector<16x1xf32>
    %4 = arith.divf %2, %3 : vector<16x1xf32>
    %5 = vector.broadcast %4 : vector<16x1xf32> to vector<16x32xf32>
    %6 = arith.subf %0, %5 : vector<16x32xf32>
    %7 = arith.mulf %6, %6 : vector<16x32xf32>
    %cst_2 = arith.constant dense<0.000000e+00> : vector<16xf32>
    %8 = vector.multi_reduction <add>, %7, %cst_2 [1] : vector<16x32xf32> to vector<16xf32>
    %9 = vector.shape_cast %8 : vector<16xf32> to vector<16x1xf32>
    %cst_3 = arith.constant 3.200000e+01 : f32
    %10 = vector.broadcast %cst_3 : f32 to vector<16x1xf32>
    %11 = arith.divf %9, %10 : vector<16x1xf32>
    %12 = vector.broadcast %4 : vector<16x1xf32> to vector<16x32xf32>
    %13 = arith.subf %0, %12 : vector<16x32xf32>
    %cst_4 = arith.constant 9.99999974E-6 : f32
    %14 = vector.broadcast %cst_4 : f32 to vector<16x1xf32>
    %15 = arith.addf %11, %14 : vector<16x1xf32>
    %16 = math.rsqrt %15 : vector<16x1xf32>
    %17 = vector.broadcast %16 : vector<16x1xf32> to vector<16x32xf32>
    %18 = arith.mulf %13, %17 : vector<16x32xf32>
    %c0_5 = arith.constant 0 : index
    %c0_6 = arith.constant 0 : index
    %19 = vector.load %arg2[%c0_5, %c0_6] : memref<1x32xf32, #tpu.memory_space<vmem>>, vector<1x32xf32>
    %20 = vector.broadcast %19 : vector<1x32xf32> to vector<16x32xf32>
    %21 = arith.mulf %18, %20 : vector<16x32xf32>
    %c0_7 = arith.constant 0 : index
    %c0_8 = arith.constant 0 : index
    %22 = vector.load %arg3[%c0_7, %c0_8] : memref<1x32xf32, #tpu.memory_space<vmem>>, vector<1x32xf32>
    %23 = vector.broadcast %22 : vector<1x32xf32> to vector<16x32xf32>
    %24 = arith.addf %21, %23 : vector<16x32xf32>
    %c0_9 = arith.constant 0 : index
    %c0_10 = arith.constant 0 : index
    %25 = vector.load %arg4[%c0_9, %c0_10] : memref<16x32xf32, #tpu.memory_space<vmem>>, vector<16x32xf32>
    tpu.vector_store %arg4[%c0_9, %c0_10], %24 {strides = array<i32>} : memref<16x32xf32, #tpu.memory_space<vmem>>, vector<16x32xf32>,
    return
  }
  func.func @transform_0(%arg0: i32) -> (i32, i32) {
    %c0_i32 = arith.constant 0 : i32
    %c0_i32_0 = arith.constant 0 : i32
    return %arg0, %c0_i32 : i32, i32
  }
  func.func @transform_1(%arg0: i32) -> (i32, i32) {
    %c0_i32 = arith.constant 0 : i32
    %c0_i32_0 = arith.constant 0 : i32
    %c0_i32_1 = arith.constant 0 : i32
    return %c0_i32, %c0_i32_0 : i32, i32
  }
  func.func @transform_2(%arg0: i32) -> (i32, i32) {
    %c0_i32 = arith.constant 0 : i32
    %c0_i32_0 = arith.constant 0 : i32
    %c0_i32_1 = arith.constant 0 : i32
    return %c0_i32, %c0_i32_0 : i32, i32
  }
  func.func @transform_3(%arg0: i32) -> (i32, i32) {
    %c0_i32 = arith.constant 0 : i32
    %c0_i32_0 = arith.constant 0 : i32
    return %arg0, %c0_i32 : i32, i32
  }
}

module attributes {stable_mosaic.version = 11 : i64} {
  func.func @_matmul_kernel(%arg0: i32, %arg1: i32, %arg2: i32, %arg3: memref<16x32xf32, #tpu.memory_space<vmem>>, %arg4: memref<32x96xf32, #tpu.memory_space<vmem>>, %arg5: memref<1x96xf32, #tpu.memory_space<vmem>>, %arg6: memref<16x96xf32, #tpu.memory_space<vmem>>, %arg7: memref<16x96xf32, #tpu.memory_space<vmem>>) attributes {dimension_semantics = [#tpu.dimension_semantics<parallel>, #tpu.dimension_semantics<parallel>, #tpu.dimension_semantics<arbitrary>], iteration_bounds = array<i64: 1, 1, 1>, scalar_prefetch = 0 : i64, scratch_operands = 1 : i64, tpu.core_type = #tpu.core_type<tc>, window_params = [{transform_indices = @transform_0, window_bounds = array<i64: 16, 32>}, {transform_indices = @transform_1, window_bounds = array<i64: 32, 96>}, {transform_indices = @transform_2, window_bounds = array<i64: 1, 96>}, {transform_indices = @transform_3, window_bounds = array<i64: 16, 96>}]} {
    %c0_i32 = arith.constant 0 : i32
    %0 = arith.cmpi eq, %arg2, %c0_i32 : i32
    %1 = arith.extui %0 : i1 to i32
    %c0_i32_0 = arith.constant 0 : i32
    %2 = arith.cmpi ne, %1, %c0_i32_0 : i32
    scf.if %2 {
      %cst_10 = arith.constant 0.000000e+00 : f32
      %14 = vector.broadcast %cst_10 : f32 to vector<16x96xf32>
      %c0_11 = arith.constant 0 : index
      %c0_12 = arith.constant 0 : index
      %15 = vector.load %arg7[%c0_11, %c0_12] : memref<16x96xf32, #tpu.memory_space<vmem>>, vector<16x96xf32>
      tpu.vector_store %arg7[%c0_11, %c0_12], %14 {strides = array<i32>} : memref<16x96xf32, #tpu.memory_space<vmem>>, vector<16x96xf32>,
    } else {
    }
    %c0 = arith.constant 0 : index
    %c0_1 = arith.constant 0 : index
    %3 = vector.load %arg7[%c0, %c0_1] : memref<16x96xf32, #tpu.memory_space<vmem>>, vector<16x96xf32>
    %c0_2 = arith.constant 0 : index
    %c0_3 = arith.constant 0 : index
    %4 = vector.load %arg3[%c0_2, %c0_3] : memref<16x32xf32, #tpu.memory_space<vmem>>, vector<16x32xf32>
    %5 = arith.truncf %4 : vector<16x32xf32> to vector<16x32xbf16>
    %c0_4 = arith.constant 0 : index
    %c0_5 = arith.constant 0 : index
    %6 = vector.load %arg4[%c0_4, %c0_5] : memref<32x96xf32, #tpu.memory_space<vmem>>, vector<32x96xf32>
    %7 = arith.truncf %6 : vector<32x96xf32> to vector<32x96xbf16>
    %cst = arith.constant dense<0.000000e+00> : vector<16x96xf32>
    %8 = tpu.matmul %5, %7, %cst {dimension_numbers = #tpu.dot_dimension_numbers<[1], [0], [0], [1], [0, 0, 1, 1], [], []>} : vector<16x32xbf16>, vector<32x96xbf16>, vector<16x96xf32> -> vector<16x96xf32>
    %9 = arith.addf %3, %8 : vector<16x96xf32>
    %c0_6 = arith.constant 0 : index
    %c0_7 = arith.constant 0 : index
    %10 = vector.load %arg7[%c0_6, %c0_7] : memref<16x96xf32, #tpu.memory_space<vmem>>, vector<16x96xf32>
    tpu.vector_store %arg7[%c0_6, %c0_7], %9 {strides = array<i32>} : memref<16x96xf32, #tpu.memory_space<vmem>>, vector<16x96xf32>,
    %c0_i32_8 = arith.constant 0 : i32
    %11 = arith.cmpi eq, %arg2, %c0_i32_8 : i32
    %12 = arith.extui %11 : i1 to i32
    %c0_i32_9 = arith.constant 0 : i32
    %13 = arith.cmpi ne, %12, %c0_i32_9 : i32
    scf.if %13 {
      %c0_10 = arith.constant 0 : index
      %c0_11 = arith.constant 0 : index
      %14 = vector.load %arg7[%c0_10, %c0_11] : memref<16x96xf32, #tpu.memory_space<vmem>>, vector<16x96xf32>
      %c0_12 = arith.constant 0 : index
      %c0_13 = arith.constant 0 : index
      %15 = vector.load %arg5[%c0_12, %c0_13] : memref<1x96xf32, #tpu.memory_space<vmem>>, vector<1x96xf32>
      %16 = vector.broadcast %15 : vector<1x96xf32> to vector<16x96xf32>
      %17 = arith.addf %14, %16 : vector<16x96xf32>
      %c0_14 = arith.constant 0 : index
      %c0_15 = arith.constant 0 : index
      %18 = vector.load %arg6[%c0_14, %c0_15] : memref<16x96xf32, #tpu.memory_space<vmem>>, vector<16x96xf32>
      tpu.vector_store %arg6[%c0_14, %c0_15], %17 {strides = array<i32>} : memref<16x96xf32, #tpu.memory_space<vmem>>, vector<16x96xf32>,
    } else {
    }
    return
  }
  func.func @transform_0(%arg0: i32, %arg1: i32, %arg2: i32) -> (i32, i32) {
    %c0_i32 = arith.constant 0 : i32
    return %arg0, %arg2 : i32, i32
  }
  func.func @transform_1(%arg0: i32, %arg1: i32, %arg2: i32) -> (i32, i32) {
    %c0_i32 = arith.constant 0 : i32
    return %arg2, %arg1 : i32, i32
  }
  func.func @transform_2(%arg0: i32, %arg1: i32, %arg2: i32) -> (i32, i32) {
    %c0_i32 = arith.constant 0 : i32
    %c0_i32_0 = arith.constant 0 : i32
    return %c0_i32, %arg1 : i32, i32
  }
  func.func @transform_3(%arg0: i32, %arg1: i32, %arg2: i32) -> (i32, i32) {
    %c0_i32 = arith.constant 0 : i32
    return %arg0, %arg1 : i32, i32
  }
}

module attributes {stable_mosaic.version = 11 : i64} {
  func.func @_attention_kernel(%arg0: i32, %arg1: memref<1x8x96xf32, #tpu.memory_space<vmem>>, %arg2: memref<1x8x32xf32, #tpu.memory_space<vmem>>) attributes {dimension_semantics = [#tpu.dimension_semantics<parallel>], iteration_bounds = array<i64: 2>, scalar_prefetch = 0 : i64, scratch_operands = 0 : i64, tpu.core_type = #tpu.core_type<tc>, window_params = [{transform_indices = @transform_0, window_bounds = array<i64: 1, 8, 96>}, {transform_indices = @transform_1, window_bounds = array<i64: 1, 8, 32>}]} {
    %0 = tpu.iota {dimensions = array<i32: 1>} : vector<8x8xi32>
    %c5_i32 = arith.constant 5 : i32
    %1 = vector.broadcast %c5_i32 : i32 to vector<8x8xi32>
    %2 = arith.cmpi sge, %0, %1 : vector<8x8xi32>
    %c0 = arith.constant 0 : index
    %c0_0 = arith.constant 0 : index
    %c0_1 = arith.constant 0 : index
    %3 = vector.load %arg1[%c0, %c0_0, %c0_1] : memref<1x8x96xf32, #tpu.memory_space<vmem>>, vector<1x8x8xf32>
    %4 = vector.shape_cast %3 : vector<1x8x8xf32> to vector<8x8xf32>
    %5 = arith.truncf %4 : vector<8x8xf32> to vector<8x8xbf16>
    %c0_2 = arith.constant 0 : index
    %c0_3 = arith.constant 0 : index
    %c32 = arith.constant 32 : index
    %6 = vector.load %arg1[%c0_2, %c0_3, %c32] : memref<1x8x96xf32, #tpu.memory_space<vmem>>, vector<1x8x8xf32>
    %7 = vector.shape_cast %6 : vector<1x8x8xf32> to vector<8x8xf32>
    %8 = arith.truncf %7 : vector<8x8xf32> to vector<8x8xbf16>
    %c0_4 = arith.constant 0 : index
    %c0_5 = arith.constant 0 : index
    %c64 = arith.constant 64 : index
    %9 = vector.load %arg1[%c0_4, %c0_5, %c64] : memref<1x8x96xf32, #tpu.memory_space<vmem>>, vector<1x8x8xf32>
    %10 = vector.shape_cast %9 : vector<1x8x8xf32> to vector<8x8xf32>
    %11 = arith.truncf %10 : vector<8x8xf32> to vector<8x8xbf16>
    %12 = tpu.transpose %8, [1, 0] : vector<8x8xbf16> -> vector<8x8xbf16>
    %cst = arith.constant dense<0.000000e+00> : vector<8x8xf32>
    %13 = tpu.matmul %5, %12, %cst {dimension_numbers = #tpu.dot_dimension_numbers<[1], [0], [0], [1], [0, 0, 1, 1], [], []>} : vector<8x8xbf16>, vector<8x8xbf16>, vector<8x8xf32> -> vector<8x8xf32>
    %cst_6 = arith.constant 0.353553385 : f32
    %14 = vector.broadcast %cst_6 : f32 to vector<8x8xf32>
    %15 = arith.mulf %13, %14 : vector<8x8xf32>
    %cst_7 = arith.constant -1.000000e+30 : f32
    %16 = vector.broadcast %cst_7 : f32 to vector<8x8xf32>
    %17 = arith.select %2, %16, %15 : vector<8x8xi1>, vector<8x8xf32>
    %cst_8 = arith.constant dense<0xFF800000> : vector<8xf32>
    %18 = vector.multi_reduction <maximumf>, %17, %cst_8 [1] : vector<8x8xf32> to vector<8xf32>
    %19 = vector.shape_cast %18 : vector<8xf32> to vector<8x1xf32>
    %20 = vector.broadcast %19 : vector<8x1xf32> to vector<8x8xf32>
    %21 = arith.subf %17, %20 : vector<8x8xf32>
    %22 = math.exp %21 : vector<8x8xf32>
    %cst_9 = arith.constant dense<0.000000e+00> : vector<8xf32>
    %23 = vector.multi_reduction <add>, %22, %cst_9 [1] : vector<8x8xf32> to vector<8xf32>
    %24 = vector.shape_cast %23 : vector<8xf32> to vector<8x1xf32>
    %25 = tpu.reciprocal %24 {approx = true} : vector<8x1xf32> -> vector<8x1xf32>
    %26 = vector.broadcast %25 : vector<8x1xf32> to vector<8x8xf32>
    %27 = arith.mulf %22, %26 : vector<8x8xf32>
    %28 = arith.truncf %27 : vector<8x8xf32> to vector<8x8xbf16>
    %cst_10 = arith.constant dense<0.000000e+00> : vector<8x8xf32>
    %29 = tpu.matmul %28, %11, %cst_10 {dimension_numbers = #tpu.dot_dimension_numbers<[1], [0], [0], [1], [0, 0, 1, 1], [], []>} : vector<8x8xbf16>, vector<8x8xbf16>, vector<8x8xf32> -> vector<8x8xf32>
    %c0_11 = arith.constant 0 : index
    %c0_12 = arith.constant 0 : index
    %c8 = arith.constant 8 : index
    %30 = vector.load %arg1[%c0_11, %c0_12, %c8] : memref<1x8x96xf32, #tpu.memory_space<vmem>>, vector<1x8x8xf32>
    %31 = vector.shape_cast %30 : vector<1x8x8xf32> to vector<8x8xf32>
    %32 = arith.truncf %31 : vector<8x8xf32> to vector<8x8xbf16>
    %c0_13 = arith.constant 0 : index
    %c0_14 = arith.constant 0 : index
    %c40 = arith.constant 40 : index
    %33 = vector.load %arg1[%c0_13, %c0_14, %c40] : memref<1x8x96xf32, #tpu.memory_space<vmem>>, vector<1x8x8xf32>
    %34 = vector.shape_cast %33 : vector<1x8x8xf32> to vector<8x8xf32>
    %35 = arith.truncf %34 : vector<8x8xf32> to vector<8x8xbf16>
    %c0_15 = arith.constant 0 : index
    %c0_16 = arith.constant 0 : index
    %c72 = arith.constant 72 : index
    %36 = vector.load %arg1[%c0_15, %c0_16, %c72] : memref<1x8x96xf32, #tpu.memory_space<vmem>>, vector<1x8x8xf32>
    %37 = vector.shape_cast %36 : vector<1x8x8xf32> to vector<8x8xf32>
    %38 = arith.truncf %37 : vector<8x8xf32> to vector<8x8xbf16>
    %39 = tpu.transpose %35, [1, 0] : vector<8x8xbf16> -> vector<8x8xbf16>
    %cst_17 = arith.constant dense<0.000000e+00> : vector<8x8xf32>
    %40 = tpu.matmul %32, %39, %cst_17 {dimension_numbers = #tpu.dot_dimension_numbers<[1], [0], [0], [1], [0, 0, 1, 1], [], []>} : vector<8x8xbf16>, vector<8x8xbf16>, vector<8x8xf32> -> vector<8x8xf32>
    %cst_18 = arith.constant 0.353553385 : f32
    %41 = vector.broadcast %cst_18 : f32 to vector<8x8xf32>
    %42 = arith.mulf %40, %41 : vector<8x8xf32>
    %cst_19 = arith.constant -1.000000e+30 : f32
    %43 = vector.broadcast %cst_19 : f32 to vector<8x8xf32>
    %44 = arith.select %2, %43, %42 : vector<8x8xi1>, vector<8x8xf32>
    %cst_20 = arith.constant dense<0xFF800000> : vector<8xf32>
    %45 = vector.multi_reduction <maximumf>, %44, %cst_20 [1] : vector<8x8xf32> to vector<8xf32>
    %46 = vector.shape_cast %45 : vector<8xf32> to vector<8x1xf32>
    %47 = vector.broadcast %46 : vector<8x1xf32> to vector<8x8xf32>
    %48 = arith.subf %44, %47 : vector<8x8xf32>
    %49 = math.exp %48 : vector<8x8xf32>
    %cst_21 = arith.constant dense<0.000000e+00> : vector<8xf32>
    %50 = vector.multi_reduction <add>, %49, %cst_21 [1] : vector<8x8xf32> to vector<8xf32>
    %51 = vector.shape_cast %50 : vector<8xf32> to vector<8x1xf32>
    %52 = tpu.reciprocal %51 {approx = true} : vector<8x1xf32> -> vector<8x1xf32>
    %53 = vector.broadcast %52 : vector<8x1xf32> to vector<8x8xf32>
    %54 = arith.mulf %49, %53 : vector<8x8xf32>
    %55 = arith.truncf %54 : vector<8x8xf32> to vector<8x8xbf16>
    %cst_22 = arith.constant dense<0.000000e+00> : vector<8x8xf32>
    %56 = tpu.matmul %55, %38, %cst_22 {dimension_numbers = #tpu.dot_dimension_numbers<[1], [0], [0], [1], [0, 0, 1, 1], [], []>} : vector<8x8xbf16>, vector<8x8xbf16>, vector<8x8xf32> -> vector<8x8xf32>
    %c0_23 = arith.constant 0 : index
    %c0_24 = arith.constant 0 : index
    %c16 = arith.constant 16 : index
    %57 = vector.load %arg1[%c0_23, %c0_24, %c16] : memref<1x8x96xf32, #tpu.memory_space<vmem>>, vector<1x8x8xf32>
    %58 = vector.shape_cast %57 : vector<1x8x8xf32> to vector<8x8xf32>
    %59 = arith.truncf %58 : vector<8x8xf32> to vector<8x8xbf16>
    %c0_25 = arith.constant 0 : index
    %c0_26 = arith.constant 0 : index
    %c48 = arith.constant 48 : index
    %60 = vector.load %arg1[%c0_25, %c0_26, %c48] : memref<1x8x96xf32, #tpu.memory_space<vmem>>, vector<1x8x8xf32>
    %61 = vector.shape_cast %60 : vector<1x8x8xf32> to vector<8x8xf32>
    %62 = arith.truncf %61 : vector<8x8xf32> to vector<8x8xbf16>
    %c0_27 = arith.constant 0 : index
    %c0_28 = arith.constant 0 : index
    %c80 = arith.constant 80 : index
    %63 = vector.load %arg1[%c0_27, %c0_28, %c80] : memref<1x8x96xf32, #tpu.memory_space<vmem>>, vector<1x8x8xf32>
    %64 = vector.shape_cast %63 : vector<1x8x8xf32> to vector<8x8xf32>
    %65 = arith.truncf %64 : vector<8x8xf32> to vector<8x8xbf16>
    %66 = tpu.transpose %62, [1, 0] : vector<8x8xbf16> -> vector<8x8xbf16>
    %cst_29 = arith.constant dense<0.000000e+00> : vector<8x8xf32>
    %67 = tpu.matmul %59, %66, %cst_29 {dimension_numbers = #tpu.dot_dimension_numbers<[1], [0], [0], [1], [0, 0, 1, 1], [], []>} : vector<8x8xbf16>, vector<8x8xbf16>, vector<8x8xf32> -> vector<8x8xf32>
    %cst_30 = arith.constant 0.353553385 : f32
    %68 = vector.broadcast %cst_30 : f32 to vector<8x8xf32>
    %69 = arith.mulf %67, %68 : vector<8x8xf32>
    %cst_31 = arith.constant -1.000000e+30 : f32
    %70 = vector.broadcast %cst_31 : f32 to vector<8x8xf32>
    %71 = arith.select %2, %70, %69 : vector<8x8xi1>, vector<8x8xf32>
    %cst_32 = arith.constant dense<0xFF800000> : vector<8xf32>
    %72 = vector.multi_reduction <maximumf>, %71, %cst_32 [1] : vector<8x8xf32> to vector<8xf32>
    %73 = vector.shape_cast %72 : vector<8xf32> to vector<8x1xf32>
    %74 = vector.broadcast %73 : vector<8x1xf32> to vector<8x8xf32>
    %75 = arith.subf %71, %74 : vector<8x8xf32>
    %76 = math.exp %75 : vector<8x8xf32>
    %cst_33 = arith.constant dense<0.000000e+00> : vector<8xf32>
    %77 = vector.multi_reduction <add>, %76, %cst_33 [1] : vector<8x8xf32> to vector<8xf32>
    %78 = vector.shape_cast %77 : vector<8xf32> to vector<8x1xf32>
    %79 = tpu.reciprocal %78 {approx = true} : vector<8x1xf32> -> vector<8x1xf32>
    %80 = vector.broadcast %79 : vector<8x1xf32> to vector<8x8xf32>
    %81 = arith.mulf %76, %80 : vector<8x8xf32>
    %82 = arith.truncf %81 : vector<8x8xf32> to vector<8x8xbf16>
    %cst_34 = arith.constant dense<0.000000e+00> : vector<8x8xf32>
    %83 = tpu.matmul %82, %65, %cst_34 {dimension_numbers = #tpu.dot_dimension_numbers<[1], [0], [0], [1], [0, 0, 1, 1], [], []>} : vector<8x8xbf16>, vector<8x8xbf16>, vector<8x8xf32> -> vector<8x8xf32>
    %c0_35 = arith.constant 0 : index
    %c0_36 = arith.constant 0 : index
    %c24 = arith.constant 24 : index
    %84 = vector.load %arg1[%c0_35, %c0_36, %c24] : memref<1x8x96xf32, #tpu.memory_space<vmem>>, vector<1x8x8xf32>
    %85 = vector.shape_cast %84 : vector<1x8x8xf32> to vector<8x8xf32>
    %86 = arith.truncf %85 : vector<8x8xf32> to vector<8x8xbf16>
    %c0_37 = arith.constant 0 : index
    %c0_38 = arith.constant 0 : index
    %c56 = arith.constant 56 : index
    %87 = vector.load %arg1[%c0_37, %c0_38, %c56] : memref<1x8x96xf32, #tpu.memory_space<vmem>>, vector<1x8x8xf32>
    %88 = vector.shape_cast %87 : vector<1x8x8xf32> to vector<8x8xf32>
    %89 = arith.truncf %88 : vector<8x8xf32> to vector<8x8xbf16>
    %c0_39 = arith.constant 0 : index
    %c0_40 = arith.constant 0 : index
    %c88 = arith.constant 88 : index
    %90 = vector.load %arg1[%c0_39, %c0_40, %c88] : memref<1x8x96xf32, #tpu.memory_space<vmem>>, vector<1x8x8xf32>
    %91 = vector.shape_cast %90 : vector<1x8x8xf32> to vector<8x8xf32>
    %92 = arith.truncf %91 : vector<8x8xf32> to vector<8x8xbf16>
    %93 = tpu.transpose %89, [1, 0] : vector<8x8xbf16> -> vector<8x8xbf16>
    %cst_41 = arith.constant dense<0.000000e+00> : vector<8x8xf32>
    %94 = tpu.matmul %86, %93, %cst_41 {dimension_numbers = #tpu.dot_dimension_numbers<[1], [0], [0], [1], [0, 0, 1, 1], [], []>} : vector<8x8xbf16>, vector<8x8xbf16>, vector<8x8xf32> -> vector<8x8xf32>
    %cst_42 = arith.constant 0.353553385 : f32
    %95 = vector.broadcast %cst_42 : f32 to vector<8x8xf32>
    %96 = arith.mulf %94, %95 : vector<8x8xf32>
    %cst_43 = arith.constant -1.000000e+30 : f32
    %97 = vector.broadcast %cst_43 : f32 to vector<8x8xf32>
    %98 = arith.select %2, %97, %96 : vector<8x8xi1>, vector<8x8xf32>
    %cst_44 = arith.constant dense<0xFF800000> : vector<8xf32>
    %99 = vector.multi_reduction <maximumf>, %98, %cst_44 [1] : vector<8x8xf32> to vector<8xf32>
    %100 = vector.shape_cast %99 : vector<8xf32> to vector<8x1xf32>
    %101 = vector.broadcast %100 : vector<8x1xf32> to vector<8x8xf32>
    %102 = arith.subf %98, %101 : vector<8x8xf32>
    %103 = math.exp %102 : vector<8x8xf32>
    %cst_45 = arith.constant dense<0.000000e+00> : vector<8xf32>
    %104 = vector.multi_reduction <add>, %103, %cst_45 [1] : vector<8x8xf32> to vector<8xf32>
    %105 = vector.shape_cast %104 : vector<8xf32> to vector<8x1xf32>
    %106 = tpu.reciprocal %105 {approx = true} : vector<8x1xf32> -> vector<8x1xf32>
    %107 = vector.broadcast %106 : vector<8x1xf32> to vector<8x8xf32>
    %108 = arith.mulf %103, %107 : vector<8x8xf32>
    %109 = arith.truncf %108 : vector<8x8xf32> to vector<8x8xbf16>
    %cst_46 = arith.constant dense<0.000000e+00> : vector<8x8xf32>
    %110 = tpu.matmul %109, %92, %cst_46 {dimension_numbers = #tpu.dot_dimension_numbers<[1], [0], [0], [1], [0, 0, 1, 1], [], []>} : vector<8x8xbf16>, vector<8x8xbf16>, vector<8x8xf32> -> vector<8x8xf32>
    %111 = tpu.concatenate %29, %56, %83, %110 in 1 : vector<8x8xf32>, vector<8x8xf32>, vector<8x8xf32>, vector<8x8xf32> -> vector<8x32xf32>
    %c0_47 = arith.constant 0 : index
    %c0_48 = arith.constant 0 : index
    %c0_49 = arith.constant 0 : index
    %112 = vector.load %arg2[%c0_47, %c0_48, %c0_49] : memref<1x8x32xf32, #tpu.memory_space<vmem>>, vector<1x8x32xf32>
    %113 = vector.shape_cast %112 : vector<1x8x32xf32> to vector<8x32xf32>
    %114 = vector.shape_cast %111 : vector<8x32xf32> to vector<1x8x32xf32>
    tpu.vector_store %arg2[%c0_47, %c0_48, %c0_49], %114 {strides = array<i32>} : memref<1x8x32xf32, #tpu.memory_space<vmem>>, vector<1x8x32xf32>,
    return
  }
  func.func @transform_0(%arg0: i32) -> (i32, i32, i32) {
    %c0_i32 = arith.constant 0 : i32
    %c0_i32_0 = arith.constant 0 : i32
    %c0_i32_1 = arith.constant 0 : i32
    return %arg0, %c0_i32, %c0_i32_0 : i32, i32, i32
  }
  func.func @transform_1(%arg0: i32) -> (i32, i32, i32) {
    %c0_i32 = arith.constant 0 : i32
    %c0_i32_0 = arith.constant 0 : i32
    %c0_i32_1 = arith.constant 0 : i32
    return %arg0, %c0_i32, %c0_i32_0 : i32, i32, i32
  }
}

module attributes {stable_mosaic.version = 11 : i64} {
  func.func @_matmul_kernel(%arg0: i32, %arg1: i32, %arg2: i32, %arg3: memref<16x32xf32, #tpu.memory_space<vmem>>, %arg4: memref<32x32xf32, #tpu.memory_space<vmem>>, %arg5: memref<1x32xf32, #tpu.memory_space<vmem>>, %arg6: memref<16x32xf32, #tpu.memory_space<vmem>>, %arg7: memref<16x32xf32, #tpu.memory_space<vmem>>, %arg8: memref<16x32xf32, #tpu.memory_space<vmem>>) attributes {dimension_semantics = [#tpu.dimension_semantics<parallel>, #tpu.dimension_semantics<parallel>, #tpu.dimension_semantics<arbitrary>], iteration_bounds = array<i64: 1, 1, 1>, scalar_prefetch = 0 : i64, scratch_operands = 1 : i64, tpu.core_type = #tpu.core_type<tc>, window_params = [{transform_indices = @transform_0, window_bounds = array<i64: 16, 32>}, {transform_indices = @transform_1, window_bounds = array<i64: 32, 32>}, {transform_indices = @transform_2, window_bounds = array<i64: 1, 32>}, {transform_indices = @transform_3, window_bounds = array<i64: 16, 32>}, {transform_indices = @transform_4, window_bounds = array<i64: 16, 32>}]} {
    %c0_i32 = arith.constant 0 : i32
    %0 = arith.cmpi eq, %arg2, %c0_i32 : i32
    %1 = arith.extui %0 : i1 to i32
    %c0_i32_0 = arith.constant 0 : i32
    %2 = arith.cmpi ne, %1, %c0_i32_0 : i32
    scf.if %2 {
      %cst_10 = arith.constant 0.000000e+00 : f32
      %14 = vector.broadcast %cst_10 : f32 to vector<16x32xf32>
      %c0_11 = arith.constant 0 : index
      %c0_12 = arith.constant 0 : index
      %15 = vector.load %arg8[%c0_11, %c0_12] : memref<16x32xf32, #tpu.memory_space<vmem>>, vector<16x32xf32>
      tpu.vector_store %arg8[%c0_11, %c0_12], %14 {strides = array<i32>} : memref<16x32xf32, #tpu.memory_space<vmem>>, vector<16x32xf32>,
    } else {
    }
    %c0 = arith.constant 0 : index
    %c0_1 = arith.constant 0 : index
    %3 = vector.load %arg8[%c0, %c0_1] : memref<16x32xf32, #tpu.memory_space<vmem>>, vector<16x32xf32>
    %c0_2 = arith.constant 0 : index
    %c0_3 = arith.constant 0 : index
    %4 = vector.load %arg3[%c0_2, %c0_3] : memref<16x32xf32, #tpu.memory_space<vmem>>, vector<16x32xf32>
    %5 = arith.truncf %4 : vector<16x32xf32> to vector<16x32xbf16>
    %c0_4 = arith.constant 0 : index
    %c0_5 = arith.constant 0 : index
    %6 = vector.load %arg4[%c0_4, %c0_5] : memref<32x32xf32, #tpu.memory_space<vmem>>, vector<32x32xf32>
    %7 = arith.truncf %6 : vector<32x32xf32> to vector<32x32xbf16>
    %cst = arith.constant dense<0.000000e+00> : vector<16x32xf32>
    %8 = tpu.matmul %5, %7, %cst {dimension_numbers = #tpu.dot_dimension_numbers<[1], [0], [0], [1], [0, 0, 1, 1], [], []>} : vector<16x32xbf16>, vector<32x32xbf16>, vector<16x32xf32> -> vector<16x32xf32>
    %9 = arith.addf %3, %8 : vector<16x32xf32>
    %c0_6 = arith.constant 0 : index
    %c0_7 = arith.constant 0 : index
    %10 = vector.load %arg8[%c0_6, %c0_7] : memref<16x32xf32, #tpu.memory_space<vmem>>, vector<16x32xf32>
    tpu.vector_store %arg8[%c0_6, %c0_7], %9 {strides = array<i32>} : memref<16x32xf32, #tpu.memory_space<vmem>>, vector<16x32xf32>,
    %c0_i32_8 = arith.constant 0 : i32
    %11 = arith.cmpi eq, %arg2, %c0_i32_8 : i32
    %12 = arith.extui %11 : i1 to i32
    %c0_i32_9 = arith.constant 0 : i32
    %13 = arith.cmpi ne, %12, %c0_i32_9 : i32
    scf.if %13 {
      %c0_10 = arith.constant 0 : index
      %c0_11 = arith.constant 0 : index
      %14 = vector.load %arg8[%c0_10, %c0_11] : memref<16x32xf32, #tpu.memory_space<vmem>>, vector<16x32xf32>
      %c0_12 = arith.constant 0 : index
      %c0_13 = arith.constant 0 : index
      %15 = vector.load %arg5[%c0_12, %c0_13] : memref<1x32xf32, #tpu.memory_space<vmem>>, vector<1x32xf32>
      %16 = vector.broadcast %15 : vector<1x32xf32> to vector<16x32xf32>
      %17 = arith.addf %14, %16 : vector<16x32xf32>
      %c0_14 = arith.constant 0 : index
      %c0_15 = arith.constant 0 : index
      %18 = vector.load %arg6[%c0_14, %c0_15] : memref<16x32xf32, #tpu.memory_space<vmem>>, vector<16x32xf32>
      %19 = arith.addf %17, %18 : vector<16x32xf32>
      %c0_16 = arith.constant 0 : index
      %c0_17 = arith.constant 0 : index
      %20 = vector.load %arg7[%c0_16, %c0_17] : memref<16x32xf32, #tpu.memory_space<vmem>>, vector<16x32xf32>
      tpu.vector_store %arg7[%c0_16, %c0_17], %19 {strides = array<i32>} : memref<16x32xf32, #tpu.memory_space<vmem>>, vector<16x32xf32>,
    } else {
    }
    return
  }
  func.func @transform_0(%arg0: i32, %arg1: i32, %arg2: i32) -> (i32, i32) {
    %c0_i32 = arith.constant 0 : i32
    return %arg0, %arg2 : i32, i32
  }
  func.func @transform_1(%arg0: i32, %arg1: i32, %arg2: i32) -> (i32, i32) {
    %c0_i32 = arith.constant 0 : i32
    return %arg2, %arg1 : i32, i32
  }
  func.func @transform_2(%arg0: i32, %arg1: i32, %arg2: i32) -> (i32, i32) {
    %c0_i32 = arith.constant 0 : i32
    %c0_i32_0 = arith.constant 0 : i32
    return %c0_i32, %arg1 : i32, i32
  }
  func.func @transform_3(%arg0: i32, %arg1: i32, %arg2: i32) -> (i32, i32) {
    %c0_i32 = arith.constant 0 : i32
    return %arg0, %arg1 : i32, i32
  }
  func.func @transform_4(%arg0: i32, %arg1: i32, %arg2: i32) -> (i32, i32) {
    %c0_i32 = arith.constant 0 : i32
    return %arg0, %arg1 : i32, i32
  }
}

module attributes {stable_mosaic.version = 11 : i64} {
  func.func @_matmul_kernel(%arg0: i32, %arg1: i32, %arg2: i32, %arg3: memref<16x32xf32, #tpu.memory_space<vmem>>, %arg4: memref<32x128xf32, #tpu.memory_space<vmem>>, %arg5: memref<1x128xf32, #tpu.memory_space<vmem>>, %arg6: memref<16x128xf32, #tpu.memory_space<vmem>>, %arg7: memref<16x128xf32, #tpu.memory_space<vmem>>) attributes {dimension_semantics = [#tpu.dimension_semantics<parallel>, #tpu.dimension_semantics<parallel>, #tpu.dimension_semantics<arbitrary>], iteration_bounds = array<i64: 1, 1, 1>, scalar_prefetch = 0 : i64, scratch_operands = 1 : i64, tpu.core_type = #tpu.core_type<tc>, window_params = [{transform_indices = @transform_0, window_bounds = array<i64: 16, 32>}, {transform_indices = @transform_1, window_bounds = array<i64: 32, 128>}, {transform_indices = @transform_2, window_bounds = array<i64: 1, 128>}, {transform_indices = @transform_3, window_bounds = array<i64: 16, 128>}]} {
    %c0_i32 = arith.constant 0 : i32
    %0 = arith.cmpi eq, %arg2, %c0_i32 : i32
    %1 = arith.extui %0 : i1 to i32
    %c0_i32_0 = arith.constant 0 : i32
    %2 = arith.cmpi ne, %1, %c0_i32_0 : i32
    scf.if %2 {
      %cst_10 = arith.constant 0.000000e+00 : f32
      %14 = vector.broadcast %cst_10 : f32 to vector<16x128xf32>
      %c0_11 = arith.constant 0 : index
      %c0_12 = arith.constant 0 : index
      %15 = vector.load %arg7[%c0_11, %c0_12] : memref<16x128xf32, #tpu.memory_space<vmem>>, vector<16x128xf32>
      tpu.vector_store %arg7[%c0_11, %c0_12], %14 {strides = array<i32>} : memref<16x128xf32, #tpu.memory_space<vmem>>, vector<16x128xf32>,
    } else {
    }
    %c0 = arith.constant 0 : index
    %c0_1 = arith.constant 0 : index
    %3 = vector.load %arg7[%c0, %c0_1] : memref<16x128xf32, #tpu.memory_space<vmem>>, vector<16x128xf32>
    %c0_2 = arith.constant 0 : index
    %c0_3 = arith.constant 0 : index
    %4 = vector.load %arg3[%c0_2, %c0_3] : memref<16x32xf32, #tpu.memory_space<vmem>>, vector<16x32xf32>
    %5 = arith.truncf %4 : vector<16x32xf32> to vector<16x32xbf16>
    %c0_4 = arith.constant 0 : index
    %c0_5 = arith.constant 0 : index
    %6 = vector.load %arg4[%c0_4, %c0_5] : memref<32x128xf32, #tpu.memory_space<vmem>>, vector<32x128xf32>
    %7 = arith.truncf %6 : vector<32x128xf32> to vector<32x128xbf16>
    %cst = arith.constant dense<0.000000e+00> : vector<16x128xf32>
    %8 = tpu.matmul %5, %7, %cst {dimension_numbers = #tpu.dot_dimension_numbers<[1], [0], [0], [1], [0, 0, 1, 1], [], []>} : vector<16x32xbf16>, vector<32x128xbf16>, vector<16x128xf32> -> vector<16x128xf32>
    %9 = arith.addf %3, %8 : vector<16x128xf32>
    %c0_6 = arith.constant 0 : index
    %c0_7 = arith.constant 0 : index
    %10 = vector.load %arg7[%c0_6, %c0_7] : memref<16x128xf32, #tpu.memory_space<vmem>>, vector<16x128xf32>
    tpu.vector_store %arg7[%c0_6, %c0_7], %9 {strides = array<i32>} : memref<16x128xf32, #tpu.memory_space<vmem>>, vector<16x128xf32>,
    %c0_i32_8 = arith.constant 0 : i32
    %11 = arith.cmpi eq, %arg2, %c0_i32_8 : i32
    %12 = arith.extui %11 : i1 to i32
    %c0_i32_9 = arith.constant 0 : i32
    %13 = arith.cmpi ne, %12, %c0_i32_9 : i32
    scf.if %13 {
      %c0_10 = arith.constant 0 : index
      %c0_11 = arith.constant 0 : index
      %14 = vector.load %arg7[%c0_10, %c0_11] : memref<16x128xf32, #tpu.memory_space<vmem>>, vector<16x128xf32>
      %c0_12 = arith.constant 0 : index
      %c0_13 = arith.constant 0 : index
      %15 = vector.load %arg5[%c0_12, %c0_13] : memref<1x128xf32, #tpu.memory_space<vmem>>, vector<1x128xf32>
      %16 = vector.broadcast %15 : vector<1x128xf32> to vector<16x128xf32>
      %17 = arith.addf %14, %16 : vector<16x128xf32>
      %cst_14 = arith.constant 1.702000e+00 : f32
      %18 = vector.broadcast %cst_14 : f32 to vector<16x128xf32>
      %19 = arith.mulf %18, %17 : vector<16x128xf32>
      %20 = arith.negf %19 : vector<16x128xf32>
      %21 = math.exp %20 : vector<16x128xf32>
      %cst_15 = arith.constant 1.000000e+00 : f32
      %22 = vector.broadcast %cst_15 : f32 to vector<16x128xf32>
      %23 = arith.addf %22, %21 : vector<16x128xf32>
      %24 = arith.divf %22, %23 : vector<16x128xf32>
      %25 = arith.mulf %17, %24 : vector<16x128xf32>
      %c0_16 = arith.constant 0 : index
      %c0_17 = arith.constant 0 : index
      %26 = vector.load %arg6[%c0_16, %c0_17] : memref<16x128xf32, #tpu.memory_space<vmem>>, vector<16x128xf32>
      tpu.vector_store %arg6[%c0_16, %c0_17], %25 {strides = array<i32>} : memref<16x128xf32, #tpu.memory_space<vmem>>, vector<16x128xf32>,
    } else {
    }
    return
  }
  func.func @transform_0(%arg0: i32, %arg1: i32, %arg2: i32) -> (i32, i32) {
    %c0_i32 = arith.constant 0 : i32
    return %arg0, %arg2 : i32, i32
  }
  func.func @transform_1(%arg0: i32, %arg1: i32, %arg2: i32) -> (i32, i32) {
    %c0_i32 = arith.constant 0 : i32
    return %arg2, %arg1 : i32, i32
  }
  func.func @transform_2(%arg0: i32, %arg1: i32, %arg2: i32) -> (i32, i32) {
    %c0_i32 = arith.constant 0 : i32
    %c0_i32_0 = arith.constant 0 : i32
    return %c0_i32, %arg1 : i32, i32
  }
  func.func @transform_3(%arg0: i32, %arg1: i32, %arg2: i32) -> (i32, i32) {
    %c0_i32 = arith.constant 0 : i32
    return %arg0, %arg1 : i32, i32
  }
}

module attributes {stable_mosaic.version = 11 : i64} {
  func.func @_matmul_kernel(%arg0: i32, %arg1: i32, %arg2: i32, %arg3: memref<16x128xf32, #tpu.memory_space<vmem>>, %arg4: memref<128x32xf32, #tpu.memory_space<vmem>>, %arg5: memref<1x32xf32, #tpu.memory_space<vmem>>, %arg6: memref<16x32xf32, #tpu.memory_space<vmem>>, %arg7: memref<16x32xf32, #tpu.memory_space<vmem>>, %arg8: memref<16x32xf32, #tpu.memory_space<vmem>>) attributes {dimension_semantics = [#tpu.dimension_semantics<parallel>, #tpu.dimension_semantics<parallel>, #tpu.dimension_semantics<arbitrary>], iteration_bounds = array<i64: 1, 1, 1>, scalar_prefetch = 0 : i64, scratch_operands = 1 : i64, tpu.core_type = #tpu.core_type<tc>, window_params = [{transform_indices = @transform_0, window_bounds = array<i64: 16, 128>}, {transform_indices = @transform_1, window_bounds = array<i64: 128, 32>}, {transform_indices = @transform_2, window_bounds = array<i64: 1, 32>}, {transform_indices = @transform_3, window_bounds = array<i64: 16, 32>}, {transform_indices = @transform_4, window_bounds = array<i64: 16, 32>}]} {
    %c0_i32 = arith.constant 0 : i32
    %0 = arith.cmpi eq, %arg2, %c0_i32 : i32
    %1 = arith.extui %0 : i1 to i32
    %c0_i32_0 = arith.constant 0 : i32
    %2 = arith.cmpi ne, %1, %c0_i32_0 : i32
    scf.if %2 {
      %cst_10 = arith.constant 0.000000e+00 : f32
      %14 = vector.broadcast %cst_10 : f32 to vector<16x32xf32>
      %c0_11 = arith.constant 0 : index
      %c0_12 = arith.constant 0 : index
      %15 = vector.load %arg8[%c0_11, %c0_12] : memref<16x32xf32, #tpu.memory_space<vmem>>, vector<16x32xf32>
      tpu.vector_store %arg8[%c0_11, %c0_12], %14 {strides = array<i32>} : memref<16x32xf32, #tpu.memory_space<vmem>>, vector<16x32xf32>,
    } else {
    }
    %c0 = arith.constant 0 : index
    %c0_1 = arith.constant 0 : index
    %3 = vector.load %arg8[%c0, %c0_1] : memref<16x32xf32, #tpu.memory_space<vmem>>, vector<16x32xf32>
    %c0_2 = arith.constant 0 : index
    %c0_3 = arith.constant 0 : index
    %4 = vector.load %arg3[%c0_2, %c0_3] : memref<16x128xf32, #tpu.memory_space<vmem>>, vector<16x128xf32>
    %5 = arith.truncf %4 : vector<16x128xf32> to vector<16x128xbf16>
    %c0_4 = arith.constant 0 : index
    %c0_5 = arith.constant 0 : index
    %6 = vector.load %arg4[%c0_4, %c0_5] : memref<128x32xf32, #tpu.memory_space<vmem>>, vector<128x32xf32>
    %7 = arith.truncf %6 : vector<128x32xf32> to vector<128x32xbf16>
    %cst = arith.constant dense<0.000000e+00> : vector<16x32xf32>
    %8 = tpu.matmul %5, %7, %cst {dimension_numbers = #tpu.dot_dimension_numbers<[1], [0], [0], [1], [0, 0, 1, 1], [], []>} : vector<16x128xbf16>, vector<128x32xbf16>, vector<16x32xf32> -> vector<16x32xf32>
    %9 = arith.addf %3, %8 : vector<16x32xf32>
    %c0_6 = arith.constant 0 : index
    %c0_7 = arith.constant 0 : index
    %10 = vector.load %arg8[%c0_6, %c0_7] : memref<16x32xf32, #tpu.memory_space<vmem>>, vector<16x32xf32>
    tpu.vector_store %arg8[%c0_6, %c0_7], %9 {strides = array<i32>} : memref<16x32xf32, #tpu.memory_space<vmem>>, vector<16x32xf32>,
    %c0_i32_8 = arith.constant 0 : i32
    %11 = arith.cmpi eq, %arg2, %c0_i32_8 : i32
    %12 = arith.extui %11 : i1 to i32
    %c0_i32_9 = arith.constant 0 : i32
    %13 = arith.cmpi ne, %12, %c0_i32_9 : i32
    scf.if %13 {
      %c0_10 = arith.constant 0 : index
      %c0_11 = arith.constant 0 : index
      %14 = vector.load %arg8[%c0_10, %c0_11] : memref<16x32xf32, #tpu.memory_space<vmem>>, vector<16x32xf32>
      %c0_12 = arith.constant 0 : index
      %c0_13 = arith.constant 0 : index
      %15 = vector.load %arg5[%c0_12, %c0_13] : memref<1x32xf32, #tpu.memory_space<vmem>>, vector<1x32xf32>
      %16 = vector.broadcast %15 : vector<1x32xf32> to vector<16x32xf32>
      %17 = arith.addf %14, %16 : vector<16x32xf32>
      %c0_14 = arith.constant 0 : index
      %c0_15 = arith.constant 0 : index
      %18 = vector.load %arg6[%c0_14, %c0_15] : memref<16x32xf32, #tpu.memory_space<vmem>>, vector<16x32xf32>
      %19 = arith.addf %17, %18 : vector<16x32xf32>
      %c0_16 = arith.constant 0 : index
      %c0_17 = arith.constant 0 : index
      %20 = vector.load %arg7[%c0_16, %c0_17] : memref<16x32xf32, #tpu.memory_space<vmem>>, vector<16x32xf32>
      tpu.vector_store %arg7[%c0_16, %c0_17], %19 {strides = array<i32>} : memref<16x32xf32, #tpu.memory_space<vmem>>, vector<16x32xf32>,
    } else {
    }
    return
  }
  func.func @transform_0(%arg0: i32, %arg1: i32, %arg2: i32) -> (i32, i32) {
    %c0_i32 = arith.constant 0 : i32
    return %arg0, %arg2 : i32, i32
  }
  func.func @transform_1(%arg0: i32, %arg1: i32, %arg2: i32) -> (i32, i32) {
    %c0_i32 = arith.constant 0 : i32
    return %arg2, %arg1 : i32, i32
  }
  func.func @transform_2(%arg0: i32, %arg1: i32, %arg2: i32) -> (i32, i32) {
    %c0_i32 = arith.constant 0 : i32
    %c0_i32_0 = arith.constant 0 : i32
    return %c0_i32, %arg1 : i32, i32
  }
  func.func @transform_3(%arg0: i32, %arg1: i32, %arg2: i32) -> (i32, i32) {
    %c0_i32 = arith.constant 0 : i32
    return %arg0, %arg1 : i32, i32
  }
  func.func @transform_4(%arg0: i32, %arg1: i32, %arg2: i32) -> (i32, i32) {
    %c0_i32 = arith.constant 0 : i32
    return %arg0, %arg1 : i32, i32
  }
}

module attributes {stable_mosaic.version = 11 : i64} {
  func.func @_layernorm_kernel(%arg0: i32, %arg1: memref<2x32xf32, #tpu.memory_space<vmem>>, %arg2: memref<1x32xf32, #tpu.memory_space<vmem>>, %arg3: memref<1x32xf32, #tpu.memory_space<vmem>>, %arg4: memref<2x32xf32, #tpu.memory_space<vmem>>) attributes {dimension_semantics = [#tpu.dimension_semantics<parallel>], iteration_bounds = array<i64: 1>, scalar_prefetch = 0 : i64, scratch_operands = 0 : i64, tpu.core_type = #tpu.core_type<tc>, window_params = [{transform_indices = @transform_0, window_bounds = array<i64: 2, 32>}, {pipeline_mode = #tpu.pipeline_mode<synchronous>, transform_indices = @transform_1, window_bounds = array<i64: 1, 32>}, {pipeline_mode = #tpu.pipeline_mode<synchronous>, transform_indices = @transform_2, window_bounds = array<i64: 1, 32>}, {transform_indices = @transform_3, window_bounds = array<i64: 2, 32>}]} {
    %c0 = arith.constant 0 : index
    %c0_0 = arith.constant 0 : index
    %0 = vector.load %arg1[%c0, %c0_0] : memref<2x32xf32, #tpu.memory_space<vmem>>, vector<2x32xf32>
    %cst = arith.constant dense<0.000000e+00> : vector<2xf32>
    %1 = vector.multi_reduction <add>, %0, %cst [1] : vector<2x32xf32> to vector<2xf32>
    %2 = vector.shape_cast %1 : vector<2xf32> to vector<2x1xf32>
    %cst_1 = arith.constant 3.200000e+01 : f32
    %3 = vector.broadcast %cst_1 : f32 to vector<2x1xf32>
    %4 = arith.divf %2, %3 : vector<2x1xf32>
    %5 = vector.broadcast %4 : vector<2x1xf32> to vector<2x32xf32>
    %6 = arith.subf %0, %5 : vector<2x32xf32>
    %7 = arith.mulf %6, %6 : vector<2x32xf32>
    %cst_2 = arith.constant dense<0.000000e+00> : vector<2xf32>
    %8 = vector.multi_reduction <add>, %7, %cst_2 [1] : vector<2x32xf32> to vector<2xf32>
    %9 = vector.shape_cast %8 : vector<2xf32> to vector<2x1xf32>
    %cst_3 = arith.constant 3.200000e+01 : f32
    %10 = vector.broadcast %cst_3 : f32 to vector<2x1xf32>
    %11 = arith.divf %9, %10 : vector<2x1xf32>
    %12 = vector.broadcast %4 : vector<2x1xf32> to vector<2x32xf32>
    %13 = arith.subf %0, %12 : vector<2x32xf32>
    %cst_4 = arith.constant 9.99999974E-6 : f32
    %14 = vector.broadcast %cst_4 : f32 to vector<2x1xf32>
    %15 = arith.addf %11, %14 : vector<2x1xf32>
    %16 = math.rsqrt %15 : vector<2x1xf32>
    %17 = vector.broadcast %16 : vector<2x1xf32> to vector<2x32xf32>
    %18 = arith.mulf %13, %17 : vector<2x32xf32>
    %c0_5 = arith.constant 0 : index
    %c0_6 = arith.constant 0 : index
    %19 = vector.load %arg2[%c0_5, %c0_6] : memref<1x32xf32, #tpu.memory_space<vmem>>, vector<1x32xf32>
    %20 = vector.broadcast %19 : vector<1x32xf32> to vector<2x32xf32>
    %21 = arith.mulf %18, %20 : vector<2x32xf32>
    %c0_7 = arith.constant 0 : index
    %c0_8 = arith.constant 0 : index
    %22 = vector.load %arg3[%c0_7, %c0_8] : memref<1x32xf32, #tpu.memory_space<vmem>>, vector<1x32xf32>
    %23 = vector.broadcast %22 : vector<1x32xf32> to vector<2x32xf32>
    %24 = arith.addf %21, %23 : vector<2x32xf32>
    %c0_9 = arith.constant 0 : index
    %c0_10 = arith.constant 0 : index
    %25 = vector.load %arg4[%c0_9, %c0_10] : memref<2x32xf32, #tpu.memory_space<vmem>>, vector<2x32xf32>
    tpu.vector_store %arg4[%c0_9, %c0_10], %24 {strides = array<i32>} : memref<2x32xf32, #tpu.memory_space<vmem>>, vector<2x32xf32>,
    return
  }
  func.func @transform_0(%arg0: i32) -> (i32, i32) {
    %c0_i32 = arith.constant 0 : i32
    %c0_i32_0 = arith.constant 0 : i32
    return %arg0, %c0_i32 : i32, i32
  }
  func.func @transform_1(%arg0: i32) -> (i32, i32) {
    %c0_i32 = arith.constant 0 : i32
    %c0_i32_0 = arith.constant 0 : i32
    %c0_i32_1 = arith.constant 0 : i32
    return %c0_i32, %c0_i32_0 : i32, i32
  }
  func.func @transform_2(%arg0: i32) -> (i32, i32) {
    %c0_i32 = arith.constant 0 : i32
    %c0_i32_0 = arith.constant 0 : i32
    %c0_i32_1 = arith.constant 0 : i32
    return %c0_i32, %c0_i32_0 : i32, i32
  }
  func.func @transform_3(%arg0: i32) -> (i32, i32) {
    %c0_i32 = arith.constant 0 : i32
    %c0_i32_0 = arith.constant 0 : i32
    return %arg0, %c0_i32 : i32, i32
  }
}

module attributes {stable_mosaic.version = 11 : i64} {
  func.func @_matmul_kernel(%arg0: i32, %arg1: i32, %arg2: i32, %arg3: memref<2x32xf32, #tpu.memory_space<vmem>>, %arg4: memref<32x32xf32, #tpu.memory_space<vmem>>, %arg5: memref<1x32xf32, #tpu.memory_space<vmem>>, %arg6: memref<2x32xf32, #tpu.memory_space<vmem>>, %arg7: memref<2x32xf32, #tpu.memory_space<vmem>>) attributes {dimension_semantics = [#tpu.dimension_semantics<parallel>, #tpu.dimension_semantics<parallel>, #tpu.dimension_semantics<arbitrary>], iteration_bounds = array<i64: 1, 1, 1>, scalar_prefetch = 0 : i64, scratch_operands = 1 : i64, tpu.core_type = #tpu.core_type<tc>, window_params = [{transform_indices = @transform_0, window_bounds = array<i64: 2, 32>}, {transform_indices = @transform_1, window_bounds = array<i64: 32, 32>}, {transform_indices = @transform_2, window_bounds = array<i64: 1, 32>}, {transform_indices = @transform_3, window_bounds = array<i64: 2, 32>}]} {
    %c0_i32 = arith.constant 0 : i32
    %0 = arith.cmpi eq, %arg2, %c0_i32 : i32
    %1 = arith.extui %0 : i1 to i32
    %c0_i32_0 = arith.constant 0 : i32
    %2 = arith.cmpi ne, %1, %c0_i32_0 : i32
    scf.if %2 {
      %cst_10 = arith.constant 0.000000e+00 : f32
      %14 = vector.broadcast %cst_10 : f32 to vector<2x32xf32>
      %c0_11 = arith.constant 0 : index
      %c0_12 = arith.constant 0 : index
      %15 = vector.load %arg7[%c0_11, %c0_12] : memref<2x32xf32, #tpu.memory_space<vmem>>, vector<2x32xf32>
      tpu.vector_store %arg7[%c0_11, %c0_12], %14 {strides = array<i32>} : memref<2x32xf32, #tpu.memory_space<vmem>>, vector<2x32xf32>,
    } else {
    }
    %c0 = arith.constant 0 : index
    %c0_1 = arith.constant 0 : index
    %3 = vector.load %arg7[%c0, %c0_1] : memref<2x32xf32, #tpu.memory_space<vmem>>, vector<2x32xf32>
    %c0_2 = arith.constant 0 : index
    %c0_3 = arith.constant 0 : index
    %4 = vector.load %arg3[%c0_2, %c0_3] : memref<2x32xf32, #tpu.memory_space<vmem>>, vector<2x32xf32>
    %5 = arith.truncf %4 : vector<2x32xf32> to vector<2x32xbf16>
    %c0_4 = arith.constant 0 : index
    %c0_5 = arith.constant 0 : index
    %6 = vector.load %arg4[%c0_4, %c0_5] : memref<32x32xf32, #tpu.memory_space<vmem>>, vector<32x32xf32>
    %7 = arith.truncf %6 : vector<32x32xf32> to vector<32x32xbf16>
    %cst = arith.constant dense<0.000000e+00> : vector<2x32xf32>
    %8 = tpu.matmul %5, %7, %cst {dimension_numbers = #tpu.dot_dimension_numbers<[1], [0], [0], [1], [0, 0, 1, 1], [], []>} : vector<2x32xbf16>, vector<32x32xbf16>, vector<2x32xf32> -> vector<2x32xf32>
    %9 = arith.addf %3, %8 : vector<2x32xf32>
    %c0_6 = arith.constant 0 : index
    %c0_7 = arith.constant 0 : index
    %10 = vector.load %arg7[%c0_6, %c0_7] : memref<2x32xf32, #tpu.memory_space<vmem>>, vector<2x32xf32>
    tpu.vector_store %arg7[%c0_6, %c0_7], %9 {strides = array<i32>} : memref<2x32xf32, #tpu.memory_space<vmem>>, vector<2x32xf32>,
    %c0_i32_8 = arith.constant 0 : i32
    %11 = arith.cmpi eq, %arg2, %c0_i32_8 : i32
    %12 = arith.extui %11 : i1 to i32
    %c0_i32_9 = arith.constant 0 : i32
    %13 = arith.cmpi ne, %12, %c0_i32_9 : i32
    scf.if %13 {
      %c0_10 = arith.constant 0 : index
      %c0_11 = arith.constant 0 : index
      %14 = vector.load %arg7[%c0_10, %c0_11] : memref<2x32xf32, #tpu.memory_space<vmem>>, vector<2x32xf32>
      %c0_12 = arith.constant 0 : index
      %c0_13 = arith.constant 0 : index
      %15 = vector.load %arg5[%c0_12, %c0_13] : memref<1x32xf32, #tpu.memory_space<vmem>>, vector<1x32xf32>
      %16 = vector.broadcast %15 : vector<1x32xf32> to vector<2x32xf32>
      %17 = arith.addf %14, %16 : vector<2x32xf32>
      %c0_14 = arith.constant 0 : index
      %c0_15 = arith.constant 0 : index
      %18 = vector.load %arg6[%c0_14, %c0_15] : memref<2x32xf32, #tpu.memory_space<vmem>>, vector<2x32xf32>
      tpu.vector_store %arg6[%c0_14, %c0_15], %17 {strides = array<i32>} : memref<2x32xf32, #tpu.memory_space<vmem>>, vector<2x32xf32>,
    } else {
    }
    return
  }
  func.func @transform_0(%arg0: i32, %arg1: i32, %arg2: i32) -> (i32, i32) {
    %c0_i32 = arith.constant 0 : i32
    return %arg0, %arg2 : i32, i32
  }
  func.func @transform_1(%arg0: i32, %arg1: i32, %arg2: i32) -> (i32, i32) {
    %c0_i32 = arith.constant 0 : i32
    return %arg2, %arg1 : i32, i32
  }
  func.func @transform_2(%arg0: i32, %arg1: i32, %arg2: i32) -> (i32, i32) {
    %c0_i32 = arith.constant 0 : i32
    %c0_i32_0 = arith.constant 0 : i32
    return %c0_i32, %arg1 : i32, i32
  }
  func.func @transform_3(%arg0: i32, %arg1: i32, %arg2: i32) -> (i32, i32) {
    %c0_i32 = arith.constant 0 : i32
    return %arg0, %arg1 : i32, i32
  }
}

module attributes {stable_mosaic.version = 11 : i64} {
  func.func @_layernorm_kernel(%arg0: i32, %arg1: memref<8x32xf32, #tpu.memory_space<vmem>>, %arg2: memref<1x32xf32, #tpu.memory_space<vmem>>, %arg3: memref<1x32xf32, #tpu.memory_space<vmem>>, %arg4: memref<8x32xf32, #tpu.memory_space<vmem>>) attributes {dimension_semantics = [#tpu.dimension_semantics<parallel>], iteration_bounds = array<i64: 3>, scalar_prefetch = 0 : i64, scratch_operands = 0 : i64, tpu.core_type = #tpu.core_type<tc>, window_params = [{transform_indices = @transform_0, window_bounds = array<i64: 8, 32>}, {pipeline_mode = #tpu.pipeline_mode<synchronous>, transform_indices = @transform_1, window_bounds = array<i64: 1, 32>}, {pipeline_mode = #tpu.pipeline_mode<synchronous>, transform_indices = @transform_2, window_bounds = array<i64: 1, 32>}, {transform_indices = @transform_3, window_bounds = array<i64: 8, 32>}]} {
    %c0 = arith.constant 0 : index
    %c0_0 = arith.constant 0 : index
    %0 = vector.load %arg1[%c0, %c0_0] : memref<8x32xf32, #tpu.memory_space<vmem>>, vector<8x32xf32>
    %cst = arith.constant dense<0.000000e+00> : vector<8xf32>
    %1 = vector.multi_reduction <add>, %0, %cst [1] : vector<8x32xf32> to vector<8xf32>
    %2 = vector.shape_cast %1 : vector<8xf32> to vector<8x1xf32>
    %cst_1 = arith.constant 3.200000e+01 : f32
    %3 = vector.broadcast %cst_1 : f32 to vector<8x1xf32>
    %4 = arith.divf %2, %3 : vector<8x1xf32>
    %5 = vector.broadcast %4 : vector<8x1xf32> to vector<8x32xf32>
    %6 = arith.subf %0, %5 : vector<8x32xf32>
    %7 = arith.mulf %6, %6 : vector<8x32xf32>
    %cst_2 = arith.constant dense<0.000000e+00> : vector<8xf32>
    %8 = vector.multi_reduction <add>, %7, %cst_2 [1] : vector<8x32xf32> to vector<8xf32>
    %9 = vector.shape_cast %8 : vector<8xf32> to vector<8x1xf32>
    %cst_3 = arith.constant 3.200000e+01 : f32
    %10 = vector.broadcast %cst_3 : f32 to vector<8x1xf32>
    %11 = arith.divf %9, %10 : vector<8x1xf32>
    %12 = vector.broadcast %4 : vector<8x1xf32> to vector<8x32xf32>
    %13 = arith.subf %0, %12 : vector<8x32xf32>
    %cst_4 = arith.constant 9.99999974E-6 : f32
    %14 = vector.broadcast %cst_4 : f32 to vector<8x1xf32>
    %15 = arith.addf %11, %14 : vector<8x1xf32>
    %16 = math.rsqrt %15 : vector<8x1xf32>
    %17 = vector.broadcast %16 : vector<8x1xf32> to vector<8x32xf32>
    %18 = arith.mulf %13, %17 : vector<8x32xf32>
    %c0_5 = arith.constant 0 : index
    %c0_6 = arith.constant 0 : index
    %19 = vector.load %arg2[%c0_5, %c0_6] : memref<1x32xf32, #tpu.memory_space<vmem>>, vector<1x32xf32>
    %20 = vector.broadcast %19 : vector<1x32xf32> to vector<8x32xf32>
    %21 = arith.mulf %18, %20 : vector<8x32xf32>
    %c0_7 = arith.constant 0 : index
    %c0_8 = arith.constant 0 : index
    %22 = vector.load %arg3[%c0_7, %c0_8] : memref<1x32xf32, #tpu.memory_space<vmem>>, vector<1x32xf32>
    %23 = vector.broadcast %22 : vector<1x32xf32> to vector<8x32xf32>
    %24 = arith.addf %21, %23 : vector<8x32xf32>
    %c0_9 = arith.constant 0 : index
    %c0_10 = arith.constant 0 : index
    %25 = vector.load %arg4[%c0_9, %c0_10] : memref<8x32xf32, #tpu.memory_space<vmem>>, vector<8x32xf32>
    tpu.vector_store %arg4[%c0_9, %c0_10], %24 {strides = array<i32>} : memref<8x32xf32, #tpu.memory_space<vmem>>, vector<8x32xf32>,
    return
  }
  func.func @transform_0(%arg0: i32) -> (i32, i32) {
    %c0_i32 = arith.constant 0 : i32
    %c0_i32_0 = arith.constant 0 : i32
    return %arg0, %c0_i32 : i32, i32
  }
  func.func @transform_1(%arg0: i32) -> (i32, i32) {
    %c0_i32 = arith.constant 0 : i32
    %c0_i32_0 = arith.constant 0 : i32
    %c0_i32_1 = arith.constant 0 : i32
    return %c0_i32, %c0_i32_0 : i32, i32
  }
  func.func @transform_2(%arg0: i32) -> (i32, i32) {
    %c0_i32 = arith.constant 0 : i32
    %c0_i32_0 = arith.constant 0 : i32
    %c0_i32_1 = arith.constant 0 : i32
    return %c0_i32, %c0_i32_0 : i32, i32
  }
  func.func @transform_3(%arg0: i32) -> (i32, i32) {
    %c0_i32 = arith.constant 0 : i32
    %c0_i32_0 = arith.constant 0 : i32
    return %arg0, %c0_i32 : i32, i32
  }
}

module attributes {stable_mosaic.version = 11 : i64} {
  func.func @_matmul_kernel(%arg0: i32, %arg1: i32, %arg2: i32, %arg3: memref<8x32xf32, #tpu.memory_space<vmem>>, %arg4: memref<32x96xf32, #tpu.memory_space<vmem>>, %arg5: memref<1x96xf32, #tpu.memory_space<vmem>>, %arg6: memref<8x96xf32, #tpu.memory_space<vmem>>, %arg7: memref<8x96xf32, #tpu.memory_space<vmem>>) attributes {dimension_semantics = [#tpu.dimension_semantics<parallel>, #tpu.dimension_semantics<parallel>, #tpu.dimension_semantics<arbitrary>], iteration_bounds = array<i64: 3, 1, 1>, scalar_prefetch = 0 : i64, scratch_operands = 1 : i64, tpu.core_type = #tpu.core_type<tc>, window_params = [{transform_indices = @transform_0, window_bounds = array<i64: 8, 32>}, {transform_indices = @transform_1, window_bounds = array<i64: 32, 96>}, {transform_indices = @transform_2, window_bounds = array<i64: 1, 96>}, {transform_indices = @transform_3, window_bounds = array<i64: 8, 96>}]} {
    %c0_i32 = arith.constant 0 : i32
    %0 = arith.cmpi eq, %arg2, %c0_i32 : i32
    %1 = arith.extui %0 : i1 to i32
    %c0_i32_0 = arith.constant 0 : i32
    %2 = arith.cmpi ne, %1, %c0_i32_0 : i32
    scf.if %2 {
      %cst_10 = arith.constant 0.000000e+00 : f32
      %14 = vector.broadcast %cst_10 : f32 to vector<8x96xf32>
      %c0_11 = arith.constant 0 : index
      %c0_12 = arith.constant 0 : index
      %15 = vector.load %arg7[%c0_11, %c0_12] : memref<8x96xf32, #tpu.memory_space<vmem>>, vector<8x96xf32>
      tpu.vector_store %arg7[%c0_11, %c0_12], %14 {strides = array<i32>} : memref<8x96xf32, #tpu.memory_space<vmem>>, vector<8x96xf32>,
    } else {
    }
    %c0 = arith.constant 0 : index
    %c0_1 = arith.constant 0 : index
    %3 = vector.load %arg7[%c0, %c0_1] : memref<8x96xf32, #tpu.memory_space<vmem>>, vector<8x96xf32>
    %c0_2 = arith.constant 0 : index
    %c0_3 = arith.constant 0 : index
    %4 = vector.load %arg3[%c0_2, %c0_3] : memref<8x32xf32, #tpu.memory_space<vmem>>, vector<8x32xf32>
    %5 = arith.truncf %4 : vector<8x32xf32> to vector<8x32xbf16>
    %c0_4 = arith.constant 0 : index
    %c0_5 = arith.constant 0 : index
    %6 = vector.load %arg4[%c0_4, %c0_5] : memref<32x96xf32, #tpu.memory_space<vmem>>, vector<32x96xf32>
    %7 = arith.truncf %6 : vector<32x96xf32> to vector<32x96xbf16>
    %cst = arith.constant dense<0.000000e+00> : vector<8x96xf32>
    %8 = tpu.matmul %5, %7, %cst {dimension_numbers = #tpu.dot_dimension_numbers<[1], [0], [0], [1], [0, 0, 1, 1], [], []>} : vector<8x32xbf16>, vector<32x96xbf16>, vector<8x96xf32> -> vector<8x96xf32>
    %9 = arith.addf %3, %8 : vector<8x96xf32>
    %c0_6 = arith.constant 0 : index
    %c0_7 = arith.constant 0 : index
    %10 = vector.load %arg7[%c0_6, %c0_7] : memref<8x96xf32, #tpu.memory_space<vmem>>, vector<8x96xf32>
    tpu.vector_store %arg7[%c0_6, %c0_7], %9 {strides = array<i32>} : memref<8x96xf32, #tpu.memory_space<vmem>>, vector<8x96xf32>,
    %c0_i32_8 = arith.constant 0 : i32
    %11 = arith.cmpi eq, %arg2, %c0_i32_8 : i32
    %12 = arith.extui %11 : i1 to i32
    %c0_i32_9 = arith.constant 0 : i32
    %13 = arith.cmpi ne, %12, %c0_i32_9 : i32
    scf.if %13 {
      %c0_10 = arith.constant 0 : index
      %c0_11 = arith.constant 0 : index
      %14 = vector.load %arg7[%c0_10, %c0_11] : memref<8x96xf32, #tpu.memory_space<vmem>>, vector<8x96xf32>
      %c0_12 = arith.constant 0 : index
      %c0_13 = arith.constant 0 : index
      %15 = vector.load %arg5[%c0_12, %c0_13] : memref<1x96xf32, #tpu.memory_space<vmem>>, vector<1x96xf32>
      %16 = vector.broadcast %15 : vector<1x96xf32> to vector<8x96xf32>
      %17 = arith.addf %14, %16 : vector<8x96xf32>
      %c0_14 = arith.constant 0 : index
      %c0_15 = arith.constant 0 : index
      %18 = vector.load %arg6[%c0_14, %c0_15] : memref<8x96xf32, #tpu.memory_space<vmem>>, vector<8x96xf32>
      tpu.vector_store %arg6[%c0_14, %c0_15], %17 {strides = array<i32>} : memref<8x96xf32, #tpu.memory_space<vmem>>, vector<8x96xf32>,
    } else {
    }
    return
  }
  func.func @transform_0(%arg0: i32, %arg1: i32, %arg2: i32) -> (i32, i32) {
    %c0_i32 = arith.constant 0 : i32
    return %arg0, %arg2 : i32, i32
  }
  func.func @transform_1(%arg0: i32, %arg1: i32, %arg2: i32) -> (i32, i32) {
    %c0_i32 = arith.constant 0 : i32
    return %arg2, %arg1 : i32, i32
  }
  func.func @transform_2(%arg0: i32, %arg1: i32, %arg2: i32) -> (i32, i32) {
    %c0_i32 = arith.constant 0 : i32
    %c0_i32_0 = arith.constant 0 : i32
    return %c0_i32, %arg1 : i32, i32
  }
  func.func @transform_3(%arg0: i32, %arg1: i32, %arg2: i32) -> (i32, i32) {
    %c0_i32 = arith.constant 0 : i32
    return %arg0, %arg1 : i32, i32
  }
}

module attributes {stable_mosaic.version = 11 : i64} {
  func.func @_matmul_kernel(%arg0: i32, %arg1: i32, %arg2: i32, %arg3: memref<8x32xf32, #tpu.memory_space<vmem>>, %arg4: memref<32x32xf32, #tpu.memory_space<vmem>>, %arg5: memref<1x32xf32, #tpu.memory_space<vmem>>, %arg6: memref<8x32xf32, #tpu.memory_space<vmem>>, %arg7: memref<8x32xf32, #tpu.memory_space<vmem>>, %arg8: memref<8x32xf32, #tpu.memory_space<vmem>>) attributes {dimension_semantics = [#tpu.dimension_semantics<parallel>, #tpu.dimension_semantics<parallel>, #tpu.dimension_semantics<arbitrary>], iteration_bounds = array<i64: 3, 1, 1>, scalar_prefetch = 0 : i64, scratch_operands = 1 : i64, tpu.core_type = #tpu.core_type<tc>, window_params = [{transform_indices = @transform_0, window_bounds = array<i64: 8, 32>}, {transform_indices = @transform_1, window_bounds = array<i64: 32, 32>}, {transform_indices = @transform_2, window_bounds = array<i64: 1, 32>}, {transform_indices = @transform_3, window_bounds = array<i64: 8, 32>}, {transform_indices = @transform_4, window_bounds = array<i64: 8, 32>}]} {
    %c0_i32 = arith.constant 0 : i32
    %0 = arith.cmpi eq, %arg2, %c0_i32 : i32
    %1 = arith.extui %0 : i1 to i32
    %c0_i32_0 = arith.constant 0 : i32
    %2 = arith.cmpi ne, %1, %c0_i32_0 : i32
    scf.if %2 {
      %cst_10 = arith.constant 0.000000e+00 : f32
      %14 = vector.broadcast %cst_10 : f32 to vector<8x32xf32>
      %c0_11 = arith.constant 0 : index
      %c0_12 = arith.constant 0 : index
      %15 = vector.load %arg8[%c0_11, %c0_12] : memref<8x32xf32, #tpu.memory_space<vmem>>, vector<8x32xf32>
      tpu.vector_store %arg8[%c0_11, %c0_12], %14 {strides = array<i32>} : memref<8x32xf32, #tpu.memory_space<vmem>>, vector<8x32xf32>,
    } else {
    }
    %c0 = arith.constant 0 : index
    %c0_1 = arith.constant 0 : index
    %3 = vector.load %arg8[%c0, %c0_1] : memref<8x32xf32, #tpu.memory_space<vmem>>, vector<8x32xf32>
    %c0_2 = arith.constant 0 : index
    %c0_3 = arith.constant 0 : index
    %4 = vector.load %arg3[%c0_2, %c0_3] : memref<8x32xf32, #tpu.memory_space<vmem>>, vector<8x32xf32>
    %5 = arith.truncf %4 : vector<8x32xf32> to vector<8x32xbf16>
    %c0_4 = arith.constant 0 : index
    %c0_5 = arith.constant 0 : index
    %6 = vector.load %arg4[%c0_4, %c0_5] : memref<32x32xf32, #tpu.memory_space<vmem>>, vector<32x32xf32>
    %7 = arith.truncf %6 : vector<32x32xf32> to vector<32x32xbf16>
    %cst = arith.constant dense<0.000000e+00> : vector<8x32xf32>
    %8 = tpu.matmul %5, %7, %cst {dimension_numbers = #tpu.dot_dimension_numbers<[1], [0], [0], [1], [0, 0, 1, 1], [], []>} : vector<8x32xbf16>, vector<32x32xbf16>, vector<8x32xf32> -> vector<8x32xf32>
    %9 = arith.addf %3, %8 : vector<8x32xf32>
    %c0_6 = arith.constant 0 : index
    %c0_7 = arith.constant 0 : index
    %10 = vector.load %arg8[%c0_6, %c0_7] : memref<8x32xf32, #tpu.memory_space<vmem>>, vector<8x32xf32>
    tpu.vector_store %arg8[%c0_6, %c0_7], %9 {strides = array<i32>} : memref<8x32xf32, #tpu.memory_space<vmem>>, vector<8x32xf32>,
    %c0_i32_8 = arith.constant 0 : i32
    %11 = arith.cmpi eq, %arg2, %c0_i32_8 : i32
    %12 = arith.extui %11 : i1 to i32
    %c0_i32_9 = arith.constant 0 : i32
    %13 = arith.cmpi ne, %12, %c0_i32_9 : i32
    scf.if %13 {
      %c0_10 = arith.constant 0 : index
      %c0_11 = arith.constant 0 : index
      %14 = vector.load %arg8[%c0_10, %c0_11] : memref<8x32xf32, #tpu.memory_space<vmem>>, vector<8x32xf32>
      %c0_12 = arith.constant 0 : index
      %c0_13 = arith.constant 0 : index
      %15 = vector.load %arg5[%c0_12, %c0_13] : memref<1x32xf32, #tpu.memory_space<vmem>>, vector<1x32xf32>
      %16 = vector.broadcast %15 : vector<1x32xf32> to vector<8x32xf32>
      %17 = arith.addf %14, %16 : vector<8x32xf32>
      %c0_14 = arith.constant 0 : index
      %c0_15 = arith.constant 0 : index
      %18 = vector.load %arg6[%c0_14, %c0_15] : memref<8x32xf32, #tpu.memory_space<vmem>>, vector<8x32xf32>
      %19 = arith.addf %17, %18 : vector<8x32xf32>
      %c0_16 = arith.constant 0 : index
      %c0_17 = arith.constant 0 : index
      %20 = vector.load %arg7[%c0_16, %c0_17] : memref<8x32xf32, #tpu.memory_space<vmem>>, vector<8x32xf32>
      tpu.vector_store %arg7[%c0_16, %c0_17], %19 {strides = array<i32>} : memref<8x32xf32, #tpu.memory_space<vmem>>, vector<8x32xf32>,
    } else {
    }
    return
  }
  func.func @transform_0(%arg0: i32, %arg1: i32, %arg2: i32) -> (i32, i32) {
    %c0_i32 = arith.constant 0 : i32
    return %arg0, %arg2 : i32, i32
  }
  func.func @transform_1(%arg0: i32, %arg1: i32, %arg2: i32) -> (i32, i32) {
    %c0_i32 = arith.constant 0 : i32
    return %arg2, %arg1 : i32, i32
  }
  func.func @transform_2(%arg0: i32, %arg1: i32, %arg2: i32) -> (i32, i32) {
    %c0_i32 = arith.constant 0 : i32
    %c0_i32_0 = arith.constant 0 : i32
    return %c0_i32, %arg1 : i32, i32
  }
  func.func @transform_3(%arg0: i32, %arg1: i32, %arg2: i32) -> (i32, i32) {
    %c0_i32 = arith.constant 0 : i32
    return %arg0, %arg1 : i32, i32
  }
  func.func @transform_4(%arg0: i32, %arg1: i32, %arg2: i32) -> (i32, i32) {
    %c0_i32 = arith.constant 0 : i32
    return %arg0, %arg1 : i32, i32
  }
}

module attributes {stable_mosaic.version = 11 : i64} {
  func.func @_matmul_kernel(%arg0: i32, %arg1: i32, %arg2: i32, %arg3: memref<8x32xf32, #tpu.memory_space<vmem>>, %arg4: memref<32x128xf32, #tpu.memory_space<vmem>>, %arg5: memref<1x128xf32, #tpu.memory_space<vmem>>, %arg6: memref<8x128xf32, #tpu.memory_space<vmem>>, %arg7: memref<8x128xf32, #tpu.memory_space<vmem>>) attributes {dimension_semantics = [#tpu.dimension_semantics<parallel>, #tpu.dimension_semantics<parallel>, #tpu.dimension_semantics<arbitrary>], iteration_bounds = array<i64: 3, 1, 1>, scalar_prefetch = 0 : i64, scratch_operands = 1 : i64, tpu.core_type = #tpu.core_type<tc>, window_params = [{transform_indices = @transform_0, window_bounds = array<i64: 8, 32>}, {transform_indices = @transform_1, window_bounds = array<i64: 32, 128>}, {transform_indices = @transform_2, window_bounds = array<i64: 1, 128>}, {transform_indices = @transform_3, window_bounds = array<i64: 8, 128>}]} {
    %c0_i32 = arith.constant 0 : i32
    %0 = arith.cmpi eq, %arg2, %c0_i32 : i32
    %1 = arith.extui %0 : i1 to i32
    %c0_i32_0 = arith.constant 0 : i32
    %2 = arith.cmpi ne, %1, %c0_i32_0 : i32
    scf.if %2 {
      %cst_10 = arith.constant 0.000000e+00 : f32
      %14 = vector.broadcast %cst_10 : f32 to vector<8x128xf32>
      %c0_11 = arith.constant 0 : index
      %c0_12 = arith.constant 0 : index
      %15 = vector.load %arg7[%c0_11, %c0_12] : memref<8x128xf32, #tpu.memory_space<vmem>>, vector<8x128xf32>
      tpu.vector_store %arg7[%c0_11, %c0_12], %14 {strides = array<i32>} : memref<8x128xf32, #tpu.memory_space<vmem>>, vector<8x128xf32>,
    } else {
    }
    %c0 = arith.constant 0 : index
    %c0_1 = arith.constant 0 : index
    %3 = vector.load %arg7[%c0, %c0_1] : memref<8x128xf32, #tpu.memory_space<vmem>>, vector<8x128xf32>
    %c0_2 = arith.constant 0 : index
    %c0_3 = arith.constant 0 : index
    %4 = vector.load %arg3[%c0_2, %c0_3] : memref<8x32xf32, #tpu.memory_space<vmem>>, vector<8x32xf32>
    %5 = arith.truncf %4 : vector<8x32xf32> to vector<8x32xbf16>
    %c0_4 = arith.constant 0 : index
    %c0_5 = arith.constant 0 : index
    %6 = vector.load %arg4[%c0_4, %c0_5] : memref<32x128xf32, #tpu.memory_space<vmem>>, vector<32x128xf32>
    %7 = arith.truncf %6 : vector<32x128xf32> to vector<32x128xbf16>
    %cst = arith.constant dense<0.000000e+00> : vector<8x128xf32>
    %8 = tpu.matmul %5, %7, %cst {dimension_numbers = #tpu.dot_dimension_numbers<[1], [0], [0], [1], [0, 0, 1, 1], [], []>} : vector<8x32xbf16>, vector<32x128xbf16>, vector<8x128xf32> -> vector<8x128xf32>
    %9 = arith.addf %3, %8 : vector<8x128xf32>
    %c0_6 = arith.constant 0 : index
    %c0_7 = arith.constant 0 : index
    %10 = vector.load %arg7[%c0_6, %c0_7] : memref<8x128xf32, #tpu.memory_space<vmem>>, vector<8x128xf32>
    tpu.vector_store %arg7[%c0_6, %c0_7], %9 {strides = array<i32>} : memref<8x128xf32, #tpu.memory_space<vmem>>, vector<8x128xf32>,
    %c0_i32_8 = arith.constant 0 : i32
    %11 = arith.cmpi eq, %arg2, %c0_i32_8 : i32
    %12 = arith.extui %11 : i1 to i32
    %c0_i32_9 = arith.constant 0 : i32
    %13 = arith.cmpi ne, %12, %c0_i32_9 : i32
    scf.if %13 {
      %c0_10 = arith.constant 0 : index
      %c0_11 = arith.constant 0 : index
      %14 = vector.load %arg7[%c0_10, %c0_11] : memref<8x128xf32, #tpu.memory_space<vmem>>, vector<8x128xf32>
      %c0_12 = arith.constant 0 : index
      %c0_13 = arith.constant 0 : index
      %15 = vector.load %arg5[%c0_12, %c0_13] : memref<1x128xf32, #tpu.memory_space<vmem>>, vector<1x128xf32>
      %16 = vector.broadcast %15 : vector<1x128xf32> to vector<8x128xf32>
      %17 = arith.addf %14, %16 : vector<8x128xf32>
      %cst_14 = arith.constant 1.702000e+00 : f32
      %18 = vector.broadcast %cst_14 : f32 to vector<8x128xf32>
      %19 = arith.mulf %18, %17 : vector<8x128xf32>
      %20 = arith.negf %19 : vector<8x128xf32>
      %21 = math.exp %20 : vector<8x128xf32>
      %cst_15 = arith.constant 1.000000e+00 : f32
      %22 = vector.broadcast %cst_15 : f32 to vector<8x128xf32>
      %23 = arith.addf %22, %21 : vector<8x128xf32>
      %24 = arith.divf %22, %23 : vector<8x128xf32>
      %25 = arith.mulf %17, %24 : vector<8x128xf32>
      %c0_16 = arith.constant 0 : index
      %c0_17 = arith.constant 0 : index
      %26 = vector.load %arg6[%c0_16, %c0_17] : memref<8x128xf32, #tpu.memory_space<vmem>>, vector<8x128xf32>
      tpu.vector_store %arg6[%c0_16, %c0_17], %25 {strides = array<i32>} : memref<8x128xf32, #tpu.memory_space<vmem>>, vector<8x128xf32>,
    } else {
    }
    return
  }
  func.func @transform_0(%arg0: i32, %arg1: i32, %arg2: i32) -> (i32, i32) {
    %c0_i32 = arith.constant 0 : i32
    return %arg0, %arg2 : i32, i32
  }
  func.func @transform_1(%arg0: i32, %arg1: i32, %arg2: i32) -> (i32, i32) {
    %c0_i32 = arith.constant 0 : i32
    return %arg2, %arg1 : i32, i32
  }
  func.func @transform_2(%arg0: i32, %arg1: i32, %arg2: i32) -> (i32, i32) {
    %c0_i32 = arith.constant 0 : i32
    %c0_i32_0 = arith.constant 0 : i32
    return %c0_i32, %arg1 : i32, i32
  }
  func.func @transform_3(%arg0: i32, %arg1: i32, %arg2: i32) -> (i32, i32) {
    %c0_i32 = arith.constant 0 : i32
    return %arg0, %arg1 : i32, i32
  }
}

module attributes {stable_mosaic.version = 11 : i64} {
  func.func @_attention_kernel(%arg0: i32, %arg1: memref<1x8x96xf32, #tpu.memory_space<vmem>>, %arg2: memref<1x8x32xf32, #tpu.memory_space<vmem>>) attributes {dimension_semantics = [#tpu.dimension_semantics<parallel>], iteration_bounds = array<i64: 3>, scalar_prefetch = 0 : i64, scratch_operands = 0 : i64, tpu.core_type = #tpu.core_type<tc>, window_params = [{transform_indices = @transform_0, window_bounds = array<i64: 1, 8, 96>}, {transform_indices = @transform_1, window_bounds = array<i64: 1, 8, 32>}]} {
    %0 = tpu.iota {dimensions = array<i32: 1>} : vector<8x8xi32>
    %c8_i32 = arith.constant 8 : i32
    %1 = vector.broadcast %c8_i32 : i32 to vector<8x8xi32>
    %2 = arith.cmpi sge, %0, %1 : vector<8x8xi32>
    %3 = tpu.iota {dimensions = array<i32: 0>} : vector<8x8xi32>
    %4 = arith.cmpi sgt, %0, %3 : vector<8x8xi32>
    %5 = arith.ori %2, %4 : vector<8x8xi1>
    %c0 = arith.constant 0 : index
    %c0_0 = arith.constant 0 : index
    %c0_1 = arith.constant 0 : index
    %6 = vector.load %arg1[%c0, %c0_0, %c0_1] : memref<1x8x96xf32, #tpu.memory_space<vmem>>, vector<1x8x8xf32>
    %7 = vector.shape_cast %6 : vector<1x8x8xf32> to vector<8x8xf32>
    %8 = arith.truncf %7 : vector<8x8xf32> to vector<8x8xbf16>
    %c0_2 = arith.constant 0 : index
    %c0_3 = arith.constant 0 : index
    %c32 = arith.constant 32 : index
    %9 = vector.load %arg1[%c0_2, %c0_3, %c32] : memref<1x8x96xf32, #tpu.memory_space<vmem>>, vector<1x8x8xf32>
    %10 = vector.shape_cast %9 : vector<1x8x8xf32> to vector<8x8xf32>
    %11 = arith.truncf %10 : vector<8x8xf32> to vector<8x8xbf16>
    %c0_4 = arith.constant 0 : index
    %c0_5 = arith.constant 0 : index
    %c64 = arith.constant 64 : index
    %12 = vector.load %arg1[%c0_4, %c0_5, %c64] : memref<1x8x96xf32, #tpu.memory_space<vmem>>, vector<1x8x8xf32>
    %13 = vector.shape_cast %12 : vector<1x8x8xf32> to vector<8x8xf32>
    %14 = arith.truncf %13 : vector<8x8xf32> to vector<8x8xbf16>
    %15 = tpu.transpose %11, [1, 0] : vector<8x8xbf16> -> vector<8x8xbf16>
    %cst = arith.constant dense<0.000000e+00> : vector<8x8xf32>
    %16 = tpu.matmul %8, %15, %cst {dimension_numbers = #tpu.dot_dimension_numbers<[1], [0], [0], [1], [0, 0, 1, 1], [], []>} : vector<8x8xbf16>, vector<8x8xbf16>, vector<8x8xf32> -> vector<8x8xf32>
    %cst_6 = arith.constant 0.353553385 : f32
    %17 = vector.broadcast %cst_6 : f32 to vector<8x8xf32>
    %18 = arith.mulf %16, %17 : vector<8x8xf32>
    %cst_7 = arith.constant -1.000000e+30 : f32
    %19 = vector.broadcast %cst_7 : f32 to vector<8x8xf32>
    %20 = arith.select %5, %19, %18 : vector<8x8xi1>, vector<8x8xf32>
    %cst_8 = arith.constant dense<0xFF800000> : vector<8xf32>
    %21 = vector.multi_reduction <maximumf>, %20, %cst_8 [1] : vector<8x8xf32> to vector<8xf32>
    %22 = vector.shape_cast %21 : vector<8xf32> to vector<8x1xf32>
    %23 = vector.broadcast %22 : vector<8x1xf32> to vector<8x8xf32>
    %24 = arith.subf %20, %23 : vector<8x8xf32>
    %25 = math.exp %24 : vector<8x8xf32>
    %cst_9 = arith.constant dense<0.000000e+00> : vector<8xf32>
    %26 = vector.multi_reduction <add>, %25, %cst_9 [1] : vector<8x8xf32> to vector<8xf32>
    %27 = vector.shape_cast %26 : vector<8xf32> to vector<8x1xf32>
    %28 = tpu.reciprocal %27 {approx = true} : vector<8x1xf32> -> vector<8x1xf32>
    %29 = vector.broadcast %28 : vector<8x1xf32> to vector<8x8xf32>
    %30 = arith.mulf %25, %29 : vector<8x8xf32>
    %31 = arith.truncf %30 : vector<8x8xf32> to vector<8x8xbf16>
    %cst_10 = arith.constant dense<0.000000e+00> : vector<8x8xf32>
    %32 = tpu.matmul %31, %14, %cst_10 {dimension_numbers = #tpu.dot_dimension_numbers<[1], [0], [0], [1], [0, 0, 1, 1], [], []>} : vector<8x8xbf16>, vector<8x8xbf16>, vector<8x8xf32> -> vector<8x8xf32>
    %c0_11 = arith.constant 0 : index
    %c0_12 = arith.constant 0 : index
    %c8 = arith.constant 8 : index
    %33 = vector.load %arg1[%c0_11, %c0_12, %c8] : memref<1x8x96xf32, #tpu.memory_space<vmem>>, vector<1x8x8xf32>
    %34 = vector.shape_cast %33 : vector<1x8x8xf32> to vector<8x8xf32>
    %35 = arith.truncf %34 : vector<8x8xf32> to vector<8x8xbf16>
    %c0_13 = arith.constant 0 : index
    %c0_14 = arith.constant 0 : index
    %c40 = arith.constant 40 : index
    %36 = vector.load %arg1[%c0_13, %c0_14, %c40] : memref<1x8x96xf32, #tpu.memory_space<vmem>>, vector<1x8x8xf32>
    %37 = vector.shape_cast %36 : vector<1x8x8xf32> to vector<8x8xf32>
    %38 = arith.truncf %37 : vector<8x8xf32> to vector<8x8xbf16>
    %c0_15 = arith.constant 0 : index
    %c0_16 = arith.constant 0 : index
    %c72 = arith.constant 72 : index
    %39 = vector.load %arg1[%c0_15, %c0_16, %c72] : memref<1x8x96xf32, #tpu.memory_space<vmem>>, vector<1x8x8xf32>
    %40 = vector.shape_cast %39 : vector<1x8x8xf32> to vector<8x8xf32>
    %41 = arith.truncf %40 : vector<8x8xf32> to vector<8x8xbf16>
    %42 = tpu.transpose %38, [1, 0] : vector<8x8xbf16> -> vector<8x8xbf16>
    %cst_17 = arith.constant dense<0.000000e+00> : vector<8x8xf32>
    %43 = tpu.matmul %35, %42, %cst_17 {dimension_numbers = #tpu.dot_dimension_numbers<[1], [0], [0], [1], [0, 0, 1, 1], [], []>} : vector<8x8xbf16>, vector<8x8xbf16>, vector<8x8xf32> -> vector<8x8xf32>
    %cst_18 = arith.constant 0.353553385 : f32
    %44 = vector.broadcast %cst_18 : f32 to vector<8x8xf32>
    %45 = arith.mulf %43, %44 : vector<8x8xf32>
    %cst_19 = arith.constant -1.000000e+30 : f32
    %46 = vector.broadcast %cst_19 : f32 to vector<8x8xf32>
    %47 = arith.select %5, %46, %45 : vector<8x8xi1>, vector<8x8xf32>
    %cst_20 = arith.constant dense<0xFF800000> : vector<8xf32>
    %48 = vector.multi_reduction <maximumf>, %47, %cst_20 [1] : vector<8x8xf32> to vector<8xf32>
    %49 = vector.shape_cast %48 : vector<8xf32> to vector<8x1xf32>
    %50 = vector.broadcast %49 : vector<8x1xf32> to vector<8x8xf32>
    %51 = arith.subf %47, %50 : vector<8x8xf32>
    %52 = math.exp %51 : vector<8x8xf32>
    %cst_21 = arith.constant dense<0.000000e+00> : vector<8xf32>
    %53 = vector.multi_reduction <add>, %52, %cst_21 [1] : vector<8x8xf32> to vector<8xf32>
    %54 = vector.shape_cast %53 : vector<8xf32> to vector<8x1xf32>
    %55 = tpu.reciprocal %54 {approx = true} : vector<8x1xf32> -> vector<8x1xf32>
    %56 = vector.broadcast %55 : vector<8x1xf32> to vector<8x8xf32>
    %57 = arith.mulf %52, %56 : vector<8x8xf32>
    %58 = arith.truncf %57 : vector<8x8xf32> to vector<8x8xbf16>
    %cst_22 = arith.constant dense<0.000000e+00> : vector<8x8xf32>
    %59 = tpu.matmul %58, %41, %cst_22 {dimension_numbers = #tpu.dot_dimension_numbers<[1], [0], [0], [1], [0, 0, 1, 1], [], []>} : vector<8x8xbf16>, vector<8x8xbf16>, vector<8x8xf32> -> vector<8x8xf32>
    %c0_23 = arith.constant 0 : index
    %c0_24 = arith.constant 0 : index
    %c16 = arith.constant 16 : index
    %60 = vector.load %arg1[%c0_23, %c0_24, %c16] : memref<1x8x96xf32, #tpu.memory_space<vmem>>, vector<1x8x8xf32>
    %61 = vector.shape_cast %60 : vector<1x8x8xf32> to vector<8x8xf32>
    %62 = arith.truncf %61 : vector<8x8xf32> to vector<8x8xbf16>
    %c0_25 = arith.constant 0 : index
    %c0_26 = arith.constant 0 : index
    %c48 = arith.constant 48 : index
    %63 = vector.load %arg1[%c0_25, %c0_26, %c48] : memref<1x8x96xf32, #tpu.memory_space<vmem>>, vector<1x8x8xf32>
    %64 = vector.shape_cast %63 : vector<1x8x8xf32> to vector<8x8xf32>
    %65 = arith.truncf %64 : vector<8x8xf32> to vector<8x8xbf16>
    %c0_27 = arith.constant 0 : index
    %c0_28 = arith.constant 0 : index
    %c80 = arith.constant 80 : index
    %66 = vector.load %arg1[%c0_27, %c0_28, %c80] : memref<1x8x96xf32, #tpu.memory_space<vmem>>, vector<1x8x8xf32>
    %67 = vector.shape_cast %66 : vector<1x8x8xf32> to vector<8x8xf32>
    %68 = arith.truncf %67 : vector<8x8xf32> to vector<8x8xbf16>
    %69 = tpu.transpose %65, [1, 0] : vector<8x8xbf16> -> vector<8x8xbf16>
    %cst_29 = arith.constant dense<0.000000e+00> : vector<8x8xf32>
    %70 = tpu.matmul %62, %69, %cst_29 {dimension_numbers = #tpu.dot_dimension_numbers<[1], [0], [0], [1], [0, 0, 1, 1], [], []>} : vector<8x8xbf16>, vector<8x8xbf16>, vector<8x8xf32> -> vector<8x8xf32>
    %cst_30 = arith.constant 0.353553385 : f32
    %71 = vector.broadcast %cst_30 : f32 to vector<8x8xf32>
    %72 = arith.mulf %70, %71 : vector<8x8xf32>
    %cst_31 = arith.constant -1.000000e+30 : f32
    %73 = vector.broadcast %cst_31 : f32 to vector<8x8xf32>
    %74 = arith.select %5, %73, %72 : vector<8x8xi1>, vector<8x8xf32>
    %cst_32 = arith.constant dense<0xFF800000> : vector<8xf32>
    %75 = vector.multi_reduction <maximumf>, %74, %cst_32 [1] : vector<8x8xf32> to vector<8xf32>
    %76 = vector.shape_cast %75 : vector<8xf32> to vector<8x1xf32>
    %77 = vector.broadcast %76 : vector<8x1xf32> to vector<8x8xf32>
    %78 = arith.subf %74, %77 : vector<8x8xf32>
    %79 = math.exp %78 : vector<8x8xf32>
    %cst_33 = arith.constant dense<0.000000e+00> : vector<8xf32>
    %80 = vector.multi_reduction <add>, %79, %cst_33 [1] : vector<8x8xf32> to vector<8xf32>
    %81 = vector.shape_cast %80 : vector<8xf32> to vector<8x1xf32>
    %82 = tpu.reciprocal %81 {approx = true} : vector<8x1xf32> -> vector<8x1xf32>
    %83 = vector.broadcast %82 : vector<8x1xf32> to vector<8x8xf32>
    %84 = arith.mulf %79, %83 : vector<8x8xf32>
    %85 = arith.truncf %84 : vector<8x8xf32> to vector<8x8xbf16>
    %cst_34 = arith.constant dense<0.000000e+00> : vector<8x8xf32>
    %86 = tpu.matmul %85, %68, %cst_34 {dimension_numbers = #tpu.dot_dimension_numbers<[1], [0], [0], [1], [0, 0, 1, 1], [], []>} : vector<8x8xbf16>, vector<8x8xbf16>, vector<8x8xf32> -> vector<8x8xf32>
    %c0_35 = arith.constant 0 : index
    %c0_36 = arith.constant 0 : index
    %c24 = arith.constant 24 : index
    %87 = vector.load %arg1[%c0_35, %c0_36, %c24] : memref<1x8x96xf32, #tpu.memory_space<vmem>>, vector<1x8x8xf32>
    %88 = vector.shape_cast %87 : vector<1x8x8xf32> to vector<8x8xf32>
    %89 = arith.truncf %88 : vector<8x8xf32> to vector<8x8xbf16>
    %c0_37 = arith.constant 0 : index
    %c0_38 = arith.constant 0 : index
    %c56 = arith.constant 56 : index
    %90 = vector.load %arg1[%c0_37, %c0_38, %c56] : memref<1x8x96xf32, #tpu.memory_space<vmem>>, vector<1x8x8xf32>
    %91 = vector.shape_cast %90 : vector<1x8x8xf32> to vector<8x8xf32>
    %92 = arith.truncf %91 : vector<8x8xf32> to vector<8x8xbf16>
    %c0_39 = arith.constant 0 : index
    %c0_40 = arith.constant 0 : index
    %c88 = arith.constant 88 : index
    %93 = vector.load %arg1[%c0_39, %c0_40, %c88] : memref<1x8x96xf32, #tpu.memory_space<vmem>>, vector<1x8x8xf32>
    %94 = vector.shape_cast %93 : vector<1x8x8xf32> to vector<8x8xf32>
    %95 = arith.truncf %94 : vector<8x8xf32> to vector<8x8xbf16>
    %96 = tpu.transpose %92, [1, 0] : vector<8x8xbf16> -> vector<8x8xbf16>
    %cst_41 = arith.constant dense<0.000000e+00> : vector<8x8xf32>
    %97 = tpu.matmul %89, %96, %cst_41 {dimension_numbers = #tpu.dot_dimension_numbers<[1], [0], [0], [1], [0, 0, 1, 1], [], []>} : vector<8x8xbf16>, vector<8x8xbf16>, vector<8x8xf32> -> vector<8x8xf32>
    %cst_42 = arith.constant 0.353553385 : f32
    %98 = vector.broadcast %cst_42 : f32 to vector<8x8xf32>
    %99 = arith.mulf %97, %98 : vector<8x8xf32>
    %cst_43 = arith.constant -1.000000e+30 : f32
    %100 = vector.broadcast %cst_43 : f32 to vector<8x8xf32>
    %101 = arith.select %5, %100, %99 : vector<8x8xi1>, vector<8x8xf32>
    %cst_44 = arith.constant dense<0xFF800000> : vector<8xf32>
    %102 = vector.multi_reduction <maximumf>, %101, %cst_44 [1] : vector<8x8xf32> to vector<8xf32>
    %103 = vector.shape_cast %102 : vector<8xf32> to vector<8x1xf32>
    %104 = vector.broadcast %103 : vector<8x1xf32> to vector<8x8xf32>
    %105 = arith.subf %101, %104 : vector<8x8xf32>
    %106 = math.exp %105 : vector<8x8xf32>
    %cst_45 = arith.constant dense<0.000000e+00> : vector<8xf32>
    %107 = vector.multi_reduction <add>, %106, %cst_45 [1] : vector<8x8xf32> to vector<8xf32>
    %108 = vector.shape_cast %107 : vector<8xf32> to vector<8x1xf32>
    %109 = tpu.reciprocal %108 {approx = true} : vector<8x1xf32> -> vector<8x1xf32>
    %110 = vector.broadcast %109 : vector<8x1xf32> to vector<8x8xf32>
    %111 = arith.mulf %106, %110 : vector<8x8xf32>
    %112 = arith.truncf %111 : vector<8x8xf32> to vector<8x8xbf16>
    %cst_46 = arith.constant dense<0.000000e+00> : vector<8x8xf32>
    %113 = tpu.matmul %112, %95, %cst_46 {dimension_numbers = #tpu.dot_dimension_numbers<[1], [0], [0], [1], [0, 0, 1, 1], [], []>} : vector<8x8xbf16>, vector<8x8xbf16>, vector<8x8xf32> -> vector<8x8xf32>
    %114 = tpu.concatenate %32, %59, %86, %113 in 1 : vector<8x8xf32>, vector<8x8xf32>, vector<8x8xf32>, vector<8x8xf32> -> vector<8x32xf32>
    %c0_47 = arith.constant 0 : index
    %c0_48 = arith.constant 0 : index
    %c0_49 = arith.constant 0 : index
    %115 = vector.load %arg2[%c0_47, %c0_48, %c0_49] : memref<1x8x32xf32, #tpu.memory_space<vmem>>, vector<1x8x32xf32>
    %116 = vector.shape_cast %115 : vector<1x8x32xf32> to vector<8x32xf32>
    %117 = vector.shape_cast %114 : vector<8x32xf32> to vector<1x8x32xf32>
    tpu.vector_store %arg2[%c0_47, %c0_48, %c0_49], %117 {strides = array<i32>} : memref<1x8x32xf32, #tpu.memory_space<vmem>>, vector<1x8x32xf32>,
    return
  }
  func.func @transform_0(%arg0: i32) -> (i32, i32, i32) {
    %c0_i32 = arith.constant 0 : i32
    %c0_i32_0 = arith.constant 0 : i32
    %c0_i32_1 = arith.constant 0 : i32
    return %arg0, %c0_i32, %c0_i32_0 : i32, i32, i32
  }
  func.func @transform_1(%arg0: i32) -> (i32, i32, i32) {
    %c0_i32 = arith.constant 0 : i32
    %c0_i32_0 = arith.constant 0 : i32
    %c0_i32_1 = arith.constant 0 : i32
    return %arg0, %c0_i32, %c0_i32_0 : i32, i32, i32
  }
}

module attributes {stable_mosaic.version = 11 : i64} {
  func.func @_matmul_kernel(%arg0: i32, %arg1: i32, %arg2: i32, %arg3: memref<8x128xf32, #tpu.memory_space<vmem>>, %arg4: memref<128x32xf32, #tpu.memory_space<vmem>>, %arg5: memref<1x32xf32, #tpu.memory_space<vmem>>, %arg6: memref<8x32xf32, #tpu.memory_space<vmem>>, %arg7: memref<8x32xf32, #tpu.memory_space<vmem>>, %arg8: memref<8x32xf32, #tpu.memory_space<vmem>>) attributes {dimension_semantics = [#tpu.dimension_semantics<parallel>, #tpu.dimension_semantics<parallel>, #tpu.dimension_semantics<arbitrary>], iteration_bounds = array<i64: 3, 1, 1>, scalar_prefetch = 0 : i64, scratch_operands = 1 : i64, tpu.core_type = #tpu.core_type<tc>, window_params = [{transform_indices = @transform_0, window_bounds = array<i64: 8, 128>}, {transform_indices = @transform_1, window_bounds = array<i64: 128, 32>}, {transform_indices = @transform_2, window_bounds = array<i64: 1, 32>}, {transform_indices = @transform_3, window_bounds = array<i64: 8, 32>}, {transform_indices = @transform_4, window_bounds = array<i64: 8, 32>}]} {
    %c0_i32 = arith.constant 0 : i32
    %0 = arith.cmpi eq, %arg2, %c0_i32 : i32
    %1 = arith.extui %0 : i1 to i32
    %c0_i32_0 = arith.constant 0 : i32
    %2 = arith.cmpi ne, %1, %c0_i32_0 : i32
    scf.if %2 {
      %cst_10 = arith.constant 0.000000e+00 : f32
      %14 = vector.broadcast %cst_10 : f32 to vector<8x32xf32>
      %c0_11 = arith.constant 0 : index
      %c0_12 = arith.constant 0 : index
      %15 = vector.load %arg8[%c0_11, %c0_12] : memref<8x32xf32, #tpu.memory_space<vmem>>, vector<8x32xf32>
      tpu.vector_store %arg8[%c0_11, %c0_12], %14 {strides = array<i32>} : memref<8x32xf32, #tpu.memory_space<vmem>>, vector<8x32xf32>,
    } else {
    }
    %c0 = arith.constant 0 : index
    %c0_1 = arith.constant 0 : index
    %3 = vector.load %arg8[%c0, %c0_1] : memref<8x32xf32, #tpu.memory_space<vmem>>, vector<8x32xf32>
    %c0_2 = arith.constant 0 : index
    %c0_3 = arith.constant 0 : index
    %4 = vector.load %arg3[%c0_2, %c0_3] : memref<8x128xf32, #tpu.memory_space<vmem>>, vector<8x128xf32>
    %5 = arith.truncf %4 : vector<8x128xf32> to vector<8x128xbf16>
    %c0_4 = arith.constant 0 : index
    %c0_5 = arith.constant 0 : index
    %6 = vector.load %arg4[%c0_4, %c0_5] : memref<128x32xf32, #tpu.memory_space<vmem>>, vector<128x32xf32>
    %7 = arith.truncf %6 : vector<128x32xf32> to vector<128x32xbf16>
    %cst = arith.constant dense<0.000000e+00> : vector<8x32xf32>
    %8 = tpu.matmul %5, %7, %cst {dimension_numbers = #tpu.dot_dimension_numbers<[1], [0], [0], [1], [0, 0, 1, 1], [], []>} : vector<8x128xbf16>, vector<128x32xbf16>, vector<8x32xf32> -> vector<8x32xf32>
    %9 = arith.addf %3, %8 : vector<8x32xf32>
    %c0_6 = arith.constant 0 : index
    %c0_7 = arith.constant 0 : index
    %10 = vector.load %arg8[%c0_6, %c0_7] : memref<8x32xf32, #tpu.memory_space<vmem>>, vector<8x32xf32>
    tpu.vector_store %arg8[%c0_6, %c0_7], %9 {strides = array<i32>} : memref<8x32xf32, #tpu.memory_space<vmem>>, vector<8x32xf32>,
    %c0_i32_8 = arith.constant 0 : i32
    %11 = arith.cmpi eq, %arg2, %c0_i32_8 : i32
    %12 = arith.extui %11 : i1 to i32
    %c0_i32_9 = arith.constant 0 : i32
    %13 = arith.cmpi ne, %12, %c0_i32_9 : i32
    scf.if %13 {
      %c0_10 = arith.constant 0 : index
      %c0_11 = arith.constant 0 : index
      %14 = vector.load %arg8[%c0_10, %c0_11] : memref<8x32xf32, #tpu.memory_space<vmem>>, vector<8x32xf32>
      %c0_12 = arith.constant 0 : index
      %c0_13 = arith.constant 0 : index
      %15 = vector.load %arg5[%c0_12, %c0_13] : memref<1x32xf32, #tpu.memory_space<vmem>>, vector<1x32xf32>
      %16 = vector.broadcast %15 : vector<1x32xf32> to vector<8x32xf32>
      %17 = arith.addf %14, %16 : vector<8x32xf32>
      %c0_14 = arith.constant 0 : index
      %c0_15 = arith.constant 0 : index
      %18 = vector.load %arg6[%c0_14, %c0_15] : memref<8x32xf32, #tpu.memory_space<vmem>>, vector<8x32xf32>
      %19 = arith.addf %17, %18 : vector<8x32xf32>
      %c0_16 = arith.constant 0 : index
      %c0_17 = arith.constant 0 : index
      %20 = vector.load %arg7[%c0_16, %c0_17] : memref<8x32xf32, #tpu.memory_space<vmem>>, vector<8x32xf32>
      tpu.vector_store %arg7[%c0_16, %c0_17], %19 {strides = array<i32>} : memref<8x32xf32, #tpu.memory_space<vmem>>, vector<8x32xf32>,
    } else {
    }
    return
  }
  func.func @transform_0(%arg0: i32, %arg1: i32, %arg2: i32) -> (i32, i32) {
    %c0_i32 = arith.constant 0 : i32
    return %arg0, %arg2 : i32, i32
  }
  func.func @transform_1(%arg0: i32, %arg1: i32, %arg2: i32) -> (i32, i32) {
    %c0_i32 = arith.constant 0 : i32
    return %arg2, %arg1 : i32, i32
  }
  func.func @transform_2(%arg0: i32, %arg1: i32, %arg2: i32) -> (i32, i32) {
    %c0_i32 = arith.constant 0 : i32
    %c0_i32_0 = arith.constant 0 : i32
    return %c0_i32, %arg1 : i32, i32
  }
  func.func @transform_3(%arg0: i32, %arg1: i32, %arg2: i32) -> (i32, i32) {
    %c0_i32 = arith.constant 0 : i32
    return %arg0, %arg1 : i32, i32
  }
  func.func @transform_4(%arg0: i32, %arg1: i32, %arg2: i32) -> (i32, i32) {
    %c0_i32 = arith.constant 0 : i32
    return %arg0, %arg1 : i32, i32
  }
}

module attributes {stable_mosaic.version = 11 : i64} {
  func.func @_matmul_kernel(%arg0: i32, %arg1: i32, %arg2: i32, %arg3: memref<3x32xf32, #tpu.memory_space<vmem>>, %arg4: memref<32x32xf32, #tpu.memory_space<vmem>>, %arg5: memref<1x32xf32, #tpu.memory_space<vmem>>, %arg6: memref<3x32xf32, #tpu.memory_space<vmem>>, %arg7: memref<3x32xf32, #tpu.memory_space<vmem>>) attributes {dimension_semantics = [#tpu.dimension_semantics<parallel>, #tpu.dimension_semantics<parallel>, #tpu.dimension_semantics<arbitrary>], iteration_bounds = array<i64: 1, 1, 1>, scalar_prefetch = 0 : i64, scratch_operands = 1 : i64, tpu.core_type = #tpu.core_type<tc>, window_params = [{transform_indices = @transform_0, window_bounds = array<i64: 3, 32>}, {transform_indices = @transform_1, window_bounds = array<i64: 32, 32>}, {transform_indices = @transform_2, window_bounds = array<i64: 1, 32>}, {transform_indices = @transform_3, window_bounds = array<i64: 3, 32>}]} {
    %c0_i32 = arith.constant 0 : i32
    %0 = arith.cmpi eq, %arg2, %c0_i32 : i32
    %1 = arith.extui %0 : i1 to i32
    %c0_i32_0 = arith.constant 0 : i32
    %2 = arith.cmpi ne, %1, %c0_i32_0 : i32
    scf.if %2 {
      %cst_10 = arith.constant 0.000000e+00 : f32
      %14 = vector.broadcast %cst_10 : f32 to vector<3x32xf32>
      %c0_11 = arith.constant 0 : index
      %c0_12 = arith.constant 0 : index
      %15 = vector.load %arg7[%c0_11, %c0_12] : memref<3x32xf32, #tpu.memory_space<vmem>>, vector<3x32xf32>
      tpu.vector_store %arg7[%c0_11, %c0_12], %14 {strides = array<i32>} : memref<3x32xf32, #tpu.memory_space<vmem>>, vector<3x32xf32>,
    } else {
    }
    %c0 = arith.constant 0 : index
    %c0_1 = arith.constant 0 : index
    %3 = vector.load %arg7[%c0, %c0_1] : memref<3x32xf32, #tpu.memory_space<vmem>>, vector<3x32xf32>
    %c0_2 = arith.constant 0 : index
    %c0_3 = arith.constant 0 : index
    %4 = vector.load %arg3[%c0_2, %c0_3] : memref<3x32xf32, #tpu.memory_space<vmem>>, vector<3x32xf32>
    %5 = arith.truncf %4 : vector<3x32xf32> to vector<3x32xbf16>
    %c0_4 = arith.constant 0 : index
    %c0_5 = arith.constant 0 : index
    %6 = vector.load %arg4[%c0_4, %c0_5] : memref<32x32xf32, #tpu.memory_space<vmem>>, vector<32x32xf32>
    %7 = arith.truncf %6 : vector<32x32xf32> to vector<32x32xbf16>
    %cst = arith.constant dense<0.000000e+00> : vector<3x32xf32>
    %8 = tpu.matmul %5, %7, %cst {dimension_numbers = #tpu.dot_dimension_numbers<[1], [0], [0], [1], [0, 0, 1, 1], [], []>} : vector<3x32xbf16>, vector<32x32xbf16>, vector<3x32xf32> -> vector<3x32xf32>
    %9 = arith.addf %3, %8 : vector<3x32xf32>
    %c0_6 = arith.constant 0 : index
    %c0_7 = arith.constant 0 : index
    %10 = vector.load %arg7[%c0_6, %c0_7] : memref<3x32xf32, #tpu.memory_space<vmem>>, vector<3x32xf32>
    tpu.vector_store %arg7[%c0_6, %c0_7], %9 {strides = array<i32>} : memref<3x32xf32, #tpu.memory_space<vmem>>, vector<3x32xf32>,
    %c0_i32_8 = arith.constant 0 : i32
    %11 = arith.cmpi eq, %arg2, %c0_i32_8 : i32
    %12 = arith.extui %11 : i1 to i32
    %c0_i32_9 = arith.constant 0 : i32
    %13 = arith.cmpi ne, %12, %c0_i32_9 : i32
    scf.if %13 {
      %c0_10 = arith.constant 0 : index
      %c0_11 = arith.constant 0 : index
      %14 = vector.load %arg7[%c0_10, %c0_11] : memref<3x32xf32, #tpu.memory_space<vmem>>, vector<3x32xf32>
      %c0_12 = arith.constant 0 : index
      %c0_13 = arith.constant 0 : index
      %15 = vector.load %arg5[%c0_12, %c0_13] : memref<1x32xf32, #tpu.memory_space<vmem>>, vector<1x32xf32>
      %16 = vector.broadcast %15 : vector<1x32xf32> to vector<3x32xf32>
      %17 = arith.addf %14, %16 : vector<3x32xf32>
      %c0_14 = arith.constant 0 : index
      %c0_15 = arith.constant 0 : index
      %18 = vector.load %arg6[%c0_14, %c0_15] : memref<3x32xf32, #tpu.memory_space<vmem>>, vector<3x32xf32>
      tpu.vector_store %arg6[%c0_14, %c0_15], %17 {strides = array<i32>} : memref<3x32xf32, #tpu.memory_space<vmem>>, vector<3x32xf32>,
    } else {
    }
    return
  }
  func.func @transform_0(%arg0: i32, %arg1: i32, %arg2: i32) -> (i32, i32) {
    %c0_i32 = arith.constant 0 : i32
    return %arg0, %arg2 : i32, i32
  }
  func.func @transform_1(%arg0: i32, %arg1: i32, %arg2: i32) -> (i32, i32) {
    %c0_i32 = arith.constant 0 : i32
    return %arg2, %arg1 : i32, i32
  }
  func.func @transform_2(%arg0: i32, %arg1: i32, %arg2: i32) -> (i32, i32) {
    %c0_i32 = arith.constant 0 : i32
    %c0_i32_0 = arith.constant 0 : i32
    return %c0_i32, %arg1 : i32, i32
  }
  func.func @transform_3(%arg0: i32, %arg1: i32, %arg2: i32) -> (i32, i32) {
    %c0_i32 = arith.constant 0 : i32
    return %arg0, %arg1 : i32, i32
  }
}

module attributes {stable_mosaic.version = 11 : i64} {
  func.func @_clip_head_kernel(%arg0: memref<2x32xf32, #tpu.memory_space<vmem>>, %arg1: memref<3x32xf32, #tpu.memory_space<vmem>>, %arg2: memref<1x1xf32, #tpu.memory_space<smem>>, %arg3: memref<2x3xf32, #tpu.memory_space<vmem>>, %arg4: memref<3x32xf32, #tpu.memory_space<vmem>>) attributes {dimension_semantics = [], scalar_prefetch = 0 : i64, scratch_operands = 0 : i64, tpu.core_type = #tpu.core_type<tc>} {
    %c0 = arith.constant 0 : index
    %c0_0 = arith.constant 0 : index
    %0 = vector.load %arg0[%c0, %c0_0] : memref<2x32xf32, #tpu.memory_space<vmem>>, vector<2x32xf32>
    %c0_1 = arith.constant 0 : index
    %c0_2 = arith.constant 0 : index
    %1 = vector.load %arg1[%c0_1, %c0_2] : memref<3x32xf32, #tpu.memory_space<vmem>>, vector<3x32xf32>
    %2 = arith.mulf %0, %0 : vector<2x32xf32>
    %cst = arith.constant dense<0.000000e+00> : vector<2xf32>
    %3 = vector.multi_reduction <add>, %2, %cst [1] : vector<2x32xf32> to vector<2xf32>
    %4 = vector.shape_cast %3 : vector<2xf32> to vector<2x1xf32>
    %cst_3 = arith.constant 9.99999996E-13 : f32
    %5 = vector.broadcast %cst_3 : f32 to vector<2x1xf32>
    %6 = arith.maximumf %4, %5 : vector<2x1xf32>
    %7 = math.rsqrt %6 : vector<2x1xf32>
    %8 = vector.broadcast %7 : vector<2x1xf32> to vector<2x32xf32>
    %9 = arith.mulf %0, %8 : vector<2x32xf32>
    %10 = arith.mulf %1, %1 : vector<3x32xf32>
    %cst_4 = arith.constant dense<0.000000e+00> : vector<3xf32>
    %11 = vector.multi_reduction <add>, %10, %cst_4 [1] : vector<3x32xf32> to vector<3xf32>
    %12 = vector.shape_cast %11 : vector<3xf32> to vector<3x1xf32>
    %cst_5 = arith.constant 9.99999996E-13 : f32
    %13 = vector.broadcast %cst_5 : f32 to vector<3x1xf32>
    %14 = arith.maximumf %12, %13 : vector<3x1xf32>
    %15 = math.rsqrt %14 : vector<3x1xf32>
    %16 = vector.broadcast %15 : vector<3x1xf32> to vector<3x32xf32>
    %17 = arith.mulf %1, %16 : vector<3x32xf32>
    %c0_6 = arith.constant 0 : index
    %c0_7 = arith.constant 0 : index
    %18 = memref.load %arg2[%c0_6, %c0_7] : memref<1x1xf32, #tpu.memory_space<smem>>
    %19 = vector.broadcast %18 : f32 to vector<1x1xf32>
    %20 = math.exp %19 : vector<1x1xf32>
    %21 = tpu.transpose %17, [1, 0] : vector<3x32xf32> -> vector<32x3xf32>
    %cst_8 = arith.constant dense<0.000000e+00> : vector<2x3xf32>
    %22 = tpu.matmul %9, %21, %cst_8 {dimension_numbers = #tpu.dot_dimension_numbers<[1], [0], [0], [1], [0, 0, 1, 1], [], []>} : vector<2x32xf32>, vector<32x3xf32>, vector<2x3xf32> -> vector<2x3xf32>
    %23 = vector.broadcast %20 : vector<1x1xf32> to vector<2x3xf32>
    %24 = arith.mulf %22, %23 : vector<2x3xf32>
    %c0_9 = arith.constant 0 : index
    %c0_10 = arith.constant 0 : index
    %25 = vector.load %arg3[%c0_9, %c0_10] : memref<2x3xf32, #tpu.memory_space<vmem>>, vector<2x3xf32>
    tpu.vector_store %arg3[%c0_9, %c0_10], %24 {strides = array<i32>} : memref<2x3xf32, #tpu.memory_space<vmem>>, vector<2x3xf32>,
    %c0_11 = arith.constant 0 : index
    %c0_12 = arith.constant 0 : index
    %26 = vector.load %arg4[%c0_11, %c0_12] : memref<3x32xf32, #tpu.memory_space<vmem>>, vector<3x32xf32>
    tpu.vector_store %arg4[%c0_11, %c0_12], %17 {strides = array<i32>} : memref<3x32xf32, #tpu.memory_space<vmem>>, vector<3x32xf32>,
    return
  }
}

</mosaic_0001>

<bundles_post_ra>
// kernel: original_clip_forward.36
= control target key start
LH: loop header
LB: loop body
LE: loop exit
PB: predicated region body
PF: predicated region fallthrough
CT: control target
= control target key end

     0   :  { %vm16_vm0 = vcmask 261120   ;;  %s118_s0 = inlined_call_operand.vmem [shape: f32[16,32], index: 0, kind: input, shape index: {}]   ;;  %s119_s1 = inlined_call_operand.vmem [shape: f32[1,32], index: 1, kind: input, shape index: {}]   ;;  %s120_s2 = inlined_call_operand.vmem [shape: f32[1,32], index: 2, kind: input, shape index: {}]   ;;  %s121_s3 = inlined_call_operand.vmem [shape: f32[16,32], index: 3, kind: output, shape index: {}]  }
   0x1   :  { %v14_v0 = vld [vmem:[%s118_s0] sm:$0xff]  ;;  %v15_v1 = vld [vmem:[%s118_s0 + $0x8] sm:$0xff] }
   0x2   :  { %v17_v2 = vsel %vm16_vm0, %v14_v0, 0.0  ;;  %v20_v3 = vsel %vm16_vm0, %v15_v1, 0.0  ;;  %v68_v21 = vld [vmem:[%s119_s1] ss:$0 sm:$0xff] }
   0x3   :  { %18 = vadd.xlane.f32.xlu0 %v17_v2  ;;  %v69_v23 = vld [vmem:[%s120_s2] ss:$0 sm:$0xff] }
   0x7   :  { %21 = vadd.xlane.f32.xlu0 %v20_v3 }
  0x90   :  { %v19_v4 = vpop.xlane.xlu0 %18 }
  0x91   :  { %v24_v5 = vmul.f32 0.03125, %v19_v4 }
  0x93   :  { %v26_v6 = vsub.f32 %v14_v0, %v24_v5 }
  0x94   :  { %v22_v7 = vpop.xlane.xlu0 %21 }
  0x95   :  { %v25_v8 = vmul.f32 0.03125, %v22_v7  ;;  %v28_v9 = vmul.f32 %v26_v6, %v26_v6 }
  0x97   :  { %v27_v10 = vsub.f32 %v15_v1, %v25_v8  ;;  %v30_v11 = vsel %vm16_vm0, %v28_v9, 0.0 }
  0x98   :  { %31 = vadd.xlane.f32.xlu1 %v30_v11 }
  0x99   :  { %v29_v12 = vmul.f32 %v27_v10, %v27_v10 }
  0x9b   :  { %v33_v13 = vsel %vm16_vm0, %v29_v12, 0.0 }
  0x9c   :  { %34 = vadd.xlane.f32.xlu1 %v33_v13 }
 0x125   :  { %v32_v14 = vpop.xlane.xlu1 %31 }
 0x126   :  { %v36_v15 = vmul.f32 0.03125, %v32_v14 }
 0x128   :  { %v38_v16 = vadd.f32 1e-05, %v36_v15 }
 0x129   :  { %v35_v17 = vpop.xlane.xlu1 %34 }
 0x12a   :  { %70 = vrsqrt.f32 %v38_v16  ;;  %v37_v18 = vmul.f32 0.03125, %v35_v17 }
 0x12c   :  { %v39_v19 = vadd.f32 1e-05, %v37_v18 }
 0x12e   :  { %72 = vrsqrt.f32 %v39_v19 }
 0x134   :  { %v71_v20 = vpop.eup %70 }
 0x135   :  { %v42_v22 = vmul.f32 %v71_v20, %v26_v6 }
 0x137   :  { %v51_v24 = vmul.f32 %v68_v21, %v42_v22 }
 0x138   :  { %v73_v25 = vpop.eup %72 }
 0x139   :  { %v60_v26 = vadd.f32 %v69_v23, %v51_v24  ;;  %v43_v27 = vmul.f32 %v73_v25, %v27_v10 }
 0x13b   :  { %62 = vst.msk [vmem:[%s121_s3] sm:$0xff] %vm16_vm0, %v60_v26  ;;  %v52_v28 = vmul.f32 %v68_v21, %v43_v27 }
 0x13d   :  { %v61_v29 = vadd.f32 %v69_v23, %v52_v28 }
 0x13f   :  { %63 = vst.msk [vmem:[%s121_s3 + $0x8] sm:$0xff] %vm16_vm0, %v61_v29 }

// kernel: original_clip_forward.35
= control target key start
LH: loop header
LB: loop body
LE: loop exit
PB: predicated region body
PF: predicated region fallthrough
CT: control target
= control target key end

     0   :  { %vm19_vm0 = vcmask 261120   ;;  %v130_v0 = vmov 0   ;;  %v131_v4 = vmov 0.0   ;;  %vm62_vm1 = vcmask 523264   ;;  %s251_s1 = inlined_call_operand.vmem [shape: f32[192,32], index: 1, kind: input, shape index: {}]   ;;  %s252_s0 = inlined_call_operand.vmem [shape: f32[8,192], index: 0, kind: input, shape index: {}]   ;;  %s253_s2 = inlined_call_operand.vmem [shape: f32[1,32], index: 2, kind: input, shape index: {}]   ;;  %s254_s3 = inlined_call_operand.vmem [shape: f32[8,32], index: 3, kind: output, shape index: {}]  }
   0x1   :  { %66 = vmatprep.subr.bf16.mxu0 %v130_v0  ;;  %v26_v1 = vld [vmem:[%s251_s1] sm:$0xff]  ;;  %v27_v2 = vld [vmem:[%s251_s1 + $0x8] sm:$0xff]  ;;  %v28_v3 = vld [vmem:[%s251_s1 + $0x10] sm:$0xff]  ;;  %20 = vst.msk [vmem:[#allocation2] sm:$0xff] %vm19_vm0, %v131_v4 }
   0x2   :  { %v50_v5 = vpack.c.bf16 %v27_v2, %v26_v1  ;;  %v29_v6 = vld [vmem:[%s251_s1 + $0x18] sm:$0xff]  ;;  %v30_v8 = vld [vmem:[%s251_s1 + $0x20] sm:$0xff]  ;;  %v31_v9 = vld [vmem:[%s251_s1 + $0x28] sm:$0xff] }
   0x3   :  { %v51_v7 = vpack.c.bf16 %v29_v6, %v28_v3  ;;  %v52_v10 = vpack.c.bf16 %v31_v9, %v30_v8  ;;  %v32_v11 = vld [vmem:[%s251_s1 + $0x30] sm:$0xff]  ;;  %v33_v12 = vld [vmem:[%s251_s1 + $0x38] sm:$0xff]  ;;  %v23_v13 = vld [vmem:[%s252_s0 + $0x8] sm:$0xff] }
   0x4   :  { %67 = vmatpush1.bf16.msra.mxu0 %v50_v5  ;;  %v25_v14 = vpack.c.bf16 %v23_v13, %v23_v13  ;;  %v53_v15 = vpack.c.bf16 %v33_v12, %v32_v11  ;;  %v34_v16 = vld [vmem:[%s251_s1 + $0x40] sm:$0xff]  ;;  %v35_v17 = vld [vmem:[%s251_s1 + $0x48] sm:$0xff]  ;;  %v36_v19 = vld [vmem:[%s251_s1 + $0x50] sm:$0xff] }
   0x5   :  { %68 = vmatprep.subr.bf16.mxu0 %v130_v0  ;;  %v54_v18 = vpack.c.bf16 %v35_v17, %v34_v16  ;;  %v37_v20 = vld [vmem:[%s251_s1 + $0x58] sm:$0xff]  ;;  %v38_v22 = vld [vmem:[%s251_s1 + $0x60] sm:$0xff]  ;;  %v39_v23 = vld [vmem:[%s251_s1 + $0x68] sm:$0xff] }
   0x6   :  { %126 = vmatprep.mubr.msk.bf16.mxu0 %vm62_vm1, %v25_v14  ;;  %v55_v21 = vpack.c.bf16 %v37_v20, %v36_v19  ;;  %v56_v24 = vpack.c.bf16 %v39_v23, %v38_v22  ;;  %v40_v25 = vld [vmem:[%s251_s1 + $0x70] sm:$0xff]  ;;  %v41_v26 = vld [vmem:[%s251_s1 + $0x78] sm:$0xff]  ;;  %v42_v28 = vld [vmem:[%s251_s1 + $0x80] sm:$0xff] }
   0x7   :  { %v57_v27 = vpack.c.bf16 %v41_v26, %v40_v25  ;;  %v43_v29 = vld [vmem:[%s251_s1 + $0x88] sm:$0xff]  ;;  %v44_v31 = vld [vmem:[%s251_s1 + $0x90] sm:$0xff]  ;;  %v45_v32 = vld [vmem:[%s251_s1 + $0x98] sm:$0xff] }
   0x8   :  { %69 = vmatpush1.bf16.msra.mxu0 %v51_v7  ;;  %v58_v30 = vpack.c.bf16 %v43_v29, %v42_v28  ;;  %v59_v33 = vpack.c.bf16 %v45_v32, %v44_v31  ;;  %v46_v34 = vld [vmem:[%s251_s1 + $0xa0] sm:$0xff]  ;;  %v47_v35 = vld [vmem:[%s251_s1 + $0xa8] sm:$0xff]  ;;  %v48_v37 = vld [vmem:[%s251_s1 + $0xb0] sm:$0xff] }
   0x9   :  { %70 = vmatprep.subr.bf16.mxu0 %v130_v0  ;;  %v60_v36 = vpack.c.bf16 %v47_v35, %v46_v34  ;;  %v49_v38 = vld [vmem:[%s251_s1 + $0xb8] sm:$0xff]  ;;  %v22_v40 = vld [vmem:[%s252_s0] sm:$0xff] }
   0xa   :  { %v61_v39 = vpack.c.bf16 %v49_v38, %v48_v37  ;;  %v24_v41 = vpack.c.bf16 %v22_v40, %v22_v40  ;;  %v21_v42 = vld [vmem:[#allocation2] sm:$0xff] }
   0xb   :  { %v127_v48 = vld [vmem:[%s253_s2] ss:$0 sm:$0xff] }
   0xc   :  { %71 = vmatpush1.bf16.msra.mxu0 %v52_v10 }
   0xd   :  { %72 = vmatprep.subr.bf16.mxu0 %v130_v0 }
  0x10   :  { %73 = vmatpush1.bf16.msra.mxu0 %v53_v15 }
  0x11   :  { %74 = vmatprep.subr.bf16.mxu0 %v130_v0 }
  0x14   :  { %75 = vmatpush1.bf16.msra.mxu0 %v54_v18 }
  0x15   :  { %76 = vmatprep.subr.bf16.mxu0 %v130_v0 }
  0x18   :  { %77 = vmatpush1.bf16.msra.mxu0 %v55_v21 }
  0x19   :  { %78 = vmatprep.subr.bf16.mxu0 %v130_v0 }
  0x1c   :  { %79 = vmatpush1.bf16.msra.mxu0 %v56_v24 }
  0x1d   :  { %80 = vmatprep.subr.bf16.mxu0 %v130_v0 }
  0x20   :  { %81 = vmatpush1.bf16.msra.mxu0 %v57_v27 }
  0x21   :  { %82 = vmatprep.subr.bf16.mxu0 %v130_v0 }
  0x24   :  { %83 = vmatpush1.bf16.msra.mxu0 %v58_v30 }
  0x25   :  { %84 = vmatprep.subr.bf16.mxu0 %v130_v0 }
  0x28   :  { %85 = vmatpush1.bf16.msra.mxu0 %v59_v33 }
  0x29   :  { %86 = vmatprep.subr.bf16.mxu0 %v130_v0 }
  0x2c   :  { %87 = vmatpush1.bf16.msra.mxu0 %v60_v36 }
  0x2d   :  { %88 = vmatprep.subr.bf16.mxu0 %v130_v0 }
  0x30   :  { %89 = vmatpush1.bf16.msra.mxu0 %v61_v39 }
  0x33   :  { %99 = vmatmul.mubr.bf16.vlgmr.msra.gmra.mrb[0].mxu0 %v24_v41 }
 0x106   :  { %v100_v43 = vpop.f32.mrb[0].mxu0 }
 0x107   :  { %v106_v44 = vadd.f32 %v100_v43, %v21_v42  ;;  %v102_v45 = vpop.f32.mrb[1].mxu0 }
 0x108   :  { %v103_v46 = vpop.f32.mrb[2].mxu0 }
 0x109   :  { %108 = vst.msk [vmem:[#allocation2] sm:$0xff] %vm19_vm0, %v106_v44  ;;  %v104_v47 = vpop.f32.mrb[3].mxu0 }
 0x110   :  { %v112_v49 = vld [vmem:[#allocation2] sm:$0xff] }
 0x111   :  { %v120_v50 = vadd.f32 %v127_v48, %v112_v49 }
 0x113   :  { %121 = vst.msk [vmem:[%s254_s3] sm:$0xff] %vm19_vm0, %v120_v50 }

// kernel: original_clip_forward.38
= control target key start
LH: loop header
LB: loop body
LE: loop exit
PB: predicated region body
PF: predicated region fallthrough
CT: control target
= control target key end

     0   :  { %vm19_vm0 = vcmask 785408   ;;  %v118_v0 = vmov 0.0   ;;  %vm119_vm1 = vmmov 0   ;;  %vm33_vm2 = vcmask 261120   ;;  %s173_s1 = inlined_call_operand.vmem [shape: f32[32,96], index: 1, kind: input, shape index: {}]   ;;  %s174_s0 = inlined_call_operand.vmem [shape: f32[16,32], index: 0, kind: input, shape index: {}]   ;;  %s175_s2 = inlined_call_operand.vmem [shape: f32[1,96], index: 2, kind: input, shape index: {}]   ;;  %s176_s3 = inlined_call_operand.vmem [shape: f32[16,96], index: 3, kind: output, shape index: {}]  }
   0x1   :  { %108 = vmatprep.subr.bf16.mxu0 %v118_v0  ;;  %v27_v1 = vld [vmem:[%s173_s1] sm:$0xff]  ;;  %v28_v2 = vld [vmem:[%s173_s1 + $0x8] sm:$0xff]  ;;  %v29_v3 = vld [vmem:[%s173_s1 + $0x10] sm:$0xff]  ;;  %112 = vmatprep.mubr.msk.bf16.mxu0 %vm119_vm1, %v118_v0  ;;  %20 = vst.msk [vmem:[#allocation2] sm:$0xff] %vm19_vm0, %v118_v0 }
   0x2   :  { %21 = vst.msk [vmem:[#allocation2 + $0x8] sm:$0xff] %vm19_vm0, %v118_v0  ;;  %v31_v4 = vpack.c.bf16 %v28_v2, %v27_v1  ;;  %v30_v5 = vld [vmem:[%s173_s1 + $0x18] sm:$0xff]  ;;  %v24_v7 = vld [vmem:[%s174_s0] sm:$0xff]  ;;  %v25_v8 = vld [vmem:[%s174_s0 + $0x8] sm:$0xff] }
   0x3   :  { %v32_v6 = vpack.c.bf16 %v30_v5, %v29_v3  ;;  %v26_v9 = vpack.c.bf16 %v25_v8, %v24_v7  ;;  %v104_v18 = vld [vmem:[%s175_s2] ss:$0 sm:$0xff] }
   0x4   :  { %109 = vmatpush3.bf16.msra.mxu0 %v31_v4 }
   0x5   :  { %110 = vmatprep.subr.bf16.mxu0 %v118_v0 }
   0x8   :  { %111 = vmatpush3.bf16.msra.mxu0 %v32_v6  ;;  %v22_v10 = vld [vmem:[#allocation2] sm:$0xff] }
   0x9   :  { %v23_v12 = vld [vmem:[#allocation2 + $0x8] sm:$0xff] }
   0xb   :  { %113 = vmatmul.mubr.msk.bf16.vlgmr.msra.gmra.mrb[0].mxu0 %vm33_vm2, %v26_v9 }
  0xde   :  { %v71_v11 = vpop.f32.mrb[0].mxu0 }
  0xdf   :  { %v78_v13 = vadd.f32 %v71_v11, %v22_v10  ;;  %v114_v14 = vpop.f32.mrb[1].mxu0 }
  0xe0   :  { %v74_v15 = vpop.f32.mrb[2].mxu0 }
  0xe1   :  { %81 = vst.msk [vmem:[#allocation2] sm:$0xff] %vm19_vm0, %v78_v13  ;;  %v79_v16 = vadd.f32 %v74_v15, %v23_v12  ;;  %v115_v17 = vpop.f32.mrb[3].mxu0 }
  0xe3   :  { %82 = vst.msk [vmem:[#allocation2 + $0x8] sm:$0xff] %vm19_vm0, %v79_v16 }
  0xe8   :  { %v86_v19 = vld [vmem:[#allocation2] sm:$0xff] }
  0xe9   :  { %v95_v20 = vadd.f32 %v104_v18, %v86_v19 }
  0xea   :  { %v87_v21 = vld [vmem:[#allocation2 + $0x8] sm:$0xff] }
  0xeb   :  { %97 = vst.msk [vmem:[%s176_s3] sm:$0xff] %vm19_vm0, %v95_v20  ;;  %v96_v22 = vadd.f32 %v104_v18, %v87_v21 }
  0xed   :  { %98 = vst.msk [vmem:[%s176_s3 + $0x8] sm:$0xff] %vm19_vm0, %v96_v22 }

// kernel: original_clip_forward.39
= control target key start
LH: loop header
LB: loop body
LE: loop exit
PB: predicated region body
PF: predicated region fallthrough
CT: control target
= control target key end

     0   :  { %s794_s6 = smov 0   ;;  %s895_s0 = inlined_call_operand.vmem [shape: f32[2,8,96], index: 0, kind: input, shape index: {}]   ;;  %s896_s1 = inlined_call_operand.vmem [shape: f32[2,8,32], index: 1, kind: output, shape index: {}]  }
   0x1 LB: > { %s639_s7 = sadd.s32 4294967295, %s766_s6   ;;  %p643_p0 = scmp.ge.s32.totalorder %s766_s6, 1  ;;  %s766_s6 = sphi %s794_s6, %s11_s6  }
   0x2   : > { %p86_p1 = scmp.lt.s32.totalorder %s766_s6, 3 }
   0x4   : > { %p87_p2 = pnand %p643_p0, %p86_p1 }
   0x5   : > { %p104_p3 = scmp.lt.s32.totalorder (!%p87_p2), %s639_s7, 1  ;;  %v768_v0 = vmov (!%p87_p2), 0.0   ;;  %vm769_vm0 = vmmov (!%p87_p2), 0   ;;  %s770_s12 = smov (!%p87_p2), 96   ;;  %vm121_vm1 = vcmask (!%p87_p2), 64512   ;;  %v113_v5 = vlaneseq (!%p87_p2) }
   0x6   : > { %90 = sbr.rel (%p87_p2) target bundleno = 1602 (0x642), region = 24  ;;  %672 = vmatprep.subr.bf16.mxu0 (!%p87_p2), %v768_v0  ;;  %674 = vmatprep.mubr.msk.bf16.mxu0 (!%p87_p2), %vm769_vm0, %v768_v0  ;;  %s771_s13 = smov (!%p87_p2), 64   ;;  %vm187_vm3 = vcmask (!%p87_p2), 1043456   ;;  %vm580_vm4 = vcmask (!%p87_p2), 130048   ;;  %vm582_vm5 = vcmask (!%p87_p2), 195584   ;;  %vm584_vm6 = vcmask (!%p87_p2), 261120  }
   0x7   : > { %678 = vmatprep.subr.bf16.mxu1 (!%p87_p2), %v768_v0  ;;  %680 = vmatprep.mubr.msk.bf16.mxu1 (!%p87_p2), %vm769_vm0, %v768_v0  ;;  %s772_s14 = smov (!%p87_p2), 88   ;;  %v827_v6 = vand.u32 (!%p87_p2), 127, %v113_v5  ;;  %s773_s15 = smov (!%p87_p2), 72  }
   0x8   : > { %s774_s16 = smov (!%p87_p2), 120   ;;  %s775_s17 = smov (!%p87_p2), 80  }
   0x9   : > { %vm115_vm2 = vcmp.ge.s32.totalorder (!%p87_p2), %v827_v6, 5  ;;  %s776_s18 = smov (!%p87_p2), 112   ;;  %s777_s19 = smov (!%p87_p2), 104  }
   0xa   : > { %s778_s20 = smov (!%p87_p2), 56   ;;  %s779_s21 = smov (!%p87_p2), 48  }
   0xb   : > { %s780_s22 = smov (!%p87_p2), 40   ;;  %s781_s23 = smov (!%p87_p2), 8  }
   0xc   : > { %s782_s24 = smov (!%p87_p2), 16   ;;  %s783_s25 = smov (!%p87_p2), 24  }
   0xd   : > { %s898_s7 = smov (!%p104_p3, %s639_s7), 1 }
   0xe   : > { %s644_s8 = sshll.u32 %s898_s7, 3 }
   0xf   : > { %s107_s11 = scalar_lea.vmem %s895_s0, %s644_s8  ;;  %s111_s28 = scalar_lea.vmem %s896_s1, %s644_s8 }
  0x10   : > { %v116_v1 = vld [vmem:[%s107_s11] sm:$0xff] }
  0x11   : > { %v816_v2 = vpack.c.bf16 %v116_v1, %v116_v1 }
  0x13   : > { %119 = vrot.lane.b32.xlu0 %v816_v2, %s770_s12  ;;  %182 = vrot.lane.b32.xlu1 %v816_v2, %s771_s13 }
  0x17   : > { %233 = vrot.lane.b32.xlu1 %v816_v2, %s772_s14 }
  0x85   : > { %v120_v3 = vpop.permute.xlu0 %119  ;;  %v183_v14 = vpop.permute.xlu1 %182 }
  0x86   : > { %v126_v4 = vsel %vm121_vm1, %v120_v3, 0  ;;  %v189_v15 = vsel %vm187_vm3, %v183_v14, 0 }
  0x87   : > { %673 = vmatpush3.bf16.xpose.msra.mxu0 %v126_v4  ;;  %679 = vmatpush3.bf16.msra.mxu1 %v189_v15 }
  0x88   : > { %690 = vmatprep.subr.bf16.mxu0 %v768_v0  ;;  %684 = vmatprep.subr.bf16.mxu1 %v768_v0 }
  0x89   : > { %v234_v21 = vpop.permute.xlu1 %233 }
  0x8a   : > { %v239_v27 = vsel %vm121_vm1, %v234_v21, 0 }
  0x8e   : > { %675 = vmatmul.mubr.msk.bf16.vlgmr.msra.gmra.mrb[0].mxu0 %vm121_vm1, %v816_v2 }
  0x8f   : > { %692 = vmatprep.mubr.msk.bf16.mxu0 %vm769_vm0, %v768_v0 }
 0x161   : > { %v162_v7 = vpop.f32.mrb[0].mxu0 }
 0x162   : > { %v168_v8 = vmul.f32 0.35355338, %v162_v7  ;;  %v676_v9 = vpop.f32.mrb[1].mxu0 }
 0x163   : > { %v165_v10 = vpop.f32.mrb[2].mxu0 }
 0x164   : > { %v677_v11 = vpop.f32.mrb[3].mxu0  ;;  %v169_v12 = vsel %vm115_vm2, -1e+30, %v168_v8 }
 0x165   : > { %v170_v13 = vsel %vm121_vm1, %v169_v12, -inf }
 0x166   : > { %171 = vmax.xlane.f32.xlu0 %v170_v13 }
 0x17c   : > { %457 = vrot.lane.b32.xlu0 %v816_v2, %s773_s15 }
 0x1f3   : > { %v172_v16 = vpop.xlane.xlu0 %171 }
 0x1f4   : > { %v173_v17 = vsub.f32 %v169_v12, %v172_v16 }
 0x1f6   : > { %v174_v18 = vmul.f32 1.442695, %v173_v17 }
 0x1f7   : > { %v458_v30 = vpop.permute.xlu0 %457 }
 0x1f8   : > { %744 = vpow2.f32 %v174_v18  ;;  %v463_v32 = vsel %vm121_vm1, %v458_v30, 0 }
 0x202   : > { %v745_v19 = vpop.eup %744 }
 0x203   : > { %v176_v20 = vsel %vm121_vm1, %v745_v19, 0.0 }
 0x204   : > { %177 = vadd.xlane.f32.xlu1 %v176_v20 }
 0x215   : > { %231 = vrot.lane.b32.xlu1 %v816_v2, %s774_s16 }
 0x219   : > { %345 = vrot.lane.b32.xlu1 %v816_v2, %s775_s17 }
 0x21d   : > { %343 = vrot.lane.b32.xlu1 %v816_v2, %s776_s18 }
 0x221   : > { %455 = vrot.lane.b32.xlu1 %v816_v2, %s777_s19 }
 0x291   : > { %v178_v22 = vpop.xlane.xlu1 %177 }
 0x292   : > { %746 = vrcp.f32 %v178_v22 }
 0x295   : > { %v232_v25 = vpop.permute.xlu1 %231 }
 0x299   : > { %v346_v28 = vpop.permute.xlu1 %345 }
 0x29a   : > { %v351_v29 = vsel %vm121_vm1, %v346_v28, 0 }
 0x29c   : > { %v747_v23 = vpop.eup %746 }
 0x29d   : > { %v180_v24 = vmul.f32 %v747_v23, %v745_v19  ;;  %v344_v31 = vpop.permute.xlu1 %343 }
 0x29f   : > { %v181_v26 = vpack.c.bf16 %v180_v24, %v180_v24 }
 0x2a1   : > { %681 = vmatmul.mubr.msk.bf16.vlgmr.msra.gmra.mrb[0].mxu1 %vm121_vm1, %v181_v26  ;;  %v456_v33 = vpop.permute.xlu1 %455 }
 0x2a2   : > { %685 = vmatpush3.bf16.xpose.msra.mxu1 %v239_v27  ;;  %686 = vmatprep.mubr.msk.bf16.mxu1 %vm769_vm0, %v768_v0 }
 0x2a3   : > { %696 = vmatprep.subr.bf16.mxu1 %v768_v0 }
 0x2a9   : > { %687 = vmatmul.mubr.msk.bf16.vlgmr.msra.gmra.mrb[4].mxu1 %vm121_vm1, %v232_v25 }
 0x2aa   : > { %697 = vmatpush3.bf16.xpose.msra.mxu1 %v351_v29  ;;  %698 = vmatprep.mubr.msk.bf16.mxu1 %vm769_vm0, %v768_v0 }
 0x2ab   : > { %708 = vmatprep.subr.bf16.mxu1 %v768_v0 }
 0x2b1   : > { %699 = vmatmul.mubr.msk.bf16.vlgmr.msra.gmra.mrb[8].mxu1 %vm121_vm1, %v344_v31 }
 0x2b2   : > { %709 = vmatpush3.bf16.xpose.msra.mxu1 %v463_v32  ;;  %710 = vmatprep.mubr.msk.bf16.mxu1 %vm769_vm0, %v768_v0 }
 0x2b9   : > { %711 = vmatmul.mubr.msk.bf16.vlgmr.msra.gmra.mrb[12].mxu1 %vm121_vm1, %v456_v33 }
 0x374   : > { %v856_v34 = vpop.f32.mrb[0].mxu1 }
 0x375   : > { %v682_v35 = vpop.f32.mrb[1].mxu1 }
 0x376   : > { %v228_v36 = vpop.f32.mrb[2].mxu1 }
 0x377   : > { %v683_v37 = vpop.f32.mrb[3].mxu1 }
 0x37c   : > { %v275_v38 = vpop.f32.mrb[4].mxu1 }
 0x37d   : > { %v281_v39 = vmul.f32 0.35355338, %v275_v38  ;;  %v688_v40 = vpop.f32.mrb[5].mxu1 }
 0x37e   : > { %v278_v41 = vpop.f32.mrb[6].mxu1 }
 0x37f   : > { %v689_v42 = vpop.f32.mrb[7].mxu1  ;;  %v282_v43 = vsel %vm115_vm2, -1e+30, %v281_v39 }
 0x380   : > { %v283_v44 = vsel %vm121_vm1, %v282_v43, -inf }
 0x381   : > { %284 = vmax.xlane.f32.xlu1 %v283_v44 }
 0x384   : > { %v387_v45 = vpop.f32.mrb[8].mxu1 }
 0x385   : > { %v393_v46 = vmul.f32 0.35355338, %v387_v45  ;;  %v700_v47 = vpop.f32.mrb[9].mxu1 }
 0x386   : > { %v390_v48 = vpop.f32.mrb[10].mxu1 }
 0x387   : > { %v394_v49 = vsel %vm115_vm2, -1e+30, %v393_v46  ;;  %v701_v50 = vpop.f32.mrb[11].mxu1 }
 0x388   : > { %v395_v51 = vsel %vm121_vm1, %v394_v49, -inf }
 0x389   : > { %396 = vmax.xlane.f32.xlu0 %v395_v51 }
 0x38c   : > { %v499_v52 = vpop.f32.mrb[12].mxu1 }
 0x38d   : > { %v505_v53 = vmul.f32 0.35355338, %v499_v52  ;;  %v712_v54 = vpop.f32.mrb[13].mxu1 }
 0x38e   : > { %v502_v55 = vpop.f32.mrb[14].mxu1 }
 0x38f   : > { %v506_v56 = vsel %vm115_vm2, -1e+30, %v505_v53  ;;  %v713_v57 = vpop.f32.mrb[15].mxu1 }
 0x390   : > { %v507_v58 = vsel %vm121_vm1, %v506_v56, -inf }
 0x391   : > { %508 = vmax.xlane.f32.xlu1 %v507_v58 }
 0x40e   : > { %v285_v59 = vpop.xlane.xlu1 %284 }
 0x40f   : > { %v286_v60 = vsub.f32 %v282_v43, %v285_v59 }
 0x411   : > { %v287_v61 = vmul.f32 1.442695, %v286_v60 }
 0x413   : > { %748 = vpow2.f32 %v287_v61 }
 0x416   : > { %v397_v7 = vpop.xlane.xlu0 %396 }
 0x417   : > { %v398_v8 = vsub.f32 %v394_v49, %v397_v7 }
 0x419   : > { %v399_v9 = vmul.f32 1.442695, %v398_v8 }
 0x41d   : > { %v749_v62 = vpop.eup %748 }
 0x41e   : > { %v509_v63 = vpop.xlane.xlu1 %508  ;;  %v289_v1 = vsel %vm121_vm1, %v749_v62, 0.0 }
 0x41f   : > { %v510_v3 = vsub.f32 %v506_v56, %v509_v63  ;;  %290 = vadd.xlane.f32.xlu1 %v289_v1 }
 0x421   : > { %v511_v4 = vmul.f32 1.442695, %v510_v3 }
 0x423   : > { %750 = vpow2.f32 %v511_v4 }
 0x424   : > { %752 = vpow2.f32 %v399_v9 }
 0x42d   : > { %v751_v5 = vpop.eup %750 }
 0x42e   : > { %v513_v6 = vsel %vm121_vm1, %v751_v5, 0.0  ;;  %v753_v10 = vpop.eup %752 }
 0x42f   : > { %514 = vadd.xlane.f32.xlu0 %v513_v6  ;;  %v401_v11 = vsel %vm121_vm1, %v753_v10, 0.0 }
 0x430   : > { %295 = vrot.lane.b32.xlu1 %v816_v2, %s778_s20 }
 0x445   : > { %407 = vrot.lane.b32.xlu0 %v816_v2, %s779_s21 }
 0x454   : > { %402 = vadd.xlane.f32.xlu1 %v401_v11 }
 0x465   : > { %519 = vrot.lane.b32.xlu1 %v816_v2, %s780_s22 }
 0x4ac   : > { %v291_v12 = vpop.xlane.xlu1 %290 }
 0x4ad   : > { %754 = vrcp.f32 %v291_v12 }
 0x4b0   : > { %v296_v13 = vpop.permute.xlu1 %295 }
 0x4b1   : > { %v301_v14 = vsel %vm187_vm3, %v296_v13, 0 }
 0x4b2   : > { %691 = vmatpush3.bf16.msra.mxu0 %v301_v14 }
 0x4b3   : > { %702 = vmatprep.subr.bf16.mxu0 %v768_v0 }
 0x4b7   : > { %v755_v15 = vpop.eup %754 }
 0x4b8   : > { %v293_v16 = vmul.f32 %v755_v15, %v749_v62 }
 0x4ba   : > { %v294_v17 = vpack.c.bf16 %v293_v16, %v293_v16 }
 0x4bc   : > { %693 = vmatmul.mubr.msk.bf16.vlgmr.msra.gmra.mrb[4].mxu0 %vm121_vm1, %v294_v17  ;;  %v515_v18 = vpop.xlane.xlu0 %514 }
 0x4bd   : > { %704 = vmatprep.mubr.msk.bf16.mxu0 %vm769_vm0, %v768_v0 }
 0x4c0   : > { %v408_v19 = vpop.permute.xlu0 %407 }
 0x4c1   : > { %v413_v2 = vsel %vm187_vm3, %v408_v19, 0 }
 0x4c2   : > { %703 = vmatpush3.bf16.msra.mxu0 %v413_v2 }
 0x4c3   : > { %714 = vmatprep.subr.bf16.mxu0 %v768_v0 }
 0x4e1   : > { %v403_v20 = vpop.xlane.xlu1 %402 }
 0x4e2   : > { %756 = vrcp.f32 %v403_v20 }
 0x4e3   : > { %758 = vrcp.f32 %v515_v18 }
 0x4e5   : > { %v520_v22 = vpop.permute.xlu1 %519 }
 0x4e6   : > { %v525_v24 = vsel %vm187_vm3, %v520_v22, 0 }
 0x4ec   : > { %v757_v21 = vpop.eup %756 }
 0x4ed   : > { %v405_v23 = vmul.f32 %v757_v21, %v753_v10  ;;  %v759_v26 = vpop.eup %758 }
 0x4ee   : > { %v517_v27 = vmul.f32 %v759_v26, %v751_v5 }
 0x4ef   : > { %v406_v25 = vpack.c.bf16 %v405_v23, %v405_v23 }
 0x4f0   : > { %v518_v28 = vpack.c.bf16 %v517_v27, %v517_v27 }
 0x4f1   : > { %705 = vmatmul.mubr.msk.bf16.vlgmr.msra.gmra.mrb[8].mxu0 %vm121_vm1, %v406_v25 }
 0x4f2   : > { %715 = vmatpush3.bf16.msra.mxu0 %v525_v24  ;;  %716 = vmatprep.mubr.msk.bf16.mxu0 %vm769_vm0, %v768_v0 }
 0x4f9   : > { %717 = vmatmul.mubr.msk.bf16.vlgmr.msra.gmra.mrb[12].mxu0 %vm121_vm1, %v518_v28 }
 0x58f   : > { %v337_v29 = vpop.f32.mrb[4].mxu0 }
 0x590   : > { %568 = vrot.lane.b32.xlu1 %v337_v29, %s781_s23  ;;  %v694_v30 = vpop.f32.mrb[5].mxu0 }
 0x591   : > { %v340_v31 = vpop.f32.mrb[6].mxu0 }
 0x592   : > { %v695_v32 = vpop.f32.mrb[7].mxu0 }
 0x5c4   : > { %v449_v33 = vpop.f32.mrb[8].mxu0 }
 0x5c5   : > { %572 = vrot.lane.b32.xlu0 %v449_v33, %s782_s24  ;;  %v706_v35 = vpop.f32.mrb[9].mxu0 }
 0x5c6   : > { %v452_v36 = vpop.f32.mrb[10].mxu0 }
 0x5c7   : > { %v707_v37 = vpop.f32.mrb[11].mxu0 }
 0x5cc   : > { %v561_v38 = vpop.f32.mrb[12].mxu0 }
 0x5cd   : > { %576 = vrot.lane.b32.xlu1 %v561_v38, %s783_s25  ;;  %v718_v0 = vpop.f32.mrb[13].mxu0 }
 0x5ce   : > { %v564_v39 = vpop.f32.mrb[14].mxu0 }
 0x5cf   : > { %v719_v40 = vpop.f32.mrb[15].mxu0 }
 0x602   : > { %v569_v41 = vpop.permute.xlu1 %568 }
 0x603   : > { %v579_v43 = vsel %vm121_vm1, %v856_v34, %v569_v41 }
 0x637   : > { %v573_v42 = vpop.permute.xlu0 %572 }
 0x638   : > { %v581_v44 = vsel %vm580_vm4, %v579_v43, %v573_v42 }
 0x63f   : > { %v577_v45 = vpop.permute.xlu1 %576 }
 0x640   : > { %v583_v46 = vsel %vm582_vm5, %v581_v44, %v577_v45 }
 0x641   : > { %585 = vst.msk [vmem:[%s111_s28] sm:$0xff] %vm584_vm6, %v583_v46 }
 0x642 PF: > { %s11_s6 = sadd.s32 1, %s766_s6  }
 0x643   : > { %p8_p4 = scmp.ge.s32.totalorder %s11_s6, 4  }
 0x645   :  { %10 = sbr.rel (!%p8_p4) target bundleno = 1 (0x1), region = 54 }

// kernel: original_clip_forward.40
= control target key start
LH: loop header
LB: loop body
LE: loop exit
PB: predicated region body
PF: predicated region fallthrough
CT: control target
= control target key end

     0   :  { %vm22_vm0 = vcmask 261120   ;;  %v124_v0 = vmov 0.0   ;;  %vm125_vm1 = vmmov 0   ;;  %s191_s1 = inlined_call_operand.vmem [shape: f32[32,32], index: 1, kind: input, shape index: {}]   ;;  %s192_s0 = inlined_call_operand.vmem [shape: f32[16,32], index: 0, kind: input, shape index: {}]   ;;  %s193_s2 = inlined_call_operand.vmem [shape: f32[1,32], index: 2, kind: input, shape index: {}]   ;;  %s194_s3 = inlined_call_operand.vmem [shape: f32[16,32], index: 3, kind: input, shape index: {}]   ;;  %s195_s4 = inlined_call_operand.vmem [shape: f32[16,32], index: 4, kind: output, shape index: {}]  }
   0x1   :  { %114 = vmatprep.subr.bf16.mxu0 %v124_v0  ;;  %v30_v1 = vld [vmem:[%s191_s1] sm:$0xff]  ;;  %v31_v2 = vld [vmem:[%s191_s1 + $0x8] sm:$0xff]  ;;  %v32_v3 = vld [vmem:[%s191_s1 + $0x10] sm:$0xff]  ;;  %118 = vmatprep.mubr.msk.bf16.mxu0 %vm125_vm1, %v124_v0  ;;  %23 = vst.msk [vmem:[#allocation2] sm:$0xff] %vm22_vm0, %v124_v0 }
   0x2   :  { %24 = vst.msk [vmem:[#allocation2 + $0x8] sm:$0xff] %vm22_vm0, %v124_v0  ;;  %v34_v4 = vpack.c.bf16 %v31_v2, %v30_v1  ;;  %v33_v5 = vld [vmem:[%s191_s1 + $0x18] sm:$0xff]  ;;  %v27_v7 = vld [vmem:[%s192_s0] sm:$0xff]  ;;  %v28_v8 = vld [vmem:[%s192_s0 + $0x8] sm:$0xff] }
   0x3   :  { %v35_v6 = vpack.c.bf16 %v33_v5, %v32_v3  ;;  %v29_v9 = vpack.c.bf16 %v28_v8, %v27_v7  ;;  %v110_v18 = vld [vmem:[%s193_s2] ss:$0 sm:$0xff]  ;;  %v100_v23 = vld [vmem:[%s194_s3 + $0x8] sm:$0xff] }
   0x4   :  { %115 = vmatpush3.bf16.msra.mxu0 %v34_v4  ;;  %v99_v20 = vld [vmem:[%s194_s3] sm:$0xff] }
   0x5   :  { %116 = vmatprep.subr.bf16.mxu0 %v124_v0 }
   0x8   :  { %117 = vmatpush3.bf16.msra.mxu0 %v35_v6  ;;  %v25_v10 = vld [vmem:[#allocation2] sm:$0xff] }
   0x9   :  { %v26_v12 = vld [vmem:[#allocation2 + $0x8] sm:$0xff] }
   0xb   :  { %119 = vmatmul.mubr.msk.bf16.vlgmr.msra.gmra.mrb[0].mxu0 %vm22_vm0, %v29_v9 }
  0xde   :  { %v74_v11 = vpop.f32.mrb[0].mxu0 }
  0xdf   :  { %v81_v13 = vadd.f32 %v74_v11, %v25_v10  ;;  %v120_v14 = vpop.f32.mrb[1].mxu0 }
  0xe0   :  { %v77_v15 = vpop.f32.mrb[2].mxu0 }
  0xe1   :  { %83 = vst.msk [vmem:[#allocation2] sm:$0xff] %vm22_vm0, %v81_v13  ;;  %v82_v16 = vadd.f32 %v77_v15, %v26_v12  ;;  %v121_v17 = vpop.f32.mrb[3].mxu0 }
  0xe3   :  { %84 = vst.msk [vmem:[#allocation2 + $0x8] sm:$0xff] %vm22_vm0, %v82_v16 }
  0xe8   :  { %v88_v19 = vld [vmem:[#allocation2] sm:$0xff] }
  0xe9   :  { %v97_v21 = vadd.f32 %v110_v18, %v88_v19 }
  0xea   :  { %v89_v22 = vld [vmem:[#allocation2 + $0x8] sm:$0xff] }
  0xeb   :  { %v101_v24 = vadd.f32 %v99_v20, %v97_v21  ;;  %v98_v25 = vadd.f32 %v110_v18, %v89_v22 }
  0xed   :  { %103 = vst.msk [vmem:[%s195_s4] sm:$0xff] %vm22_vm0, %v101_v24  ;;  %v102_v26 = vadd.f32 %v100_v23, %v98_v25 }
  0xef   :  { %104 = vst.msk [vmem:[%s195_s4 + $0x8] sm:$0xff] %vm22_vm0, %v102_v26 }

// kernel: original_clip_forward.42
= control target key start
LH: loop header
LB: loop body
LE: loop exit
PB: predicated region body
PF: predicated region fallthrough
CT: control target
= control target key end

     0   :  { %v142_v0 = vmov 0.0   ;;  %vm143_vm0 = vmmov 0   ;;  %vm32_vm1 = vcmask 261120   ;;  %s191_s1 = inlined_call_operand.vmem [shape: f32[32,128], index: 1, kind: input, shape index: {}]   ;;  %s192_s0 = inlined_call_operand.vmem [shape: f32[16,32], index: 0, kind: input, shape index: {}]   ;;  %s193_s2 = inlined_call_operand.vmem [shape: f32[1,128], index: 2, kind: input, shape index: {}]   ;;  %s194_s3 = inlined_call_operand.vmem [shape: f32[16,128], index: 3, kind: output, shape index: {}]  }
   0x1   :  { %124 = vmatprep.subr.bf16.mxu0 %v142_v0  ;;  %v26_v1 = vld [vmem:[%s191_s1] sm:$0xff]  ;;  %v27_v2 = vld [vmem:[%s191_s1 + $0x8] sm:$0xff]  ;;  %v28_v3 = vld [vmem:[%s191_s1 + $0x10] sm:$0xff]  ;;  %128 = vmatprep.mubr.msk.bf16.mxu0 %vm143_vm0, %v142_v0 }
   0x2   :  { %v30_v4 = vpack.c.bf16 %v27_v2, %v26_v1  ;;  %v29_v5 = vld [vmem:[%s191_s1 + $0x18] sm:$0xff]  ;;  %v23_v7 = vld [vmem:[%s192_s0] sm:$0xff]  ;;  %v24_v8 = vld [vmem:[%s192_s0 + $0x8] sm:$0xff] }
   0x3   :  { %v31_v6 = vpack.c.bf16 %v29_v5, %v28_v3  ;;  %v25_v9 = vpack.c.bf16 %v24_v8, %v23_v7  ;;  %v118_v10 = vld [vmem:[%s193_s2] ss:$0 sm:$0xff] }
   0x4   :  { %125 = vmatpush3.bf16.msra.mxu0 %v30_v4 }
   0x5   :  { %126 = vmatprep.subr.bf16.mxu0 %v142_v0 }
   0x8   :  { %127 = vmatpush3.bf16.msra.mxu0 %v31_v6 }
   0xb   :  { %129 = vmatmul.mubr.msk.bf16.vlgmr.msra.gmra.mrb[0].mxu0 %vm32_vm1, %v25_v9 }
  0xde   :  { %v70_v11 = vpop.f32.mrb[0].mxu0 }
  0xdf   :  { %v93_v12 = vadd.f32 %v118_v10, %v70_v11  ;;  %v130_v13 = vpop.f32.mrb[1].mxu0 }
  0xe0   :  { %v73_v14 = vpop.f32.mrb[2].mxu0 }
  0xe1   :  { %v119_v15 = vmul.f32 -1.702, %v93_v12  ;;  %v94_v16 = vadd.f32 %v118_v10, %v73_v14  ;;  %v131_v17 = vpop.f32.mrb[3].mxu0 }
  0xe3   :  { %v99_v18 = vmul.f32 1.442695, %v119_v15  ;;  %v120_v19 = vmul.f32 -1.702, %v94_v16 }
  0xe5   :  { %134 = vpow2.f32 %v99_v18  ;;  %v101_v20 = vmul.f32 1.442695, %v120_v19 }
  0xe7   :  { %136 = vpow2.f32 %v101_v20 }
  0xef   :  { %v135_v21 = vpop.eup %134 }
  0xf0   :  { %v103_v22 = vadd.f32 1.0, %v135_v21 }
  0xf1   :  { %v137_v23 = vpop.eup %136 }
  0xf2   :  { %138 = vrcp.f32 %v103_v22  ;;  %v104_v24 = vadd.f32 1.0, %v137_v23 }
  0xf4   :  { %140 = vrcp.f32 %v104_v24 }
  0xfc   :  { %v139_v25 = vpop.eup %138 }
  0xfd   :  { %v109_v26 = vmul.f32 %v139_v25, %v93_v12 }
  0xfe   :  { %v141_v27 = vpop.eup %140 }
  0xff   :  { %111 = vst [vmem:[%s194_s3] sm:$0xff] %v109_v26  ;;  %v110_v28 = vmul.f32 %v141_v27, %v94_v16 }
 0x101   :  { %112 = vst [vmem:[%s194_s3 + $0x8] sm:$0xff] %v110_v28 }

// kernel: original_clip_forward.43
= control target key start
LH: loop header
LB: loop body
LE: loop exit
PB: predicated region body
PF: predicated region fallthrough
CT: control target
= control target key end

     0   :  { %vm22_vm0 = vcmask 261120   ;;  %v156_v0 = vmov 0.0   ;;  %vm157_vm1 = vmmov 0   ;;  %s258_s1 = inlined_call_operand.vmem [shape: f32[128,32], index: 1, kind: input, shape index: {}]   ;;  %s259_s0 = inlined_call_operand.vmem [shape: f32[16,128], index: 0, kind: input, shape index: {}]   ;;  %s260_s2 = inlined_call_operand.vmem [shape: f32[1,32], index: 2, kind: input, shape index: {}]   ;;  %s261_s3 = inlined_call_operand.vmem [shape: f32[16,32], index: 3, kind: input, shape index: {}]   ;;  %s262_s4 = inlined_call_operand.vmem [shape: f32[16,32], index: 4, kind: output, shape index: {}]  }
   0x1   :  { %134 = vmatprep.subr.bf16.mxu0 %v156_v0  ;;  %v30_v1 = vld [vmem:[%s258_s1] sm:$0xff]  ;;  %v31_v2 = vld [vmem:[%s258_s1 + $0x8] sm:$0xff]  ;;  %v32_v3 = vld [vmem:[%s258_s1 + $0x10] sm:$0xff]  ;;  %150 = vmatprep.mubr.msk.bf16.mxu0 %vm157_vm1, %v156_v0  ;;  %23 = vst.msk [vmem:[#allocation2] sm:$0xff] %vm22_vm0, %v156_v0 }
   0x2   :  { %24 = vst.msk [vmem:[#allocation2 + $0x8] sm:$0xff] %vm22_vm0, %v156_v0  ;;  %v46_v4 = vpack.c.bf16 %v31_v2, %v30_v1  ;;  %v33_v5 = vld [vmem:[%s258_s1 + $0x18] sm:$0xff]  ;;  %v34_v7 = vld [vmem:[%s258_s1 + $0x20] sm:$0xff]  ;;  %v35_v8 = vld [vmem:[%s258_s1 + $0x28] sm:$0xff] }
   0x3   :  { %v47_v6 = vpack.c.bf16 %v33_v5, %v32_v3  ;;  %v48_v9 = vpack.c.bf16 %v35_v8, %v34_v7  ;;  %v36_v10 = vld [vmem:[%s258_s1 + $0x30] sm:$0xff]  ;;  %v37_v11 = vld [vmem:[%s258_s1 + $0x38] sm:$0xff]  ;;  %v38_v13 = vld [vmem:[%s258_s1 + $0x40] sm:$0xff] }
   0x4   :  { %135 = vmatpush3.bf16.msra.mxu0 %v46_v4  ;;  %v49_v12 = vpack.c.bf16 %v37_v11, %v36_v10  ;;  %v39_v14 = vld [vmem:[%s258_s1 + $0x48] sm:$0xff]  ;;  %v40_v16 = vld [vmem:[%s258_s1 + $0x50] sm:$0xff]  ;;  %v41_v17 = vld [vmem:[%s258_s1 + $0x58] sm:$0xff] }
   0x5   :  { %136 = vmatprep.subr.bf16.mxu0 %v156_v0  ;;  %v50_v15 = vpack.c.bf16 %v39_v14, %v38_v13  ;;  %v51_v18 = vpack.c.bf16 %v41_v17, %v40_v16  ;;  %v42_v19 = vld [vmem:[%s258_s1 + $0x60] sm:$0xff]  ;;  %v43_v20 = vld [vmem:[%s258_s1 + $0x68] sm:$0xff]  ;;  %v44_v22 = vld [vmem:[%s258_s1 + $0x70] sm:$0xff] }
   0x6   :  { %v52_v21 = vpack.c.bf16 %v43_v20, %v42_v19  ;;  %v45_v23 = vld [vmem:[%s258_s1 + $0x78] sm:$0xff]  ;;  %v27_v25 = vld [vmem:[%s259_s0] sm:$0xff]  ;;  %v28_v26 = vld [vmem:[%s259_s0 + $0x8] sm:$0xff] }
   0x7   :  { %v53_v24 = vpack.c.bf16 %v45_v23, %v44_v22  ;;  %v29_v27 = vpack.c.bf16 %v28_v26, %v27_v25  ;;  %v124_v36 = vld [vmem:[%s260_s2] ss:$0 sm:$0xff]  ;;  %v115_v40 = vld [vmem:[%s261_s3 + $0x8] sm:$0xff] }
   0x8   :  { %137 = vmatpush3.bf16.msra.mxu0 %v47_v6  ;;  %v25_v28 = vld [vmem:[#allocation2] sm:$0xff] }
   0x9   :  { %138 = vmatprep.subr.bf16.mxu0 %v156_v0  ;;  %v26_v30 = vld [vmem:[#allocation2 + $0x8] sm:$0xff]  ;;  %v114_v38 = vld [vmem:[%s261_s3] sm:$0xff] }
   0xc   :  { %139 = vmatpush3.bf16.msra.mxu0 %v48_v9 }
   0xd   :  { %140 = vmatprep.subr.bf16.mxu0 %v156_v0 }
  0x10   :  { %141 = vmatpush3.bf16.msra.mxu0 %v49_v12 }
  0x11   :  { %142 = vmatprep.subr.bf16.mxu0 %v156_v0 }
  0x14   :  { %143 = vmatpush3.bf16.msra.mxu0 %v50_v15 }
  0x15   :  { %144 = vmatprep.subr.bf16.mxu0 %v156_v0 }
  0x18   :  { %145 = vmatpush3.bf16.msra.mxu0 %v51_v18 }
  0x19   :  { %146 = vmatprep.subr.bf16.mxu0 %v156_v0 }
  0x1c   :  { %147 = vmatpush3.bf16.msra.mxu0 %v52_v21 }
  0x1d   :  { %148 = vmatprep.subr.bf16.mxu0 %v156_v0 }
  0x20   :  { %149 = vmatpush3.bf16.msra.mxu0 %v53_v24 }
  0x23   :  { %151 = vmatmul.mubr.bf16.vlgmr.msra.gmra.mrb[0].mxu0 %v29_v27 }
  0xf6   :  { %v88_v29 = vpop.f32.mrb[0].mxu0 }
  0xf7   :  { %v95_v31 = vadd.f32 %v88_v29, %v25_v28  ;;  %v152_v32 = vpop.f32.mrb[1].mxu0 }
  0xf8   :  { %v91_v33 = vpop.f32.mrb[2].mxu0 }
  0xf9   :  { %98 = vst.msk [vmem:[#allocation2] sm:$0xff] %vm22_vm0, %v95_v31  ;;  %v96_v34 = vadd.f32 %v91_v33, %v26_v30  ;;  %v153_v35 = vpop.f32.mrb[3].mxu0 }
  0xfb   :  { %99 = vst.msk [vmem:[#allocation2 + $0x8] sm:$0xff] %vm22_vm0, %v96_v34 }
 0x100   :  { %v103_v37 = vld [vmem:[#allocation2] sm:$0xff] }
 0x101   :  { %v112_v39 = vadd.f32 %v124_v36, %v103_v37 }
 0x102   :  { %v104_v41 = vld [vmem:[#allocation2 + $0x8] sm:$0xff] }
 0x103   :  { %v116_v42 = vadd.f32 %v114_v38, %v112_v39  ;;  %v113_v43 = vadd.f32 %v124_v36, %v104_v41 }
 0x105   :  { %118 = vst.msk [vmem:[%s262_s4] sm:$0xff] %vm22_vm0, %v116_v42  ;;  %v117_v44 = vadd.f32 %v115_v40, %v113_v43 }
 0x107   :  { %119 = vst.msk [vmem:[%s262_s4 + $0x8] sm:$0xff] %vm22_vm0, %v117_v44 }

// kernel: original_clip_forward.51
= control target key start
LH: loop header
LB: loop body
LE: loop exit
PB: predicated region body
PF: predicated region fallthrough
CT: control target
= control target key end

     0   :  { %vm15_vm0 = vcmask 254976   ;;  %s90_s0 = inlined_call_operand.vmem [shape: f32[2,32], index: 0, kind: input, shape index: {}]   ;;  %s91_s1 = inlined_call_operand.vmem [shape: f32[1,32], index: 1, kind: input, shape index: {}]   ;;  %s92_s2 = inlined_call_operand.vmem [shape: f32[1,32], index: 2, kind: input, shape index: {}]   ;;  %s93_s3 = inlined_call_operand.vmem [shape: f32[2,32], index: 3, kind: output, shape index: {}]  }
   0x1   :  { %v14_v0 = vld [vmem:[%s90_s0] sm:$0x3] }
   0x2   :  { %v16_v1 = vsel %vm15_vm0, %v14_v0, 0.0  ;;  %v51_v11 = vld [vmem:[%s91_s1] ss:$0 sm:$0xff] }
   0x3   :  { %17 = vadd.xlane.f32.xlu0 %v16_v1  ;;  %v52_v13 = vld [vmem:[%s92_s2] ss:$0 sm:$0xff] }
  0x90   :  { %v18_v2 = vpop.xlane.xlu0 %17 }
  0x91   :  { %v20_v3 = vmul.f32 0.03125, %v18_v2 }
  0x93   :  { %v21_v4 = vsub.f32 %v14_v0, %v20_v3 }
  0x95   :  { %v22_v5 = vmul.f32 %v21_v4, %v21_v4 }
  0x97   :  { %v23_v6 = vsel %vm15_vm0, %v22_v5, 0.0 }
  0x98   :  { %24 = vadd.xlane.f32.xlu0 %v23_v6 }
 0x125   :  { %v25_v7 = vpop.xlane.xlu0 %24 }
 0x126   :  { %v26_v8 = vmul.f32 0.03125, %v25_v7 }
 0x128   :  { %v27_v9 = vadd.f32 1e-05, %v26_v8 }
 0x12a   :  { %53 = vrsqrt.f32 %v27_v9 }
 0x134   :  { %v54_v10 = vpop.eup %53 }
 0x135   :  { %v29_v12 = vmul.f32 %v54_v10, %v21_v4 }
 0x137   :  { %v37_v14 = vmul.f32 %v51_v11, %v29_v12 }
 0x139   :  { %v45_v15 = vadd.f32 %v52_v13, %v37_v14 }
 0x13b   :  { %46 = vst.msk [vmem:[%s93_s3] sm:$0x3] %vm15_vm0, %v45_v15 }

// kernel: original_clip_forward.52
= control target key start
LH: loop header
LB: loop body
LE: loop exit
PB: predicated region body
PF: predicated region fallthrough
CT: control target
= control target key end

     0   :  { %vm19_vm0 = vcmask 254976   ;;  %v109_v0 = vmov 0.0   ;;  %vm110_vm1 = vmmov 0   ;;  %vm30_vm2 = vcmask 261120   ;;  %s155_s1 = inlined_call_operand.vmem [shape: f32[32,32], index: 1, kind: input, shape index: {}]   ;;  %s156_s0 = inlined_call_operand.vmem [shape: f32[2,32], index: 0, kind: input, shape index: {}]   ;;  %s157_s2 = inlined_call_operand.vmem [shape: f32[1,32], index: 2, kind: input, shape index: {}]   ;;  %s158_s3 = inlined_call_operand.vmem [shape: f32[2,32], index: 3, kind: output, shape index: {}]  }
   0x1   :  { %20 = vst.msk [vmem:[#allocation2] sm:$0x3] %vm19_vm0, %v109_v0  ;;  %99 = vmatprep.subr.bf16.mxu0 %v109_v0  ;;  %v24_v1 = vld [vmem:[%s155_s1] sm:$0xff]  ;;  %v25_v2 = vld [vmem:[%s155_s1 + $0x8] sm:$0xff]  ;;  %v26_v3 = vld [vmem:[%s155_s1 + $0x10] sm:$0xff]  ;;  %103 = vmatprep.mubr.msk.bf16.mxu0 %vm110_vm1, %v109_v0 }
   0x2   :  { %v28_v4 = vpack.c.bf16 %v25_v2, %v24_v1  ;;  %v27_v5 = vld [vmem:[%s155_s1 + $0x18] sm:$0xff]  ;;  %v22_v7 = vld [vmem:[%s156_s0] sm:$0x3] }
   0x3   :  { %v29_v6 = vpack.c.bf16 %v27_v5, %v26_v3  ;;  %v23_v8 = vpack.c.bf16 %v22_v7, %v22_v7  ;;  %v95_v15 = vld [vmem:[%s157_s2] ss:$0 sm:$0xff] }
   0x4   :  { %100 = vmatpush3.bf16.msra.mxu0 %v28_v4 }
   0x5   :  { %101 = vmatprep.subr.bf16.mxu0 %v109_v0 }
   0x8   :  { %102 = vmatpush3.bf16.msra.mxu0 %v29_v6  ;;  %v21_v9 = vld [vmem:[#allocation2] sm:$0x3] }
   0xb   :  { %104 = vmatmul.mubr.msk.bf16.vlgmr.msra.gmra.mrb[0].mxu0 %vm30_vm2, %v23_v8 }
  0xde   :  { %v68_v10 = vpop.f32.mrb[0].mxu0 }
  0xdf   :  { %v74_v11 = vadd.f32 %v68_v10, %v21_v9  ;;  %v105_v12 = vpop.f32.mrb[1].mxu0 }
  0xe0   :  { %v71_v13 = vpop.f32.mrb[2].mxu0 }
  0xe1   :  { %76 = vst.msk [vmem:[#allocation2] sm:$0x3] %vm19_vm0, %v74_v11  ;;  %v106_v14 = vpop.f32.mrb[3].mxu0 }
  0xe8   :  { %v80_v16 = vld [vmem:[#allocation2] sm:$0x3] }
  0xe9   :  { %v88_v17 = vadd.f32 %v95_v15, %v80_v16 }
  0xeb   :  { %89 = vst.msk [vmem:[%s158_s3] sm:$0x3] %vm19_vm0, %v88_v17 }

// kernel: original_clip_forward.53
= control target key start
LH: loop header
LB: loop body
LE: loop exit
PB: predicated region body
PF: predicated region fallthrough
CT: control target
= control target key end

     0   :  { %s301_s12 = smov 0   ;;  %s327_s0 = inlined_call_operand.vmem [shape: f32[24,32], index: 0, kind: input, shape index: {}]   ;;  %s328_s1 = inlined_call_operand.vmem [shape: f32[1,32], index: 1, kind: input, shape index: {}]   ;;  %s329_s2 = inlined_call_operand.vmem [shape: f32[1,32], index: 2, kind: input, shape index: {}]   ;;  %s330_s3 = inlined_call_operand.vmem [shape: f32[24,32], index: 3, kind: output, shape index: {}]  }
   0x1 LB: > { %s252_s13 = sadd.s32 4294967295, %s279_s12   ;;  %p256_p0 = scmp.ge.s32.totalorder %s279_s12, 1  ;;  %s279_s12 = sphi %s301_s12, %s13_s12  }
   0x2   : > { %p136_p1 = scmp.lt.s32.totalorder %s279_s12, 4 }
   0x4   : > { %p137_p2 = pnand %p256_p0, %p136_p1 }
   0x5   : > { %p158_p3 = scmp.lt.s32.totalorder (!%p137_p2), %s252_s13, 2  ;;  %vm167_vm0 = vcmask (!%p137_p2), 261120   ;;  %v259_v11 = vld [vmem:[%s328_s1] ss:$0 sm:$0xff] (!%p137_p2) }
   0x6   : > { %140 = sbr.rel (%p137_p2) target bundleno = 331 (0x14b), region = 32  ;;  %v260_v13 = vld [vmem:[%s329_s2] ss:$0 sm:$0xff] (!%p137_p2) }
   0xd   : > { %s332_s13 = smov (!%p158_p3, %s252_s13), 2 }
   0xe   : > { %s257_s14 = sshll.u32 %s332_s13, 3 }
   0xf   : > { %s161_s17 = scalar_lea.vmem %s327_s0, %s257_s14  ;;  %s165_s24 = scalar_lea.vmem %s330_s3, %s257_s14 }
  0x10   : > { %v166_v0 = vld [vmem:[%s161_s17] sm:$0xff] }
  0x11   : > { %v168_v1 = vsel %vm167_vm0, %v166_v0, 0.0 }
  0x12   : > { %169 = vadd.xlane.f32.xlu0 %v168_v1 }
  0x9f   : > { %v170_v2 = vpop.xlane.xlu0 %169 }
  0xa0   : > { %v172_v3 = vmul.f32 0.03125, %v170_v2 }
  0xa2   : > { %v173_v4 = vsub.f32 %v166_v0, %v172_v3 }
  0xa4   : > { %v174_v5 = vmul.f32 %v173_v4, %v173_v4 }
  0xa6   : > { %v175_v6 = vsel %vm167_vm0, %v174_v5, 0.0 }
  0xa7   : > { %176 = vadd.xlane.f32.xlu0 %v175_v6 }
 0x134   : > { %v177_v7 = vpop.xlane.xlu0 %176 }
 0x135   : > { %v178_v8 = vmul.f32 0.03125, %v177_v7 }
 0x137   : > { %v179_v9 = vadd.f32 1e-05, %v178_v8 }
 0x139   : > { %271 = vrsqrt.f32 %v179_v9 }
 0x143   : > { %v272_v10 = vpop.eup %271 }
 0x144   : > { %v181_v12 = vmul.f32 %v272_v10, %v173_v4 }
 0x146   : > { %v189_v14 = vmul.f32 %v259_v11, %v181_v12 }
 0x148   : > { %v197_v15 = vadd.f32 %v260_v13, %v189_v14 }
 0x14a   : > { %198 = vst.msk [vmem:[%s165_s24] sm:$0xff] %vm167_vm0, %v197_v15 }
 0x14b PF: > { %s13_s12 = sadd.s32 1, %s279_s12  }
 0x14c   : > { %p10_p4 = scmp.ge.s32.totalorder %s13_s12, 5  }
 0x14e   :  { %12 = sbr.rel (!%p10_p4) target bundleno = 1 (0x1), region = 62 }

// kernel: original_clip_forward.54
= control target key start
LH: loop header
LB: loop body
LE: loop exit
PB: predicated region body
PF: predicated region fallthrough
CT: control target
= control target key end

     0   :  { %s531_s12 = smov 0   ;;  %s533_s13 = smov 0   ;;  %s582_s0 = inlined_call_operand.vmem [shape: f32[24,32], index: 0, kind: input, shape index: {}]   ;;  %s583_s1 = inlined_call_operand.vmem [shape: f32[32,96], index: 1, kind: input, shape index: {}]   ;;  %s584_s2 = inlined_call_operand.vmem [shape: f32[1,96], index: 2, kind: input, shape index: {}]   ;;  %s585_s3 = inlined_call_operand.vmem [shape: f32[24,96], index: 3, kind: output, shape index: {}]  }
   0x1   :  { %s535_s14 = smov 0  }
   0x2 LB: > { %s32_s15 = sadd.s32 1, %s503_s13  ;;  %p441_p0 = scmp.ge.s32.totalorder %s507_s14, 1  ;;  %s507_s14 = sphi %s535_s14, %s13_s14   ;;  %s503_s13 = sphi %s533_s13, %s587_s13   ;;  %s499_s12 = sphi %s531_s12, %s586_s12  }
   0x3   : > { %p34_p1 = scmp.ge.s32.totalorder %s32_s15, 3  ;;  %p186_p2 = scmp.lt.s32.totalorder %s507_s14, 4 }
   0x5   : > { %s589_s15 = smov (%p34_p1, %s32_s15), 0  ;;  %p187_p3 = pnand %p441_p0, %p186_p2 }
   0x6   : > { %vm256_vm0 = vcmask (!%p187_p3), 785408   ;;  %v261_v0 = vld [vmem:[%s583_s1] sm:$0xff] (!%p187_p3)  ;;  %v262_v1 = vld [vmem:[%s583_s1 + $0x8] sm:$0xff] (!%p187_p3)  ;;  %v263_v2 = vld [vmem:[%s583_s1 + $0x10] sm:$0xff] (!%p187_p3)  ;;  %v509_v3 = vmov (!%p187_p3), 0.0   ;;  %vm510_vm1 = vmmov (!%p187_p3), 0  }
   0x7   : > { %190 = sbr.rel (%p187_p3) target bundleno = 245 (0xf5), region = 32  ;;  %257 = vst.msk [vmem:[#allocation2] sm:$0xff] (!%p187_p3), %vm256_vm0, %v509_v3  ;;  %451 = vmatprep.subr.bf16.mxu0 (!%p187_p3), %v509_v3  ;;  %v265_v4 = vpack.c.bf16 (!%p187_p3), %v262_v1, %v261_v0  ;;  %v264_v5 = vld [vmem:[%s583_s1 + $0x18] sm:$0xff] (!%p187_p3)  ;;  %455 = vmatprep.mubr.msk.bf16.mxu0 (!%p187_p3), %vm510_vm1, %v509_v3  ;;  %p225_p4 = scmp.lt.s32.totalorder (!%p187_p3), %s499_s12, 2  ;;  %vm267_vm2 = vcmask (!%p187_p3), 261120  }
   0x8   : > { %v266_v6 = vpack.c.bf16 (!%p187_p3), %v264_v5, %v263_v2  ;;  %v445_v15 = vld [vmem:[%s584_s2] ss:$0 sm:$0xff] (!%p187_p3) }
   0x9   : > { %452 = vmatpush3.bf16.msra.mxu0 (!%p187_p3), %v265_v4 }
   0xa   : > { %453 = vmatprep.subr.bf16.mxu0 (!%p187_p3), %v509_v3 }
   0xd   : > { %454 = vmatpush3.bf16.msra.mxu0 (!%p187_p3), %v266_v6 }
   0xe   : > { %s591_s12 = smov (!%p225_p4, %s499_s12), 2  ;;  %v258_v9 = vld [vmem:[#allocation2] sm:$0xff] }
   0xf   : > { %s442_s24 = sshll.u32 %s591_s12, 3 }
  0x10   : > { %s231_s27 = scalar_lea.vmem %s582_s0, %s442_s24  ;;  %s250_s5 = scalar_lea.vmem %s585_s3, %s442_s24 }
  0x11   : > { %v259_v7 = vld [vmem:[%s231_s27] sm:$0xff] }
  0x12   : > { %v260_v8 = vpack.c.bf16 %v259_v7, %v259_v7 }
  0x14   : > { %456 = vmatmul.mubr.msk.bf16.vlgmr.msra.gmra.mrb[0].mxu0 %vm267_vm2, %v260_v8 }
  0xe7   : > { %v305_v10 = vpop.f32.mrb[0].mxu0 }
  0xe8   : > { %v311_v11 = vadd.f32 %v305_v10, %v258_v9  ;;  %v457_v12 = vpop.f32.mrb[1].mxu0 }
  0xe9   : > { %v308_v13 = vpop.f32.mrb[2].mxu0 }
  0xea   : > { %313 = vst.msk [vmem:[#allocation2] sm:$0xff] %vm256_vm0, %v311_v11  ;;  %v458_v14 = vpop.f32.mrb[3].mxu0 }
  0xf1   : > { %v317_v16 = vld [vmem:[#allocation2] sm:$0xff] }
  0xf2   : > { %v325_v17 = vadd.f32 %v445_v15, %v317_v16 }
  0xf4   : > { %326 = vst.msk [vmem:[%s250_s5] sm:$0xff] %vm256_vm0, %v325_v17 }
  0xf5 PF: > { %s13_s14 = sadd.s32 1, %s507_s14   ;;  %s586_s12 = smov %s503_s13 }
  0xf6   : > { %p10_p5 = scmp.ge.s32.totalorder %s13_s14, 5   ;;  %s587_s13 = smov %s589_s15 }
  0xf8   :  { %12 = sbr.rel (!%p10_p5) target bundleno = 2 (0x2), region = 76 }

// kernel: original_clip_forward.56
= control target key start
LH: loop header
LB: loop body
LE: loop exit
PB: predicated region body
PF: predicated region fallthrough
CT: control target
= control target key end

     0   :  { %s608_s15 = smov 0   ;;  %s610_s16 = smov 0   ;;  %s663_s0 = inlined_call_operand.vmem [shape: f32[24,32], index: 0, kind: input, shape index: {}]   ;;  %s664_s1 = inlined_call_operand.vmem [shape: f32[32,32], index: 1, kind: input, shape index: {}]   ;;  %s665_s2 = inlined_call_operand.vmem [shape: f32[1,32], index: 2, kind: input, shape index: {}]   ;;  %s666_s3 = inlined_call_operand.vmem [shape: f32[24,32], index: 3, kind: input, shape index: {}]   ;;  %s667_s4 = inlined_call_operand.vmem [shape: f32[24,32], index: 4, kind: output, shape index: {}]  }
   0x1   :  { %s612_s17 = smov 0  }
   0x2 LB: > { %s33_s18 = sadd.s32 1, %s575_s16  ;;  %p512_p0 = scmp.ge.s32.totalorder %s579_s17, 1  ;;  %s579_s17 = sphi %s612_s17, %s14_s17   ;;  %s575_s16 = sphi %s610_s16, %s669_s16   ;;  %s571_s15 = sphi %s608_s15, %s668_s15  }
   0x3   : > { %p35_p1 = scmp.ge.s32.totalorder %s33_s18, 3  ;;  %p225_p2 = scmp.lt.s32.totalorder %s579_s17, 4 }
   0x5   : > { %s671_s18 = smov (%p35_p1, %s33_s18), 0  ;;  %p226_p3 = pnand %p512_p0, %p225_p2 }
   0x6   : > { %v316_v0 = vld [vmem:[%s664_s1] sm:$0xff] (!%p226_p3)  ;;  %v317_v1 = vld [vmem:[%s664_s1 + $0x8] sm:$0xff] (!%p226_p3)  ;;  %v318_v2 = vld [vmem:[%s664_s1 + $0x10] sm:$0xff] (!%p226_p3)  ;;  %p273_p4 = scmp.lt.s32.totalorder (!%p226_p3), %s571_s15, 2  ;;  %v581_v3 = vmov (!%p226_p3), 0.0   ;;  %vm582_vm0 = vmmov (!%p226_p3), 0  }
   0x7   : > { %229 = sbr.rel (%p226_p3) target bundleno = 247 (0xf7), region = 36  ;;  %523 = vmatprep.subr.bf16.mxu0 (!%p226_p3), %v581_v3  ;;  %v320_v4 = vpack.c.bf16 (!%p226_p3), %v317_v1, %v316_v0  ;;  %v319_v5 = vld [vmem:[%s664_s1 + $0x18] sm:$0xff] (!%p226_p3)  ;;  %527 = vmatprep.mubr.msk.bf16.mxu0 (!%p226_p3), %vm582_vm0, %v581_v3  ;;  %vm311_vm1 = vcmask (!%p226_p3), 261120   ;;  %v517_v15 = vld [vmem:[%s665_s2] ss:$0 sm:$0xff] (!%p226_p3) }
   0x8   : > { %312 = vst.msk [vmem:[#allocation2] sm:$0xff] (!%p226_p3), %vm311_vm1, %v581_v3  ;;  %v321_v6 = vpack.c.bf16 (!%p226_p3), %v319_v5, %v318_v2 }
   0x9   : > { %524 = vmatpush3.bf16.msra.mxu0 (!%p226_p3), %v320_v4 }
   0xa   : > { %525 = vmatprep.subr.bf16.mxu0 (!%p226_p3), %v581_v3 }
   0xd   : > { %526 = vmatpush3.bf16.msra.mxu0 (!%p226_p3), %v321_v6 }
   0xe   : > { %s673_s15 = smov (!%p273_p4, %s571_s15), 2 }
   0xf   : > { %s513_s27 = sshll.u32 %s673_s15, 3  ;;  %v313_v9 = vld [vmem:[#allocation2] sm:$0xff] }
  0x10   : > { %s279_s30 = scalar_lea.vmem %s663_s0, %s513_s27  ;;  %s298_s7 = scalar_lea.vmem %s666_s3, %s513_s27 }
  0x11   : > { %v314_v7 = vld [vmem:[%s279_s30] sm:$0xff]  ;;  %s305_s12 = scalar_lea.vmem %s667_s4, %s513_s27 }
  0x12   : > { %v315_v8 = vpack.c.bf16 %v314_v7, %v314_v7  ;;  %v380_v16 = vld [vmem:[%s298_s7] sm:$0xff] }
  0x14   : > { %528 = vmatmul.mubr.msk.bf16.vlgmr.msra.gmra.mrb[0].mxu0 %vm311_vm1, %v315_v8 }
  0xe7   : > { %v360_v10 = vpop.f32.mrb[0].mxu0 }
  0xe8   : > { %v366_v11 = vadd.f32 %v360_v10, %v313_v9  ;;  %v529_v12 = vpop.f32.mrb[1].mxu0 }
  0xe9   : > { %v363_v13 = vpop.f32.mrb[2].mxu0 }
  0xea   : > { %367 = vst.msk [vmem:[#allocation2] sm:$0xff] %vm311_vm1, %v366_v11  ;;  %v530_v14 = vpop.f32.mrb[3].mxu0 }
  0xf1   : > { %v371_v17 = vld [vmem:[#allocation2] sm:$0xff] }
  0xf2   : > { %v379_v18 = vadd.f32 %v517_v15, %v371_v17 }
  0xf4   : > { %v381_v19 = vadd.f32 %v380_v16, %v379_v18 }
  0xf6   : > { %382 = vst.msk [vmem:[%s305_s12] sm:$0xff] %vm311_vm1, %v381_v19 }
  0xf7 PF: > { %s14_s17 = sadd.s32 1, %s579_s17   ;;  %s668_s15 = smov %s575_s16 }
  0xf8   : > { %p11_p5 = scmp.ge.s32.totalorder %s14_s17, 5   ;;  %s669_s16 = smov %s671_s18 }
  0xfa   :  { %13 = sbr.rel (!%p11_p5) target bundleno = 2 (0x2), region = 83 }

// kernel: original_clip_forward.58
= control target key start
LH: loop header
LB: loop body
LE: loop exit
PB: predicated region body
PF: predicated region fallthrough
CT: control target
= control target key end

     0   :  { %s542_s12 = smov 0   ;;  %s544_s13 = smov 0   ;;  %s590_s0 = inlined_call_operand.vmem [shape: f32[24,32], index: 0, kind: input, shape index: {}]   ;;  %s591_s1 = inlined_call_operand.vmem [shape: f32[32,128], index: 1, kind: input, shape index: {}]   ;;  %s592_s2 = inlined_call_operand.vmem [shape: f32[1,128], index: 2, kind: input, shape index: {}]   ;;  %s593_s3 = inlined_call_operand.vmem [shape: f32[24,128], index: 3, kind: output, shape index: {}]  }
   0x1   :  { %s546_s14 = smov 0  }
   0x2 LB: > { %s32_s15 = sadd.s32 1, %s514_s13  ;;  %p447_p0 = scmp.ge.s32.totalorder %s518_s14, 1  ;;  %s518_s14 = sphi %s546_s14, %s13_s14   ;;  %s514_s13 = sphi %s544_s13, %s595_s13   ;;  %s510_s12 = sphi %s542_s12, %s594_s12  }
   0x3   : > { %p34_p1 = scmp.ge.s32.totalorder %s32_s15, 3  ;;  %p186_p2 = scmp.lt.s32.totalorder %s518_s14, 4 }
   0x5   : > { %s597_s15 = smov (%p34_p1, %s32_s15), 0  ;;  %p187_p3 = pnand %p447_p0, %p186_p2 }
   0x6   : > { %v260_v0 = vld [vmem:[%s591_s1] sm:$0xff] (!%p187_p3)  ;;  %v261_v1 = vld [vmem:[%s591_s1 + $0x8] sm:$0xff] (!%p187_p3)  ;;  %v262_v2 = vld [vmem:[%s591_s1 + $0x10] sm:$0xff] (!%p187_p3)  ;;  %p225_p4 = scmp.lt.s32.totalorder (!%p187_p3), %s510_s12, 2  ;;  %v520_v3 = vmov (!%p187_p3), 0.0   ;;  %vm521_vm0 = vmmov (!%p187_p3), 0  }
   0x7   : > { %190 = sbr.rel (%p187_p3) target bundleno = 265 (0x109), region = 32  ;;  %458 = vmatprep.subr.bf16.mxu0 (!%p187_p3), %v520_v3  ;;  %v264_v4 = vpack.c.bf16 (!%p187_p3), %v261_v1, %v260_v0  ;;  %v263_v5 = vld [vmem:[%s591_s1 + $0x18] sm:$0xff] (!%p187_p3)  ;;  %462 = vmatprep.mubr.msk.bf16.mxu0 (!%p187_p3), %vm521_vm0, %v520_v3  ;;  %vm266_vm1 = vcmask (!%p187_p3), 261120   ;;  %v451_v9 = vld [vmem:[%s592_s2] ss:$0 sm:$0xff] (!%p187_p3) }
   0x8   : > { %v265_v6 = vpack.c.bf16 (!%p187_p3), %v263_v5, %v262_v2 }
   0x9   : > { %459 = vmatpush3.bf16.msra.mxu0 (!%p187_p3), %v264_v4 }
   0xa   : > { %460 = vmatprep.subr.bf16.mxu0 (!%p187_p3), %v520_v3 }
   0xd   : > { %461 = vmatpush3.bf16.msra.mxu0 (!%p187_p3), %v265_v6 }
   0xe   : > { %s599_s12 = smov (!%p225_p4, %s510_s12), 2 }
   0xf   : > { %s448_s24 = sshll.u32 %s599_s12, 3 }
  0x10   : > { %s231_s27 = scalar_lea.vmem %s590_s0, %s448_s24  ;;  %s250_s5 = scalar_lea.vmem %s593_s3, %s448_s24 }
  0x11   : > { %v258_v7 = vld [vmem:[%s231_s27] sm:$0xff] }
  0x12   : > { %v259_v8 = vpack.c.bf16 %v258_v7, %v258_v7 }
  0x14   : > { %463 = vmatmul.mubr.msk.bf16.vlgmr.msra.gmra.mrb[0].mxu0 %vm266_vm1, %v259_v8 }
  0xe7   : > { %v304_v10 = vpop.f32.mrb[0].mxu0 }
  0xe8   : > { %v323_v11 = vadd.f32 %v451_v9, %v304_v10  ;;  %v464_v12 = vpop.f32.mrb[1].mxu0 }
  0xe9   : > { %v307_v13 = vpop.f32.mrb[2].mxu0 }
  0xea   : > { %v452_v14 = vmul.f32 -1.702, %v323_v11  ;;  %v465_v15 = vpop.f32.mrb[3].mxu0 }
  0xec   : > { %v326_v16 = vmul.f32 1.442695, %v452_v14 }
  0xee   : > { %492 = vpow2.f32 %v326_v16 }
  0xf8   : > { %v493_v17 = vpop.eup %492 }
  0xf9   : > { %v328_v18 = vadd.f32 1.0, %v493_v17 }
  0xfb   : > { %494 = vrcp.f32 %v328_v18 }
 0x105   : > { %v495_v19 = vpop.eup %494 }
 0x106   : > { %v331_v20 = vmul.f32 %v495_v19, %v323_v11 }
 0x108   : > { %332 = vst [vmem:[%s250_s5] sm:$0xff] %v331_v20 }
 0x109 PF: > { %s13_s14 = sadd.s32 1, %s518_s14   ;;  %s594_s12 = smov %s514_s13 }
 0x10a   : > { %p10_p5 = scmp.ge.s32.totalorder %s13_s14, 5   ;;  %s595_s13 = smov %s597_s15 }
 0x10c   :  { %12 = sbr.rel (!%p10_p5) target bundleno = 2 (0x2), region = 76 }

// kernel: original_clip_forward.59
= control target key start
LH: loop header
LB: loop body
LE: loop exit
PB: predicated region body
PF: predicated region fallthrough
CT: control target
= control target key end

     0   :  { %s640_s15 = smov 0   ;;  %s642_s16 = smov 0   ;;  %s734_s0 = inlined_call_operand.vmem [shape: f32[24,128], index: 0, kind: input, shape index: {}]   ;;  %s735_s1 = inlined_call_operand.vmem [shape: f32[128,32], index: 1, kind: input, shape index: {}]   ;;  %s736_s2 = inlined_call_operand.vmem [shape: f32[1,32], index: 2, kind: input, shape index: {}]   ;;  %s737_s3 = inlined_call_operand.vmem [shape: f32[24,32], index: 3, kind: input, shape index: {}]   ;;  %s738_s4 = inlined_call_operand.vmem [shape: f32[24,32], index: 4, kind: output, shape index: {}]  }
   0x1   :  { %s644_s17 = smov 0  }
   0x2 LB: > { %s33_s18 = sadd.s32 1, %s607_s16  ;;  %p527_p0 = scmp.ge.s32.totalorder %s611_s17, 1  ;;  %s611_s17 = sphi %s644_s17, %s14_s17   ;;  %s607_s16 = sphi %s642_s16, %s740_s16   ;;  %s603_s15 = sphi %s640_s15, %s739_s15  }
   0x3   : > { %p35_p1 = scmp.ge.s32.totalorder %s33_s18, 3  ;;  %p225_p2 = scmp.lt.s32.totalorder %s611_s17, 4 }
   0x5   : > { %s742_s18 = smov (%p35_p1, %s33_s18), 0  ;;  %p226_p3 = pnand %p527_p0, %p225_p2 }
   0x6   : > { %v316_v0 = vld [vmem:[%s735_s1] sm:$0xff] (!%p226_p3)  ;;  %v317_v1 = vld [vmem:[%s735_s1 + $0x8] sm:$0xff] (!%p226_p3)  ;;  %v318_v2 = vld [vmem:[%s735_s1 + $0x10] sm:$0xff] (!%p226_p3)  ;;  %v613_v3 = vmov (!%p226_p3), 0.0   ;;  %vm614_vm0 = vmmov (!%p226_p3), 0   ;;  %vm311_vm1 = vcmask (!%p226_p3), 261120  }
   0x7   : > { %229 = sbr.rel (%p226_p3) target bundleno = 267 (0x10b), region = 36  ;;  %543 = vmatprep.subr.bf16.mxu0 (!%p226_p3), %v613_v3  ;;  %v332_v4 = vpack.c.bf16 (!%p226_p3), %v317_v1, %v316_v0  ;;  %v319_v5 = vld [vmem:[%s735_s1 + $0x18] sm:$0xff] (!%p226_p3)  ;;  %559 = vmatprep.mubr.msk.bf16.mxu0 (!%p226_p3), %vm614_vm0, %v613_v3  ;;  %312 = vst.msk [vmem:[#allocation2] sm:$0xff] (!%p226_p3), %vm311_vm1, %v613_v3  ;;  %v320_v7 = vld [vmem:[%s735_s1 + $0x20] sm:$0xff] (!%p226_p3)  ;;  %v321_v8 = vld [vmem:[%s735_s1 + $0x28] sm:$0xff] (!%p226_p3)  ;;  %p273_p4 = scmp.lt.s32.totalorder (!%p226_p3), %s603_s15, 2 }
   0x8   : > { %v333_v6 = vpack.c.bf16 (!%p226_p3), %v319_v5, %v318_v2  ;;  %v334_v9 = vpack.c.bf16 (!%p226_p3), %v321_v8, %v320_v7  ;;  %v322_v10 = vld [vmem:[%s735_s1 + $0x30] sm:$0xff] (!%p226_p3)  ;;  %v323_v11 = vld [vmem:[%s735_s1 + $0x38] sm:$0xff] (!%p226_p3)  ;;  %v324_v13 = vld [vmem:[%s735_s1 + $0x40] sm:$0xff] (!%p226_p3) }
   0x9   : > { %544 = vmatpush3.bf16.msra.mxu0 (!%p226_p3), %v332_v4  ;;  %v335_v12 = vpack.c.bf16 (!%p226_p3), %v323_v11, %v322_v10  ;;  %v325_v14 = vld [vmem:[%s735_s1 + $0x48] sm:$0xff] (!%p226_p3)  ;;  %v326_v16 = vld [vmem:[%s735_s1 + $0x50] sm:$0xff] (!%p226_p3)  ;;  %v327_v17 = vld [vmem:[%s735_s1 + $0x58] sm:$0xff] (!%p226_p3) }
   0xa   : > { %545 = vmatprep.subr.bf16.mxu0 (!%p226_p3), %v613_v3  ;;  %v336_v15 = vpack.c.bf16 (!%p226_p3), %v325_v14, %v324_v13  ;;  %v337_v18 = vpack.c.bf16 (!%p226_p3), %v327_v17, %v326_v16  ;;  %v328_v19 = vld [vmem:[%s735_s1 + $0x60] sm:$0xff] (!%p226_p3)  ;;  %v329_v20 = vld [vmem:[%s735_s1 + $0x68] sm:$0xff] (!%p226_p3)  ;;  %v330_v22 = vld [vmem:[%s735_s1 + $0x70] sm:$0xff] (!%p226_p3) }
   0xb   : > { %v338_v21 = vpack.c.bf16 (!%p226_p3), %v329_v20, %v328_v19  ;;  %v331_v23 = vld [vmem:[%s735_s1 + $0x78] sm:$0xff] (!%p226_p3)  ;;  %v531_v33 = vld [vmem:[%s736_s2] ss:$0 sm:$0xff] (!%p226_p3) }
   0xc   : > { %v339_v24 = vpack.c.bf16 (!%p226_p3), %v331_v23, %v330_v22 }
   0xd   : > { %546 = vmatpush3.bf16.msra.mxu0 (!%p226_p3), %v333_v6 }
   0xe   : > { %547 = vmatprep.subr.bf16.mxu0 %v613_v3  ;;  %s744_s15 = smov (!%p273_p4, %s603_s15), 2  ;;  %v313_v27 = vld [vmem:[#allocation2] sm:$0xff] }
   0xf   : > { %s528_s25 = sshll.u32 %s744_s15, 3 }
  0x10   : > { %s279_s6 = scalar_lea.vmem %s734_s0, %s528_s25  ;;  %s298_s8 = scalar_lea.vmem %s737_s3, %s528_s25 }
  0x11   : > { %548 = vmatpush3.bf16.msra.mxu0 %v334_v9  ;;  %v314_v25 = vld [vmem:[%s279_s6] sm:$0xff]  ;;  %s305_s13 = scalar_lea.vmem %s738_s4, %s528_s25 }
  0x12   : > { %549 = vmatprep.subr.bf16.mxu0 %v613_v3  ;;  %v315_v26 = vpack.c.bf16 %v314_v25, %v314_v25  ;;  %v395_v34 = vld [vmem:[%s298_s8] sm:$0xff] }
  0x15   : > { %550 = vmatpush3.bf16.msra.mxu0 %v335_v12 }
  0x16   : > { %551 = vmatprep.subr.bf16.mxu0 %v613_v3 }
  0x19   : > { %552 = vmatpush3.bf16.msra.mxu0 %v336_v15 }
  0x1a   : > { %553 = vmatprep.subr.bf16.mxu0 %v613_v3 }
  0x1d   : > { %554 = vmatpush3.bf16.msra.mxu0 %v337_v18 }
  0x1e   : > { %555 = vmatprep.subr.bf16.mxu0 %v613_v3 }
  0x21   : > { %556 = vmatpush3.bf16.msra.mxu0 %v338_v21 }
  0x22   : > { %557 = vmatprep.subr.bf16.mxu0 %v613_v3 }
  0x25   : > { %558 = vmatpush3.bf16.msra.mxu0 %v339_v24 }
  0x28   : > { %560 = vmatmul.mubr.bf16.vlgmr.msra.gmra.mrb[0].mxu0 %v315_v26 }
  0xfb   : > { %v374_v28 = vpop.f32.mrb[0].mxu0 }
  0xfc   : > { %v380_v29 = vadd.f32 %v374_v28, %v313_v27  ;;  %v561_v30 = vpop.f32.mrb[1].mxu0 }
  0xfd   : > { %v377_v31 = vpop.f32.mrb[2].mxu0 }
  0xfe   : > { %382 = vst.msk [vmem:[#allocation2] sm:$0xff] %vm311_vm1, %v380_v29  ;;  %v562_v32 = vpop.f32.mrb[3].mxu0 }
 0x105   : > { %v386_v35 = vld [vmem:[#allocation2] sm:$0xff] }
 0x106   : > { %v394_v36 = vadd.f32 %v531_v33, %v386_v35 }
 0x108   : > { %v396_v37 = vadd.f32 %v395_v34, %v394_v36 }
 0x10a   : > { %397 = vst.msk [vmem:[%s305_s13] sm:$0xff] %vm311_vm1, %v396_v37 }
 0x10b PF: > { %s14_s17 = sadd.s32 1, %s611_s17   ;;  %s739_s15 = smov %s607_s16 }
 0x10c   : > { %p11_p5 = scmp.ge.s32.totalorder %s14_s17, 5   ;;  %s740_s16 = smov %s742_s18 }
 0x10e   :  { %13 = sbr.rel (!%p11_p5) target bundleno = 2 (0x2), region = 83 }

// kernel: original_clip_forward.55
= control target key start
LH: loop header
LB: loop body
LE: loop exit
PB: predicated region body
PF: predicated region fallthrough
CT: control target
= control target key end

     0   :  { %s798_s6 = smov 0   ;;  %s900_s0 = inlined_call_operand.vmem [shape: f32[3,8,96], index: 0, kind: input, shape index: {}]   ;;  %s901_s1 = inlined_call_operand.vmem [shape: f32[3,8,32], index: 1, kind: output, shape index: {}]  }
   0x1 LB: > { %s643_s7 = sadd.s32 4294967295, %s770_s6   ;;  %p647_p0 = scmp.ge.s32.totalorder %s770_s6, 1  ;;  %s770_s6 = sphi %s798_s6, %s11_s6  }
   0x2   : > { %p86_p1 = scmp.lt.s32.totalorder %s770_s6, 4 }
   0x4   : > { %p87_p2 = pnand %p647_p0, %p86_p1 }
   0x5   : > { %p104_p3 = scmp.lt.s32.totalorder (!%p87_p2), %s643_s7, 2  ;;  %v772_v0 = vmov (!%p87_p2), 0.0   ;;  %vm773_vm0 = vmmov (!%p87_p2), 0   ;;  %s774_s12 = smov (!%p87_p2), 96   ;;  %vm125_vm1 = vcmask (!%p87_p2), 64512   ;;  %v113_v5 = vlaneseq (!%p87_p2) }
   0x6   : > { %90 = sbr.rel (%p87_p2) target bundleno = 1602 (0x642), region = 24  ;;  %676 = vmatprep.subr.bf16.mxu0 (!%p87_p2), %v772_v0  ;;  %678 = vmatprep.mubr.msk.bf16.mxu0 (!%p87_p2), %vm773_vm0, %v772_v0  ;;  %s775_s13 = smov (!%p87_p2), 64   ;;  %vm191_vm5 = vcmask (!%p87_p2), 1043456   ;;  %vm584_vm6 = vcmask (!%p87_p2), 130048   ;;  %vm586_vm7 = vcmask (!%p87_p2), 195584   ;;  %vm588_vm8 = vcmask (!%p87_p2), 261120  }
   0x7   : > { %682 = vmatprep.subr.bf16.mxu1 (!%p87_p2), %v772_v0  ;;  %684 = vmatprep.mubr.msk.bf16.mxu1 (!%p87_p2), %vm773_vm0, %v772_v0  ;;  %s776_s14 = smov (!%p87_p2), 88   ;;  %v114_v6 = vand.u32 (!%p87_p2), 127, %v113_v5  ;;  %v117_v7 = vshrl.u32 (!%p87_p2), %v113_v5, 7  ;;  %s777_s15 = smov (!%p87_p2), 72  }
   0x8   : > { %s778_s16 = smov (!%p87_p2), 120   ;;  %s779_s17 = smov (!%p87_p2), 80  }
   0x9   : > { %vm115_vm2 = vcmp.ge.s32.totalorder (!%p87_p2), %v114_v6, 8  ;;  %vm118_vm3 = vcmp.gt.s32.totalorder (!%p87_p2), %v114_v6, %v117_v7  ;;  %s780_s18 = smov (!%p87_p2), 112   ;;  %s781_s19 = smov (!%p87_p2), 104  }
   0xa   : > { %vm831_vm4 = vmor (!%p87_p2), %vm115_vm2, %vm118_vm3  ;;  %s782_s20 = smov (!%p87_p2), 56   ;;  %s783_s21 = smov (!%p87_p2), 48  }
   0xb   : > { %s784_s22 = smov (!%p87_p2), 40   ;;  %s785_s23 = smov (!%p87_p2), 8  }
   0xc   : > { %s786_s24 = smov (!%p87_p2), 16   ;;  %s787_s25 = smov (!%p87_p2), 24  }
   0xd   : > { %s905_s7 = smov (!%p104_p3, %s643_s7), 2 }
   0xe   : > { %s648_s8 = sshll.u32 %s905_s7, 3 }
   0xf   : > { %s107_s11 = scalar_lea.vmem %s900_s0, %s648_s8  ;;  %s111_s28 = scalar_lea.vmem %s901_s1, %s648_s8 }
  0x10   : > { %v120_v1 = vld [vmem:[%s107_s11] sm:$0xff] }
  0x11   : > { %v820_v2 = vpack.c.bf16 %v120_v1, %v120_v1 }
  0x13   : > { %123 = vrot.lane.b32.xlu0 %v820_v2, %s774_s12  ;;  %186 = vrot.lane.b32.xlu1 %v820_v2, %s775_s13 }
  0x17   : > { %237 = vrot.lane.b32.xlu1 %v820_v2, %s776_s14 }
  0x85   : > { %v124_v3 = vpop.permute.xlu0 %123  ;;  %v187_v16 = vpop.permute.xlu1 %186 }
  0x86   : > { %v130_v4 = vsel %vm125_vm1, %v124_v3, 0  ;;  %v193_v17 = vsel %vm191_vm5, %v187_v16, 0 }
  0x87   : > { %677 = vmatpush3.bf16.xpose.msra.mxu0 %v130_v4  ;;  %683 = vmatpush3.bf16.msra.mxu1 %v193_v17 }
  0x88   : > { %694 = vmatprep.subr.bf16.mxu0 %v772_v0  ;;  %688 = vmatprep.subr.bf16.mxu1 %v772_v0 }
  0x89   : > { %v238_v23 = vpop.permute.xlu1 %237 }
  0x8a   : > { %v243_v29 = vsel %vm125_vm1, %v238_v23, 0 }
  0x8e   : > { %679 = vmatmul.mubr.msk.bf16.vlgmr.msra.gmra.mrb[0].mxu0 %vm125_vm1, %v820_v2 }
  0x8f   : > { %696 = vmatprep.mubr.msk.bf16.mxu0 %vm773_vm0, %v772_v0 }
 0x161   : > { %v166_v8 = vpop.f32.mrb[0].mxu0 }
 0x162   : > { %v172_v10 = vmul.f32 0.35355338, %v166_v8  ;;  %v680_v11 = vpop.f32.mrb[1].mxu0 }
 0x163   : > { %v169_v12 = vpop.f32.mrb[2].mxu0 }
 0x164   : > { %v681_v13 = vpop.f32.mrb[3].mxu0  ;;  %v173_v14 = vsel %vm831_vm4, -1e+30, %v172_v10 }
 0x165   : > { %v174_v15 = vsel %vm125_vm1, %v173_v14, -inf }
 0x166   : > { %175 = vmax.xlane.f32.xlu0 %v174_v15 }
 0x17c   : > { %461 = vrot.lane.b32.xlu0 %v820_v2, %s777_s15 }
 0x1f3   : > { %v176_v18 = vpop.xlane.xlu0 %175 }
 0x1f4   : > { %v177_v19 = vsub.f32 %v173_v14, %v176_v18 }
 0x1f6   : > { %v178_v20 = vmul.f32 1.442695, %v177_v19 }
 0x1f7   : > { %v462_v32 = vpop.permute.xlu0 %461 }
 0x1f8   : > { %748 = vpow2.f32 %v178_v20  ;;  %v467_v34 = vsel %vm125_vm1, %v462_v32, 0 }
 0x202   : > { %v749_v21 = vpop.eup %748 }
 0x203   : > { %v180_v22 = vsel %vm125_vm1, %v749_v21, 0.0 }
 0x204   : > { %181 = vadd.xlane.f32.xlu1 %v180_v22 }
 0x215   : > { %235 = vrot.lane.b32.xlu1 %v820_v2, %s778_s16 }
 0x219   : > { %349 = vrot.lane.b32.xlu1 %v820_v2, %s779_s17 }
 0x21d   : > { %347 = vrot.lane.b32.xlu1 %v820_v2, %s780_s18 }
 0x221   : > { %459 = vrot.lane.b32.xlu1 %v820_v2, %s781_s19 }
 0x291   : > { %v182_v24 = vpop.xlane.xlu1 %181 }
 0x292   : > { %750 = vrcp.f32 %v182_v24 }
 0x295   : > { %v236_v27 = vpop.permute.xlu1 %235 }
 0x299   : > { %v350_v30 = vpop.permute.xlu1 %349 }
 0x29a   : > { %v355_v31 = vsel %vm125_vm1, %v350_v30, 0 }
 0x29c   : > { %v751_v25 = vpop.eup %750 }
 0x29d   : > { %v184_v26 = vmul.f32 %v751_v25, %v749_v21  ;;  %v348_v33 = vpop.permute.xlu1 %347 }
 0x29f   : > { %v185_v28 = vpack.c.bf16 %v184_v26, %v184_v26 }
 0x2a1   : > { %685 = vmatmul.mubr.msk.bf16.vlgmr.msra.gmra.mrb[0].mxu1 %vm125_vm1, %v185_v28  ;;  %v460_v35 = vpop.permute.xlu1 %459 }
 0x2a2   : > { %689 = vmatpush3.bf16.xpose.msra.mxu1 %v243_v29  ;;  %690 = vmatprep.mubr.msk.bf16.mxu1 %vm773_vm0, %v772_v0 }
 0x2a3   : > { %700 = vmatprep.subr.bf16.mxu1 %v772_v0 }
 0x2a9   : > { %691 = vmatmul.mubr.msk.bf16.vlgmr.msra.gmra.mrb[4].mxu1 %vm125_vm1, %v236_v27 }
 0x2aa   : > { %701 = vmatpush3.bf16.xpose.msra.mxu1 %v355_v31  ;;  %702 = vmatprep.mubr.msk.bf16.mxu1 %vm773_vm0, %v772_v0 }
 0x2ab   : > { %712 = vmatprep.subr.bf16.mxu1 %v772_v0 }
 0x2b1   : > { %703 = vmatmul.mubr.msk.bf16.vlgmr.msra.gmra.mrb[8].mxu1 %vm125_vm1, %v348_v33 }
 0x2b2   : > { %713 = vmatpush3.bf16.xpose.msra.mxu1 %v467_v34  ;;  %714 = vmatprep.mubr.msk.bf16.mxu1 %vm773_vm0, %v772_v0 }
 0x2b9   : > { %715 = vmatmul.mubr.msk.bf16.vlgmr.msra.gmra.mrb[12].mxu1 %vm125_vm1, %v460_v35 }
 0x374   : > { %v861_v36 = vpop.f32.mrb[0].mxu1 }
 0x375   : > { %v686_v37 = vpop.f32.mrb[1].mxu1 }
 0x376   : > { %v232_v38 = vpop.f32.mrb[2].mxu1 }
 0x377   : > { %v687_v39 = vpop.f32.mrb[3].mxu1 }
 0x37c   : > { %v279_v40 = vpop.f32.mrb[4].mxu1 }
 0x37d   : > { %v285_v41 = vmul.f32 0.35355338, %v279_v40  ;;  %v692_v42 = vpop.f32.mrb[5].mxu1 }
 0x37e   : > { %v282_v43 = vpop.f32.mrb[6].mxu1 }
 0x37f   : > { %v693_v44 = vpop.f32.mrb[7].mxu1  ;;  %v286_v45 = vsel %vm831_vm4, -1e+30, %v285_v41 }
 0x380   : > { %v287_v46 = vsel %vm125_vm1, %v286_v45, -inf }
 0x381   : > { %288 = vmax.xlane.f32.xlu1 %v287_v46 }
 0x384   : > { %v391_v47 = vpop.f32.mrb[8].mxu1 }
 0x385   : > { %v397_v48 = vmul.f32 0.35355338, %v391_v47  ;;  %v704_v49 = vpop.f32.mrb[9].mxu1 }
 0x386   : > { %v394_v50 = vpop.f32.mrb[10].mxu1 }
 0x387   : > { %v398_v51 = vsel %vm831_vm4, -1e+30, %v397_v48  ;;  %v705_v52 = vpop.f32.mrb[11].mxu1 }
 0x388   : > { %v399_v53 = vsel %vm125_vm1, %v398_v51, -inf }
 0x389   : > { %400 = vmax.xlane.f32.xlu0 %v399_v53 }
 0x38c   : > { %v503_v54 = vpop.f32.mrb[12].mxu1 }
 0x38d   : > { %v509_v55 = vmul.f32 0.35355338, %v503_v54  ;;  %v716_v56 = vpop.f32.mrb[13].mxu1 }
 0x38e   : > { %v506_v57 = vpop.f32.mrb[14].mxu1 }
 0x38f   : > { %v510_v58 = vsel %vm831_vm4, -1e+30, %v509_v55  ;;  %v717_v59 = vpop.f32.mrb[15].mxu1 }
 0x390   : > { %v511_v60 = vsel %vm125_vm1, %v510_v58, -inf }
 0x391   : > { %512 = vmax.xlane.f32.xlu1 %v511_v60 }
 0x40e   : > { %v289_v61 = vpop.xlane.xlu1 %288 }
 0x40f   : > { %v290_v62 = vsub.f32 %v286_v45, %v289_v61 }
 0x411   : > { %v291_v63 = vmul.f32 1.442695, %v290_v62 }
 0x413   : > { %752 = vpow2.f32 %v291_v63 }
 0x416   : > { %v401_v9 = vpop.xlane.xlu0 %400 }
 0x417   : > { %v402_v10 = vsub.f32 %v398_v51, %v401_v9 }
 0x419   : > { %v403_v11 = vmul.f32 1.442695, %v402_v10 }
 0x41d   : > { %v753_v1 = vpop.eup %752 }
 0x41e   : > { %v513_v3 = vpop.xlane.xlu1 %512  ;;  %v293_v4 = vsel %vm125_vm1, %v753_v1, 0.0 }
 0x41f   : > { %v514_v5 = vsub.f32 %v510_v58, %v513_v3  ;;  %294 = vadd.xlane.f32.xlu1 %v293_v4 }
 0x421   : > { %v515_v6 = vmul.f32 1.442695, %v514_v5 }
 0x423   : > { %754 = vpow2.f32 %v515_v6 }
 0x424   : > { %756 = vpow2.f32 %v403_v11 }
 0x42d   : > { %v755_v7 = vpop.eup %754 }
 0x42e   : > { %v517_v8 = vsel %vm125_vm1, %v755_v7, 0.0  ;;  %v757_v12 = vpop.eup %756 }
 0x42f   : > { %518 = vadd.xlane.f32.xlu0 %v517_v8  ;;  %v405_v13 = vsel %vm125_vm1, %v757_v12, 0.0 }
 0x430   : > { %299 = vrot.lane.b32.xlu1 %v820_v2, %s782_s20 }
 0x445   : > { %411 = vrot.lane.b32.xlu0 %v820_v2, %s783_s21 }
 0x454   : > { %406 = vadd.xlane.f32.xlu1 %v405_v13 }
 0x465   : > { %523 = vrot.lane.b32.xlu1 %v820_v2, %s784_s22 }
 0x4ac   : > { %v295_v14 = vpop.xlane.xlu1 %294 }
 0x4ad   : > { %758 = vrcp.f32 %v295_v14 }
 0x4b0   : > { %v300_v15 = vpop.permute.xlu1 %299 }
 0x4b1   : > { %v305_v16 = vsel %vm191_vm5, %v300_v15, 0 }
 0x4b2   : > { %695 = vmatpush3.bf16.msra.mxu0 %v305_v16 }
 0x4b3   : > { %706 = vmatprep.subr.bf16.mxu0 %v772_v0 }
 0x4b7   : > { %v759_v17 = vpop.eup %758 }
 0x4b8   : > { %v297_v18 = vmul.f32 %v759_v17, %v753_v1 }
 0x4ba   : > { %v298_v19 = vpack.c.bf16 %v297_v18, %v297_v18 }
 0x4bc   : > { %697 = vmatmul.mubr.msk.bf16.vlgmr.msra.gmra.mrb[4].mxu0 %vm125_vm1, %v298_v19  ;;  %v519_v20 = vpop.xlane.xlu0 %518 }
 0x4bd   : > { %708 = vmatprep.mubr.msk.bf16.mxu0 %vm773_vm0, %v772_v0 }
 0x4c0   : > { %v412_v21 = vpop.permute.xlu0 %411 }
 0x4c1   : > { %v417_v2 = vsel %vm191_vm5, %v412_v21, 0 }
 0x4c2   : > { %707 = vmatpush3.bf16.msra.mxu0 %v417_v2 }
 0x4c3   : > { %718 = vmatprep.subr.bf16.mxu0 %v772_v0 }
 0x4e1   : > { %v407_v22 = vpop.xlane.xlu1 %406 }
 0x4e2   : > { %760 = vrcp.f32 %v407_v22 }
 0x4e3   : > { %762 = vrcp.f32 %v519_v20 }
 0x4e5   : > { %v524_v24 = vpop.permute.xlu1 %523 }
 0x4e6   : > { %v529_v26 = vsel %vm191_vm5, %v524_v24, 0 }
 0x4ec   : > { %v761_v23 = vpop.eup %760 }
 0x4ed   : > { %v409_v25 = vmul.f32 %v761_v23, %v757_v12  ;;  %v763_v28 = vpop.eup %762 }
 0x4ee   : > { %v521_v29 = vmul.f32 %v763_v28, %v755_v7 }
 0x4ef   : > { %v410_v27 = vpack.c.bf16 %v409_v25, %v409_v25 }
 0x4f0   : > { %v522_v30 = vpack.c.bf16 %v521_v29, %v521_v29 }
 0x4f1   : > { %709 = vmatmul.mubr.msk.bf16.vlgmr.msra.gmra.mrb[8].mxu0 %vm125_vm1, %v410_v27 }
 0x4f2   : > { %719 = vmatpush3.bf16.msra.mxu0 %v529_v26  ;;  %720 = vmatprep.mubr.msk.bf16.mxu0 %vm773_vm0, %v772_v0 }
 0x4f9   : > { %721 = vmatmul.mubr.msk.bf16.vlgmr.msra.gmra.mrb[12].mxu0 %vm125_vm1, %v522_v30 }
 0x58f   : > { %v341_v31 = vpop.f32.mrb[4].mxu0 }
 0x590   : > { %572 = vrot.lane.b32.xlu1 %v341_v31, %s785_s23  ;;  %v698_v32 = vpop.f32.mrb[5].mxu0 }
 0x591   : > { %v344_v33 = vpop.f32.mrb[6].mxu0 }
 0x592   : > { %v699_v34 = vpop.f32.mrb[7].mxu0 }
 0x5c4   : > { %v453_v35 = vpop.f32.mrb[8].mxu0 }
 0x5c5   : > { %576 = vrot.lane.b32.xlu0 %v453_v35, %s786_s24  ;;  %v710_v37 = vpop.f32.mrb[9].mxu0 }
 0x5c6   : > { %v456_v38 = vpop.f32.mrb[10].mxu0 }
 0x5c7   : > { %v711_v39 = vpop.f32.mrb[11].mxu0 }
 0x5cc   : > { %v565_v40 = vpop.f32.mrb[12].mxu0 }
 0x5cd   : > { %580 = vrot.lane.b32.xlu1 %v565_v40, %s787_s25  ;;  %v722_v0 = vpop.f32.mrb[13].mxu0 }
 0x5ce   : > { %v568_v41 = vpop.f32.mrb[14].mxu0 }
 0x5cf   : > { %v723_v42 = vpop.f32.mrb[15].mxu0 }
 0x602   : > { %v573_v43 = vpop.permute.xlu1 %572 }
 0x603   : > { %v583_v45 = vsel %vm125_vm1, %v861_v36, %v573_v43 }
 0x637   : > { %v577_v44 = vpop.permute.xlu0 %576 }
 0x638   : > { %v585_v46 = vsel %vm584_vm6, %v583_v45, %v577_v44 }
 0x63f   : > { %v581_v47 = vpop.permute.xlu1 %580 }
 0x640   : > { %v587_v48 = vsel %vm586_vm7, %v585_v46, %v581_v47 }
 0x641   : > { %589 = vst.msk [vmem:[%s111_s28] sm:$0xff] %vm588_vm8, %v587_v48 }
 0x642 PF: > { %s11_s6 = sadd.s32 1, %s770_s6  }
 0x643   : > { %p8_p4 = scmp.ge.s32.totalorder %s11_s6, 5  }
 0x645   :  { %10 = sbr.rel (!%p8_p4) target bundleno = 1 (0x1), region = 54 }

// kernel: original_clip_forward.69
= control target key start
LH: loop header
LB: loop body
LE: loop exit
PB: predicated region body
PF: predicated region fallthrough
CT: control target
= control target key end

     0   :  { %11 = vsyncpa [#allocation4], 0  ;;  %vm30_vm0 = vcmask 256000   ;;  %s281_s0 = inlined_call_operand.vmem [shape: f32[2,32], index: 0, kind: input, shape index: {}]   ;;  %s282_s1 = inlined_call_operand.vmem [shape: f32[3,32], index: 1, kind: input, shape index: {}]   ;;  %s283_s2 = inlined_call_operand.<no memory space> [shape: f32[1,1], index: 2, kind: input, shape index: {}]   ;;  %s284_s3 = inlined_call_operand.hbm [shape: f32[2,3], index: 3, kind: output, shape index: {0}]   ;;  %s285_s4 = inlined_call_operand.hbm [shape: f32[3,32], index: 4, kind: output, shape index: {1}]  }
   0x1   :  { %v20_v0 = vld [vmem:[%s282_s1] sm:$0x7] }
   0x2   :  { %v19_v1 = vld [vmem:[%s281_s0] sm:$0x3]  ;;  %v29_v2 = vmul.f32 %v20_v0, %v20_v0 }
   0x3   :  { %v21_v3 = vmul.f32 %v19_v1, %v19_v1 }
   0x4   :  { %12 = vsyncpa [#allocation6], 0  ;;  %vm22_vm1 = vcmask 254976   ;;  %v31_v4 = vsel %vm30_vm0, %v29_v2, 0.0  ;;  %v217_v6 = vmov 0.0   ;;  %vm218_vm2 = vmmov 0  }
   0x5   :  { %32 = vadd.xlane.f32.xlu0 %v31_v4  ;;  %v23_v5 = vsel %vm22_vm1, %v21_v3, 0.0  ;;  %154 = vmatprep.subr.mxu0 %v217_v6  ;;  %vm41_vm3 = vcmask 261120   ;;  %s219_s0 = smov [#allocation5]  }
   0x6   :  { %156 = vmatprep.mubr.msk.f32.mxu0 %vm218_vm2, %v217_v6  ;;  %s138_s1 = sshll.u32 %s219_s0, 4  ;;  %s139_s1 = int_to_ptr.vmem [resolvable:$true] %s138_s1 }
   0x7   :  { %s169_s19 = scalar_lea.vmem %s139_s1, 64  ;;  %p174_p1 = scmp.lt.s32.totalorder %s139_s1, %s139_s1 }
   0x8   :  { %p170_p0 = scmp.ne.s32.totalorder %s139_s1, %s169_s19  ;;  %p175_p2 = scmp.lt.s32.totalorder %s169_s19, %s169_s19 }
   0x9   :  { %24 = vadd.xlane.f32.xlu0 %v23_v5 }
   0xa   :  { %p176_p3 = por %p175_p2, %p174_p1 }
   0xc   :  { %p177_p4 = pnand %p176_p3, %p170_p0 }
  0x92   :  { %v33_v7 = vpop.xlane.xlu0 %32 }
  0x93   :  { %v34_v8 = vmax.f32 %v33_v7, 1e-12 }
  0x95   :  { %163 = vrsqrt.f32 %v34_v8 }
  0x96   :  { %v25_v9 = vpop.xlane.xlu0 %24 }
  0x97   :  { %v26_v10 = vmax.f32 %v25_v9, 1e-12 }
  0x99   :  { %165 = vrsqrt.f32 %v26_v10 }
  0x9f   :  { %v164_v11 = vpop.eup %163 }
  0xa0   :  { %v36_v12 = vmul.f32 %v164_v11, %v20_v0 }
  0xa2   :  { %155 = vmatpush3.xpose.msk.msra.mxu0 %vm41_vm3, %v36_v12  ;;  %121 = vst.msk [vmem:[#allocation5] sm:$0x7] %vm30_vm0, %v36_v12 }
  0xa3   :  { %v166_v13 = vpop.eup %165 }
  0xa4   :  { %v28_v14 = vmul.f32 %v166_v13, %v19_v1 }
  0xa6   :  { %157 = vmatmul.mubr.msk.f32.vlgmr.msra.gmra.mrb[0].mxu0 %vm41_vm3, %v28_v14 }
  0xa7   :  { %180 = shalt.err (!%p177_p4)
}
  0xa8   :  { %s181_s22 = scalar_lea.hbm %s285_s4, 64 }
  0xa9   :  { %p182_p5 = scmp.ne.s32.totalorder %s285_s4, %s181_s22  ;;  %p185_p6 = scmp.lt.u32.totalorder %s181_s22, %s285_s4 }
  0xab   :  { %p187_p7 = pnand %p185_p6, %p182_p5 }
  0xad   :  { %190 = shalt.err (!%p187_p7)
}
  0xae   :  { %141 = dma.vmem_to_hbm [thread:$0]  %s139_s1, 64, %s285_s4, [#allocation6]   ;;  %v38_v15 = vstv %s283_s2  ;;  %vm119_vm4 = vcmask 17408  }
  0xaf   :  { %v39_v16 = vmul.f32 1.442695, %v38_v15  ;;  %s220_s5 = smov [#allocation3]  }
  0xb0   :  { %s128_s6 = sshll.u32 %s220_s5, 4  ;;  %s129_s6 = int_to_ptr.vmem [resolvable:$true] %s128_s6 }
  0xb1   :  { %167 = vpow2.f32 %v39_v16  ;;  %s191_s7 = scalar_lea.vmem %s129_s6, 32  ;;  %p196_p9 = scmp.lt.s32.totalorder %s129_s6, %s129_s6 }
  0xb2   :  { %p192_p8 = scmp.ne.s32.totalorder %s129_s6, %s191_s7  ;;  %p197_p10 = scmp.lt.s32.totalorder %s191_s7, %s191_s7 }
  0xb4   :  { %p198_p11 = por %p197_p10, %p196_p9 }
  0xb6   :  { %p199_p12 = pnand %p198_p11, %p192_p8 }
  0xbb   :  { %v168_v17 = vpop.eup %167 }
 0x179   :  { %v114_v18 = vpop.f32.mrb[0].mxu0 }
 0x17a   :  { %v118_v19 = vmul.f32 %v168_v17, %v114_v18  ;;  %v158_v20 = vpop.f32.mrb[1].mxu0 }
 0x17c   :  { %120 = vst.msk [vmem:[#allocation3] sm:$0x3] %vm119_vm4, %v118_v19 }
 0x17d   :  { %202 = shalt.err (!%p199_p12)
}
 0x17e   :  { %s203_s8 = scalar_lea.hbm %s284_s3, 32 }
 0x17f   :  { %p204_p13 = scmp.ne.s32.totalorder %s284_s3, %s203_s8  ;;  %p207_p0 = scmp.lt.u32.totalorder %s203_s8, %s284_s3 }
 0x181   :  { %p209_p1 = pnand %p207_p0, %p204_p13 }
 0x183   :  { %212 = shalt.err (!%p209_p1)
}
 0x184   :  { %131 = dma.vmem_to_hbm [thread:$0]  %s129_s6, 32, %s284_s3, [#allocation4]  }
 0x185   :  { %213 = dma.done.wait [#allocation4], 32  }
 0x186   :  { %214 = vsyncadd [#allocation4], 4294967264 }
 0x187   :  { %215 = dma.done.wait [#allocation6], 64  }
 0x188   :  { %216 = vsyncadd [#allocation6], 4294967232 }
 0x189   :  { %148 = vsyncpa [#allocation4], 1 }
 0x18a   :  { %149 = vsyncpa [#allocation6], 1 }

// kernel: original_clip_forward.68
= control target key start
LH: loop header
LB: loop body
LE: loop exit
PB: predicated region body
PF: predicated region fallthrough
CT: control target
= control target key end

     0   :  { %vm19_vm0 = vcmask 256000   ;;  %v109_v0 = vmov 0.0   ;;  %vm110_vm1 = vmmov 0   ;;  %vm30_vm2 = vcmask 261120   ;;  %s155_s1 = inlined_call_operand.vmem [shape: f32[32,32], index: 1, kind: input, shape index: {}]   ;;  %s156_s0 = inlined_call_operand.vmem [shape: f32[3,32], index: 0, kind: input, shape index: {}]   ;;  %s157_s2 = inlined_call_operand.vmem [shape: f32[1,32], index: 2, kind: input, shape index: {}]   ;;  %s158_s3 = inlined_call_operand.vmem [shape: f32[3,32], index: 3, kind: output, shape index: {}]  }
   0x1   :  { %20 = vst.msk [vmem:[#allocation2] sm:$0x7] %vm19_vm0, %v109_v0  ;;  %99 = vmatprep.subr.bf16.mxu0 %v109_v0  ;;  %v24_v1 = vld [vmem:[%s155_s1] sm:$0xff]  ;;  %v25_v2 = vld [vmem:[%s155_s1 + $0x8] sm:$0xff]  ;;  %v26_v3 = vld [vmem:[%s155_s1 + $0x10] sm:$0xff]  ;;  %103 = vmatprep.mubr.msk.bf16.mxu0 %vm110_vm1, %v109_v0 }
   0x2   :  { %v28_v4 = vpack.c.bf16 %v25_v2, %v24_v1  ;;  %v27_v5 = vld [vmem:[%s155_s1 + $0x18] sm:$0xff]  ;;  %v22_v7 = vld [vmem:[%s156_s0] sm:$0x7] }
   0x3   :  { %v29_v6 = vpack.c.bf16 %v27_v5, %v26_v3  ;;  %v23_v8 = vpack.c.bf16 %v22_v7, %v22_v7  ;;  %v95_v15 = vld [vmem:[%s157_s2] ss:$0 sm:$0xff] }
   0x4   :  { %100 = vmatpush3.bf16.msra.mxu0 %v28_v4 }
   0x5   :  { %101 = vmatprep.subr.bf16.mxu0 %v109_v0 }
   0x8   :  { %102 = vmatpush3.bf16.msra.mxu0 %v29_v6  ;;  %v21_v9 = vld [vmem:[#allocation2] sm:$0x7] }
   0xb   :  { %104 = vmatmul.mubr.msk.bf16.vlgmr.msra.gmra.mrb[0].mxu0 %vm30_vm2, %v23_v8 }
  0xde   :  { %v68_v10 = vpop.f32.mrb[0].mxu0 }
  0xdf   :  { %v74_v11 = vadd.f32 %v68_v10, %v21_v9  ;;  %v105_v12 = vpop.f32.mrb[1].mxu0 }
  0xe0   :  { %v71_v13 = vpop.f32.mrb[2].mxu0 }
  0xe1   :  { %76 = vst.msk [vmem:[#allocation2] sm:$0x7] %vm19_vm0, %v74_v11  ;;  %v106_v14 = vpop.f32.mrb[3].mxu0 }
  0xe8   :  { %v80_v16 = vld [vmem:[#allocation2] sm:$0x7] }
  0xe9   :  { %v88_v17 = vadd.f32 %v95_v15, %v80_v16 }
  0xeb   :  { %89 = vst.msk [vmem:[%s158_s3] sm:$0x7] %vm19_vm0, %v88_v17 }

</bundles_post_ra>
